<compile_context>
chip_gen: v7x
topology: tpu7x:2x2x1
jax: 0.10.0
libtpu: 0.0.40
codegen_flags: <defaults>
</compile_context>

<pallas_src>
import functools

import jax
import jax.numpy as jnp
from jax.experimental import pallas as pl
from jax.experimental.pallas import tpu as pltpu


def _fire_kernel(x_ref, wsq_ref, bsq_ref, wc_ref, bc_ref, out_ref, spad_ref,
                 *, B, H, W, LP):
    # x_ref   : (B*H*W, Cin)      bf16  flattened NHWC activations (B images)
    # wsq_ref : (Cin, Csq)        bf16  squeeze 1x1 weight
    # bsq_ref : (1, Csq)          f32
    # wc_ref  : (9*Csq, Cout)     bf16  combined expand weight ([e1|e3] cols,
    #                                   e1 nonzero only in center-tap rows)
    # bc_ref  : (1, Cout)         f32   combined bias [b1 | b3]
    # out_ref : (B*H*W, Cout)     f32
    # spad_ref: (B, H+2, Wp, Csq) bf16  padded squeeze map; live interior at
    #                                   [:, 1:H+1, LP:LP+W, :] (LP sublane-aligned)
    Csq = wsq_ref.shape[1]
    M = B * H * W
    Wp = spad_ref.shape[2]
    Hp = H + 2

    # ---- zero only the halo strips the 3x3 taps actually read ----
    # Invariant: interior-row columns outside [LP-2, LP+W+2) are never read
    # (and never initialized); keep in sync with the tap dx range below.
    zrow = jnp.zeros((B, 1, Wp, Csq), jnp.bfloat16)
    zcol = jnp.zeros((B, Hp, 2, Csq), jnp.bfloat16)      # 2-wide, even offset
    spad_ref[:, 0:1, :, :] = zrow                        # top halo row
    spad_ref[:, H + 1:H + 2, :, :] = zrow                # bottom halo row
    spad_ref[:, :, LP - 2:LP, :] = zcol                  # left halo (col LP-1)
    spad_ref[:, :, LP + W:LP + W + 2, :] = zcol          # right halo (col LP+W)

    # ---- squeeze 1x1 conv + ReLU (bf16 MXU matmul, f32 accumulation) ----
    s = jnp.dot(x_ref[...], wsq_ref[...], preferred_element_type=jnp.float32)
    s = jnp.maximum(s + bsq_ref[...], 0.0).astype(jnp.bfloat16)   # (M, Csq)
    # Sublane-aligned, unmasked interior store (LP multiple of bf16 sublane tile).
    spad_ref[:, 1:H + 1, LP:LP + W, :] = s.reshape(B, H, W, Csq)

    # ---- expand1x1 + expand3x3 + concat as a 9-tap accumulation ----
    # Each tap stays in its natural Csq-lane layout: no lane-axis im2col,
    # no large f32 intermediate, no per-step full-tensor cast.
    acc = None
    for t in range(9):                                   # statically unrolled
        dy, dx = t // 3, t % 3
        tap = spad_ref[:, dy:dy + H, LP - 1 + dx:LP - 1 + dx + W, :]
        p = jnp.dot(tap.reshape(M, Csq), wc_ref[t * Csq:(t + 1) * Csq, :],
                    preferred_element_type=jnp.float32)
        acc = p if acc is None else acc + p
    # TODO(synk): when Cout exceeds one MXU N-tile (>128 v5e / >256 v6e,v7x),
    # split expand1x1 out of the combined weight (8 taps carry all-zero e1
    # columns) instead of riding the zeros in MXU padding.
    y = jnp.maximum(acc + bc_ref[...], 0.0)              # (M, Cout) f32
    out_ref[...] = y.astype(out_ref.dtype)               # one full-width store


def _vmem_limit_bytes():
    """Generation-aware scoped-VMEM limit (leave headroom for internal scratch)."""
    cap = 128 * 1024 * 1024
    try:
        info = pltpu.get_tpu_info()
        cap = int(getattr(info, "vmem_capacity_bytes", cap) or cap)
    except Exception:
        pass
    return int(min(96 * 1024 * 1024, (3 * cap) // 4))    # ~96 MiB v5e/v6e, ~48 MiB v7x


def _pick_batch_block(N, H, W):
    """Block enough images per grid step so matmul M >= ~1024 rows."""
    b_blk = max(1, min(N, max(1, 1024 // (H * W))))
    while N % b_blk:
        b_blk -= 1
    if (b_blk * H * W) % 8 != 0 and b_blk != N:
        b_blk = N           # full-extent block is exempt from the (8, .) rule
    return b_blk


def prepare_fire_params(params):
    """One-time weight repacking (hoisted out of the per-call path)."""
    wsq, bsq, w1, b1, w3, b3 = params          # OIHW weights, 1-D biases
    Csq, Cin = wsq.shape[0], wsq.shape[1]
    Ce1, Ce3 = w1.shape[0], w3.shape[0]
    Cout = Ce1 + Ce3

    wsq_k = jnp.transpose(wsq[:, :, 0, 0], (1, 0)).astype(jnp.bfloat16)   # (Cin, Csq)
    bsq_k = bsq.reshape(1, Csq).astype(jnp.float32)

    # Combined expand weight: rows = 9 taps x Csq, cols = [e1 | e3].
    # Tap order matches the kernel's t = dy*3 + dx loop.
    w3_k = jnp.transpose(w3, (2, 3, 1, 0)).reshape(9, Csq, Ce3)           # (tap, Csq, Ce3)
    w1_k = jnp.transpose(w1[:, :, 0, 0], (1, 0))                          # (Csq, Ce1)
    wc = jnp.zeros((9, Csq, Cout), jnp.float32)
    wc = wc.at[:, :, Ce1:].set(w3_k)
    wc = wc.at[4, :, :Ce1].set(w1_k)           # center tap (dy=1, dx=1)
    wc_k = wc.reshape(9 * Csq, Cout).astype(jnp.bfloat16)
    bc_k = jnp.concatenate([b1, b3]).reshape(1, Cout).astype(jnp.float32)
    return (wsq_k, bsq_k, wc_k, bc_k)


def fire_pallas(x_nchw, prep_params, *, b_blk=None):
    """x_nchw: (N, Cin, H, W) float32. Returns (N, Ce1+Ce3, H, W) float32."""
    wsq_k, bsq_k, wc_k, bc_k = prep_params
    N, Cin, H, W = x_nchw.shape
    Csq = wsq_k.shape[1]
    Cout = wc_k.shape[1]
    if b_blk is None:
        b_blk = _pick_batch_block(N, H, W)
    M = b_blk * H * W

    LP = 16                                    # bf16 sublane-aligned left halo
    Wp = ((LP + W + 2 + 15) // 16) * 16        # padded scratch width

    # NCHW -> NHWC (bf16 halves the input DMA), flattened to 2-D so the kernel
    # never reshapes its input/output refs.
    # TODO(synk): in a full network keep activations NHWC end-to-end so this
    # transpose happens once at the model boundary, not per Fire layer.
    x2d = jnp.transpose(x_nchw, (0, 2, 3, 1)).astype(jnp.bfloat16)
    x2d = x2d.reshape(N * H * W, Cin)

    kernel = functools.partial(_fire_kernel, B=b_blk, H=H, W=W, LP=LP)

    out2d = pl.pallas_call(
        kernel,
        out_shape=jax.ShapeDtypeStruct((N * H * W, Cout), jnp.float32),
        grid_spec=pltpu.PrefetchScalarGridSpec(
            num_scalar_prefetch=0,
            grid=(N // b_blk,),
            in_specs=[
                pl.BlockSpec((M, Cin), lambda n: (n, 0)),
                pl.BlockSpec((Cin, Csq), lambda n: (0, 0)),
                pl.BlockSpec((1, Csq), lambda n: (0, 0)),
                pl.BlockSpec((9 * Csq, Cout), lambda n: (0, 0)),
                pl.BlockSpec((1, Cout), lambda n: (0, 0)),
            ],
            out_specs=pl.BlockSpec((M, Cout), lambda n: (n, 0)),
            scratch_shapes=[pltpu.VMEM((b_blk, H + 2, Wp, Csq), jnp.bfloat16)],
        ),
        compiler_params=pltpu.CompilerParams(
            dimension_semantics=("parallel",),
            vmem_limit_bytes=_vmem_limit_bytes()),
    )(x2d, wsq_k, bsq_k, wc_k, bc_k)

    # TODO(synk): for Cout < 128 a lane-dense (N, H, W*Cout) output layout would
    # avoid masked partial stores; production Fire layers have Cout >= 128.
    # TODO(synk): for large H,W on v7x (2 TCs, 64 MiB VMEM) add a "parallel"
    # spatial grid axis over H with a 1-row halo, and pad W to a multiple of 8
    # for real SqueezeNet widths (55/27/13) so in-kernel reshapes stay free.
    out_nhwc = out2d.reshape(N, H, W, Cout)
    return jnp.transpose(out_nhwc, (0, 3, 1, 2))          # NHWC -> NCHW


def fire_reference(x_nchw, params):
    """Pure-JAX f32 reference (lax.conv) matching PyTorch semantics."""
    wsq, bsq, w1, b1, w3, b3 = params

    def conv(x, w, b, pad):
        y = jax.lax.conv_general_dilated(
            x, w, window_strides=(1, 1), padding=((pad, pad), (pad, pad)),
            dimension_numbers=("NCHW", "OIHW", "NCHW"))
        return y + b.reshape(1, -1, 1, 1)

    s = jax.nn.relu(conv(x_nchw, wsq, bsq, 0))
    e1 = jax.nn.relu(conv(s, w1, b1, 0))
    e3 = jax.nn.relu(conv(s, w3, b3, 1))
    return jnp.concatenate([e1, e3], axis=1)


def make_fire_params(key, inplanes, squeeze_planes, e1_planes, e3_planes):
    ks = jax.random.split(key, 6)
    scale = 0.1
    wsq = scale * jax.random.normal(ks[0], (squeeze_planes, inplanes, 1, 1), jnp.float32)
    bsq = scale * jax.random.normal(ks[1], (squeeze_planes,), jnp.float32)
    w1 = scale * jax.random.normal(ks[2], (e1_planes, squeeze_planes, 1, 1), jnp.float32)
    b1 = scale * jax.random.normal(ks[3], (e1_planes,), jnp.float32)
    w3 = scale * jax.random.normal(ks[4], (e3_planes, squeeze_planes, 3, 3), jnp.float32)
    b3 = scale * jax.random.normal(ks[5], (e3_planes,), jnp.float32)
    return (wsq, bsq, w1, b1, w3, b3)


if __name__ == "__main__":
    key = jax.random.PRNGKey(0)
    k_x, k_p = jax.random.split(key)

    # Small Fire config: inplanes=4, squeeze=8, expand1x1=8, expand3x3=8
    N, Cin, H, W = 2, 4, 16, 16
    params = make_fire_params(k_p, Cin, 8, 8, 8)
    prep = prepare_fire_params(params)          # one-time weight repacking
    x = jax.random.normal(k_x, (N, Cin, H, W), jnp.float32)

    out = jax.block_until_ready(fire_pallas(x, prep))
    ref = jax.block_until_ready(fire_reference(x, params))

    assert out.shape == ref.shape == (N, 16, H, W)
    # Kernel contractions run in bf16 on the MXU (f32 accumulation) and the
    # squeeze map is held in bf16, so compare with a bf16-appropriate tolerance.
    assert jnp.allclose(out, ref, atol=3e-2, rtol=3e-2), "mismatch vs reference"

    print("KERNEL_OK")
</pallas_src>

<mosaic_0001>
module attributes {stable_mosaic.version = 11 : i64} {
  func.func @_fire_kernel(%arg0: i32, %arg1: memref<512x4xbf16, #tpu.memory_space<vmem>>, %arg2: memref<4x8xbf16, #tpu.memory_space<vmem>>, %arg3: memref<1x8xf32, #tpu.memory_space<vmem>>, %arg4: memref<72x16xbf16, #tpu.memory_space<vmem>>, %arg5: memref<1x16xf32, #tpu.memory_space<vmem>>, %arg6: memref<512x16xf32, #tpu.memory_space<vmem>>, %arg7: memref<2x18x48x8xbf16, #tpu.memory_space<vmem>>) attributes {dimension_semantics = [#tpu.dimension_semantics<parallel>], iteration_bounds = array<i64: 1>, scalar_prefetch = 0 : i64, scratch_operands = 1 : i64, tpu.core_type = #tpu.core_type<tc>, window_params = [{transform_indices = @transform_0, window_bounds = array<i64: 512, 4>}, {pipeline_mode = #tpu.pipeline_mode<synchronous>, transform_indices = @transform_1, window_bounds = array<i64: 4, 8>}, {pipeline_mode = #tpu.pipeline_mode<synchronous>, transform_indices = @transform_2, window_bounds = array<i64: 1, 8>}, {pipeline_mode = #tpu.pipeline_mode<synchronous>, transform_indices = @transform_3, window_bounds = array<i64: 72, 16>}, {pipeline_mode = #tpu.pipeline_mode<synchronous>, transform_indices = @transform_4, window_bounds = array<i64: 1, 16>}, {transform_indices = @transform_5, window_bounds = array<i64: 512, 16>}]} {
    %cst = arith.constant 0.000000e+00 : bf16
    %0 = vector.broadcast %cst : bf16 to vector<2x1x48x8xbf16>
    %cst_0 = arith.constant 0.000000e+00 : bf16
    %1 = vector.broadcast %cst_0 : bf16 to vector<2x18x2x8xbf16>
    %c0 = arith.constant 0 : index
    %c0_1 = arith.constant 0 : index
    %c0_2 = arith.constant 0 : index
    %c0_3 = arith.constant 0 : index
    %2 = vector.load %arg7[%c0, %c0_1, %c0_2, %c0_3] : memref<2x18x48x8xbf16, #tpu.memory_space<vmem>>, vector<2x1x48x8xbf16>
    tpu.vector_store %arg7[%c0, %c0_1, %c0_2, %c0_3], %0 {strides = array<i32>} : memref<2x18x48x8xbf16, #tpu.memory_space<vmem>>, vector<2x1x48x8xbf16>,
    %c0_4 = arith.constant 0 : index
    %c17 = arith.constant 17 : index
    %c0_5 = arith.constant 0 : index
    %c0_6 = arith.constant 0 : index
    %3 = vector.load %arg7[%c0_4, %c17, %c0_5, %c0_6] : memref<2x18x48x8xbf16, #tpu.memory_space<vmem>>, vector<2x1x48x8xbf16>
    tpu.vector_store %arg7[%c0_4, %c17, %c0_5, %c0_6], %0 {strides = array<i32>} : memref<2x18x48x8xbf16, #tpu.memory_space<vmem>>, vector<2x1x48x8xbf16>,
    %c0_7 = arith.constant 0 : index
    %c0_8 = arith.constant 0 : index
    %c14 = arith.constant 14 : index
    %c0_9 = arith.constant 0 : index
    %4 = vector.load %arg7[%c0_7, %c0_8, %c14, %c0_9] : memref<2x18x48x8xbf16, #tpu.memory_space<vmem>>, vector<2x18x2x8xbf16>
    tpu.vector_store %arg7[%c0_7, %c0_8, %c14, %c0_9], %1 {strides = array<i32>} : memref<2x18x48x8xbf16, #tpu.memory_space<vmem>>, vector<2x18x2x8xbf16>,
    %c0_10 = arith.constant 0 : index
    %c0_11 = arith.constant 0 : index
    %c32 = arith.constant 32 : index
    %c0_12 = arith.constant 0 : index
    %5 = vector.load %arg7[%c0_10, %c0_11, %c32, %c0_12] : memref<2x18x48x8xbf16, #tpu.memory_space<vmem>>, vector<2x18x2x8xbf16>
    tpu.vector_store %arg7[%c0_10, %c0_11, %c32, %c0_12], %1 {strides = array<i32>} : memref<2x18x48x8xbf16, #tpu.memory_space<vmem>>, vector<2x18x2x8xbf16>,
    %c0_13 = arith.constant 0 : index
    %c0_14 = arith.constant 0 : index
    %6 = vector.load %arg1[%c0_13, %c0_14] : memref<512x4xbf16, #tpu.memory_space<vmem>>, vector<512x4xbf16>
    %c0_15 = arith.constant 0 : index
    %c0_16 = arith.constant 0 : index
    %7 = vector.load %arg2[%c0_15, %c0_16] : memref<4x8xbf16, #tpu.memory_space<vmem>>, vector<4x8xbf16>
    %cst_17 = arith.constant dense<0.000000e+00> : vector<512x8xf32>
    %8 = tpu.matmul %6, %7, %cst_17 {dimension_numbers = #tpu.dot_dimension_numbers<[1], [0], [0], [1], [0, 0, 1, 1], [], []>} : vector<512x4xbf16>, vector<4x8xbf16>, vector<512x8xf32> -> vector<512x8xf32>
    %c0_18 = arith.constant 0 : index
    %c0_19 = arith.constant 0 : index
    %9 = vector.load %arg3[%c0_18, %c0_19] : memref<1x8xf32, #tpu.memory_space<vmem>>, vector<1x8xf32>
    %10 = vector.broadcast %9 : vector<1x8xf32> to vector<512x8xf32>
    %11 = arith.addf %8, %10 : vector<512x8xf32>
    %cst_20 = arith.constant 0.000000e+00 : f32
    %12 = vector.broadcast %cst_20 : f32 to vector<512x8xf32>
    %13 = arith.maximumf %11, %12 : vector<512x8xf32>
    %14 = arith.truncf %13 : vector<512x8xf32> to vector<512x8xbf16>
    %15 = vector.shape_cast %14 : vector<512x8xbf16> to vector<2x16x16x8xbf16>
    %c0_21 = arith.constant 0 : index
    %c1 = arith.constant 1 : index
    %c16 = arith.constant 16 : index
    %c0_22 = arith.constant 0 : index
    %16 = vector.load %arg7[%c0_21, %c1, %c16, %c0_22] : memref<2x18x48x8xbf16, #tpu.memory_space<vmem>>, vector<2x16x16x8xbf16>
    tpu.vector_store %arg7[%c0_21, %c1, %c16, %c0_22], %15 {strides = array<i32>} : memref<2x18x48x8xbf16, #tpu.memory_space<vmem>>, vector<2x16x16x8xbf16>,
    %c0_23 = arith.constant 0 : index
    %c0_24 = arith.constant 0 : index
    %c15 = arith.constant 15 : index
    %c0_25 = arith.constant 0 : index
    %17 = vector.load %arg7[%c0_23, %c0_24, %c15, %c0_25] : memref<2x18x48x8xbf16, #tpu.memory_space<vmem>>, vector<2x16x16x8xbf16>
    %18 = vector.shape_cast %17 : vector<2x16x16x8xbf16> to vector<512x8xbf16>
    %c0_26 = arith.constant 0 : index
    %c0_27 = arith.constant 0 : index
    %19 = vector.load %arg4[%c0_26, %c0_27] : memref<72x16xbf16, #tpu.memory_space<vmem>>, vector<8x16xbf16>
    %cst_28 = arith.constant dense<0.000000e+00> : vector<512x16xf32>
    %20 = tpu.matmul %18, %19, %cst_28 {dimension_numbers = #tpu.dot_dimension_numbers<[1], [0], [0], [1], [0, 0, 1, 1], [], []>} : vector<512x8xbf16>, vector<8x16xbf16>, vector<512x16xf32> -> vector<512x16xf32>
    %c0_29 = arith.constant 0 : index
    %c0_30 = arith.constant 0 : index
    %c16_31 = arith.constant 16 : index
    %c0_32 = arith.constant 0 : index
    %21 = vector.load %arg7[%c0_29, %c0_30, %c16_31, %c0_32] : memref<2x18x48x8xbf16, #tpu.memory_space<vmem>>, vector<2x16x16x8xbf16>
    %22 = vector.shape_cast %21 : vector<2x16x16x8xbf16> to vector<512x8xbf16>
    %c8 = arith.constant 8 : index
    %c0_33 = arith.constant 0 : index
    %23 = vector.load %arg4[%c8, %c0_33] : memref<72x16xbf16, #tpu.memory_space<vmem>>, vector<8x16xbf16>
    %cst_34 = arith.constant dense<0.000000e+00> : vector<512x16xf32>
    %24 = tpu.matmul %22, %23, %cst_34 {dimension_numbers = #tpu.dot_dimension_numbers<[1], [0], [0], [1], [0, 0, 1, 1], [], []>} : vector<512x8xbf16>, vector<8x16xbf16>, vector<512x16xf32> -> vector<512x16xf32>
    %25 = arith.addf %20, %24 : vector<512x16xf32>
    %c0_35 = arith.constant 0 : index
    %c0_36 = arith.constant 0 : index
    %c17_37 = arith.constant 17 : index
    %c0_38 = arith.constant 0 : index
    %26 = vector.load %arg7[%c0_35, %c0_36, %c17_37, %c0_38] : memref<2x18x48x8xbf16, #tpu.memory_space<vmem>>, vector<2x16x16x8xbf16>
    %27 = vector.shape_cast %26 : vector<2x16x16x8xbf16> to vector<512x8xbf16>
    %c16_39 = arith.constant 16 : index
    %c0_40 = arith.constant 0 : index
    %28 = vector.load %arg4[%c16_39, %c0_40] : memref<72x16xbf16, #tpu.memory_space<vmem>>, vector<8x16xbf16>
    %cst_41 = arith.constant dense<0.000000e+00> : vector<512x16xf32>
    %29 = tpu.matmul %27, %28, %cst_41 {dimension_numbers = #tpu.dot_dimension_numbers<[1], [0], [0], [1], [0, 0, 1, 1], [], []>} : vector<512x8xbf16>, vector<8x16xbf16>, vector<512x16xf32> -> vector<512x16xf32>
    %30 = arith.addf %25, %29 : vector<512x16xf32>
    %c0_42 = arith.constant 0 : index
    %c1_43 = arith.constant 1 : index
    %c15_44 = arith.constant 15 : index
    %c0_45 = arith.constant 0 : index
    %31 = vector.load %arg7[%c0_42, %c1_43, %c15_44, %c0_45] : memref<2x18x48x8xbf16, #tpu.memory_space<vmem>>, vector<2x16x16x8xbf16>
    %32 = vector.shape_cast %31 : vector<2x16x16x8xbf16> to vector<512x8xbf16>
    %c24 = arith.constant 24 : index
    %c0_46 = arith.constant 0 : index
    %33 = vector.load %arg4[%c24, %c0_46] : memref<72x16xbf16, #tpu.memory_space<vmem>>, vector<8x16xbf16>
    %cst_47 = arith.constant dense<0.000000e+00> : vector<512x16xf32>
    %34 = tpu.matmul %32, %33, %cst_47 {dimension_numbers = #tpu.dot_dimension_numbers<[1], [0], [0], [1], [0, 0, 1, 1], [], []>} : vector<512x8xbf16>, vector<8x16xbf16>, vector<512x16xf32> -> vector<512x16xf32>
    %35 = arith.addf %30, %34 : vector<512x16xf32>
    %c0_48 = arith.constant 0 : index
    %c1_49 = arith.constant 1 : index
    %c16_50 = arith.constant 16 : index
    %c0_51 = arith.constant 0 : index
    %36 = vector.load %arg7[%c0_48, %c1_49, %c16_50, %c0_51] : memref<2x18x48x8xbf16, #tpu.memory_space<vmem>>, vector<2x16x16x8xbf16>
    %37 = vector.shape_cast %36 : vector<2x16x16x8xbf16> to vector<512x8xbf16>
    %c32_52 = arith.constant 32 : index
    %c0_53 = arith.constant 0 : index
    %38 = vector.load %arg4[%c32_52, %c0_53] : memref<72x16xbf16, #tpu.memory_space<vmem>>, vector<8x16xbf16>
    %cst_54 = arith.constant dense<0.000000e+00> : vector<512x16xf32>
    %39 = tpu.matmul %37, %38, %cst_54 {dimension_numbers = #tpu.dot_dimension_numbers<[1], [0], [0], [1], [0, 0, 1, 1], [], []>} : vector<512x8xbf16>, vector<8x16xbf16>, vector<512x16xf32> -> vector<512x16xf32>
    %40 = arith.addf %35, %39 : vector<512x16xf32>
    %c0_55 = arith.constant 0 : index
    %c1_56 = arith.constant 1 : index
    %c17_57 = arith.constant 17 : index
    %c0_58 = arith.constant 0 : index
    %41 = vector.load %arg7[%c0_55, %c1_56, %c17_57, %c0_58] : memref<2x18x48x8xbf16, #tpu.memory_space<vmem>>, vector<2x16x16x8xbf16>
    %42 = vector.shape_cast %41 : vector<2x16x16x8xbf16> to vector<512x8xbf16>
    %c40 = arith.constant 40 : index
    %c0_59 = arith.constant 0 : index
    %43 = vector.load %arg4[%c40, %c0_59] : memref<72x16xbf16, #tpu.memory_space<vmem>>, vector<8x16xbf16>
    %cst_60 = arith.constant dense<0.000000e+00> : vector<512x16xf32>
    %44 = tpu.matmul %42, %43, %cst_60 {dimension_numbers = #tpu.dot_dimension_numbers<[1], [0], [0], [1], [0, 0, 1, 1], [], []>} : vector<512x8xbf16>, vector<8x16xbf16>, vector<512x16xf32> -> vector<512x16xf32>
    %45 = arith.addf %40, %44 : vector<512x16xf32>
    %c0_61 = arith.constant 0 : index
    %c2 = arith.constant 2 : index
    %c15_62 = arith.constant 15 : index
    %c0_63 = arith.constant 0 : index
    %46 = vector.load %arg7[%c0_61, %c2, %c15_62, %c0_63] : memref<2x18x48x8xbf16, #tpu.memory_space<vmem>>, vector<2x16x16x8xbf16>
    %47 = vector.shape_cast %46 : vector<2x16x16x8xbf16> to vector<512x8xbf16>
    %c48 = arith.constant 48 : index
    %c0_64 = arith.constant 0 : index
    %48 = vector.load %arg4[%c48, %c0_64] : memref<72x16xbf16, #tpu.memory_space<vmem>>, vector<8x16xbf16>
    %cst_65 = arith.constant dense<0.000000e+00> : vector<512x16xf32>
    %49 = tpu.matmul %47, %48, %cst_65 {dimension_numbers = #tpu.dot_dimension_numbers<[1], [0], [0], [1], [0, 0, 1, 1], [], []>} : vector<512x8xbf16>, vector<8x16xbf16>, vector<512x16xf32> -> vector<512x16xf32>
    %50 = arith.addf %45, %49 : vector<512x16xf32>
    %c0_66 = arith.constant 0 : index
    %c2_67 = arith.constant 2 : index
    %c16_68 = arith.constant 16 : index
    %c0_69 = arith.constant 0 : index
    %51 = vector.load %arg7[%c0_66, %c2_67, %c16_68, %c0_69] : memref<2x18x48x8xbf16, #tpu.memory_space<vmem>>, vector<2x16x16x8xbf16>
    %52 = vector.shape_cast %51 : vector<2x16x16x8xbf16> to vector<512x8xbf16>
    %c56 = arith.constant 56 : index
    %c0_70 = arith.constant 0 : index
    %53 = vector.load %arg4[%c56, %c0_70] : memref<72x16xbf16, #tpu.memory_space<vmem>>, vector<8x16xbf16>
    %cst_71 = arith.constant dense<0.000000e+00> : vector<512x16xf32>
    %54 = tpu.matmul %52, %53, %cst_71 {dimension_numbers = #tpu.dot_dimension_numbers<[1], [0], [0], [1], [0, 0, 1, 1], [], []>} : vector<512x8xbf16>, vector<8x16xbf16>, vector<512x16xf32> -> vector<512x16xf32>
    %55 = arith.addf %50, %54 : vector<512x16xf32>
    %c0_72 = arith.constant 0 : index
    %c2_73 = arith.constant 2 : index
    %c17_74 = arith.constant 17 : index
    %c0_75 = arith.constant 0 : index
    %56 = vector.load %arg7[%c0_72, %c2_73, %c17_74, %c0_75] : memref<2x18x48x8xbf16, #tpu.memory_space<vmem>>, vector<2x16x16x8xbf16>
    %57 = vector.shape_cast %56 : vector<2x16x16x8xbf16> to vector<512x8xbf16>
    %c64 = arith.constant 64 : index
    %c0_76 = arith.constant 0 : index
    %58 = vector.load %arg4[%c64, %c0_76] : memref<72x16xbf16, #tpu.memory_space<vmem>>, vector<8x16xbf16>
    %cst_77 = arith.constant dense<0.000000e+00> : vector<512x16xf32>
    %59 = tpu.matmul %57, %58, %cst_77 {dimension_numbers = #tpu.dot_dimension_numbers<[1], [0], [0], [1], [0, 0, 1, 1], [], []>} : vector<512x8xbf16>, vector<8x16xbf16>, vector<512x16xf32> -> vector<512x16xf32>
    %60 = arith.addf %55, %59 : vector<512x16xf32>
    %c0_78 = arith.constant 0 : index
    %c0_79 = arith.constant 0 : index
    %61 = vector.load %arg5[%c0_78, %c0_79] : memref<1x16xf32, #tpu.memory_space<vmem>>, vector<1x16xf32>
    %62 = vector.broadcast %61 : vector<1x16xf32> to vector<512x16xf32>
    %63 = arith.addf %60, %62 : vector<512x16xf32>
    %cst_80 = arith.constant 0.000000e+00 : f32
    %64 = vector.broadcast %cst_80 : f32 to vector<512x16xf32>
    %65 = arith.maximumf %63, %64 : vector<512x16xf32>
    %c0_81 = arith.constant 0 : index
    %c0_82 = arith.constant 0 : index
    %66 = vector.load %arg6[%c0_81, %c0_82] : memref<512x16xf32, #tpu.memory_space<vmem>>, vector<512x16xf32>
    tpu.vector_store %arg6[%c0_81, %c0_82], %65 {strides = array<i32>} : memref<512x16xf32, #tpu.memory_space<vmem>>, vector<512x16xf32>,
    return
  }
  func.func @transform_0(%arg0: i32) -> (i32, i32) {
    %c0_i32 = arith.constant 0 : i32
    %c0_i32_0 = arith.constant 0 : i32
    return %arg0, %c0_i32 : i32, i32
  }
  func.func @transform_1(%arg0: i32) -> (i32, i32) {
    %c0_i32 = arith.constant 0 : i32
    %c0_i32_0 = arith.constant 0 : i32
    %c0_i32_1 = arith.constant 0 : i32
    return %c0_i32, %c0_i32_0 : i32, i32
  }
  func.func @transform_2(%arg0: i32) -> (i32, i32) {
    %c0_i32 = arith.constant 0 : i32
    %c0_i32_0 = arith.constant 0 : i32
    %c0_i32_1 = arith.constant 0 : i32
    return %c0_i32, %c0_i32_0 : i32, i32
  }
  func.func @transform_3(%arg0: i32) -> (i32, i32) {
    %c0_i32 = arith.constant 0 : i32
    %c0_i32_0 = arith.constant 0 : i32
    %c0_i32_1 = arith.constant 0 : i32
    return %c0_i32, %c0_i32_0 : i32, i32
  }
  func.func @transform_4(%arg0: i32) -> (i32, i32) {
    %c0_i32 = arith.constant 0 : i32
    %c0_i32_0 = arith.constant 0 : i32
    %c0_i32_1 = arith.constant 0 : i32
    return %c0_i32, %c0_i32_0 : i32, i32
  }
  func.func @transform_5(%arg0: i32) -> (i32, i32) {
    %c0_i32 = arith.constant 0 : i32
    %c0_i32_0 = arith.constant 0 : i32
    return %arg0, %c0_i32 : i32, i32
  }
}

</mosaic_0001>

<bundles_post_ra>
// kernel: tpu_custom_call.1
= control target key start
LH: loop header
LB: loop body
LE: loop exit
PB: predicated region body
PF: predicated region fallthrough
CT: control target
= control target key end

     0   :  { %10 = vsyncpa [#allocation4], 0  ;;  %s11496_s0 = inlined_call_operand.hbm [shape: bf16[512,4], index: 0, kind: input, shape index: {}]   ;;  %s11497_s1 = inlined_call_operand.hbm [shape: bf16[4,8], index: 1, kind: input, shape index: {}]   ;;  %s11498_s2 = inlined_call_operand.hbm [shape: f32[1,8], index: 2, kind: input, shape index: {}]   ;;  %s11499_s3 = inlined_call_operand.hbm [shape: bf16[72,16], index: 3, kind: input, shape index: {}]   ;;  %s11500_s4 = inlined_call_operand.hbm [shape: f32[1,16], index: 4, kind: input, shape index: {}]   ;;  %s11501_s5 = inlined_call_operand.hbm [shape: f32[512,16], index: 5, kind: output, shape index: {}]  }
   0x1   :  { %11 = vsyncpa [#allocation7], 0 }
   0x2   :  { %12 = vsyncpa [#allocation10], 0 }
   0x3   :  { %13 = vsyncpa [#allocation5], 0  ;;  %s9757_s18 = smov [#allocation6]   ;;  %s9617_s22 = scalar_lea.hbm %s11497_s1, 32 }
   0x4   :  { %s32_s19 = sshll.u32 %s9757_s18, 4  ;;  %p9618_p0 = scmp.ne.s32.totalorder %s11497_s1, %s9617_s22  ;;  %s33_s19 = int_to_ptr.vmem [resolvable:$true] %s32_s19 }
   0x5   :  { %p9621_p1 = scmp.lt.u32.totalorder %s9617_s22, %s11497_s1 }
   0x7   :  { %p9623_p2 = pnand %p9621_p1, %p9618_p0 }
   0x9   :  { %9626 = shalt.err (!%p9623_p2)
}
   0xa   :  { %s9627_s27 = scalar_lea.vmem %s33_s19, 32  ;;  %p9632_p4 = scmp.lt.s32.totalorder %s33_s19, %s33_s19 }
   0xb   :  { %p9628_p3 = scmp.ne.s32.totalorder %s33_s19, %s9627_s27  ;;  %p9633_p5 = scmp.lt.s32.totalorder %s9627_s27, %s9627_s27 }
   0xd   :  { %p9634_p6 = por %p9633_p5, %p9632_p4 }
   0xf   :  { %p9635_p7 = pnand %p9634_p6, %p9628_p3 }
  0x11   :  { %9638 = shalt.err (!%p9635_p7)
}
  0x12   :  { %35 = dma.hbm_to_vmem [thread:$0]  %s11497_s1, 32, %s33_s19, [#allocation7]  }
  0x13   :  { %s9758_s30 = smov [#allocation9]   ;;  %s9759_s7 = smov [#allocation3]  }
  0x14   :  { %s51_s6 = sshll.u32 %s9758_s30, 4  ;;  %s19_s8 = sshll.u32 %s9759_s7, 4  ;;  %s52_s6 = int_to_ptr.vmem [resolvable:$true] %s51_s6  ;;  %s20_s8 = int_to_ptr.vmem [resolvable:$true] %s19_s8 }
  0x15   :  { %s9639_s11 = scalar_lea.hbm %s11499_s3, 576 }
  0x16   :  { %p9640_p8 = scmp.ne.s32.totalorder %s11499_s3, %s9639_s11  ;;  %p9643_p9 = scmp.lt.u32.totalorder %s9639_s11, %s11499_s3 }
  0x18   :  { %p9645_p10 = pnand %p9643_p9, %p9640_p8 }
  0x1a   :  { %9648 = shalt.err (!%p9645_p10)
}
  0x1b   :  { %s9649_s1 = scalar_lea.vmem %s52_s6, 576  ;;  %p9654_p12 = scmp.lt.s32.totalorder %s52_s6, %s52_s6 }
  0x1c   :  { %p9650_p11 = scmp.ne.s32.totalorder %s52_s6, %s9649_s1  ;;  %p9655_p13 = scmp.lt.s32.totalorder %s9649_s1, %s9649_s1 }
  0x1e   :  { %p9656_p0 = por %p9655_p13, %p9654_p12 }
  0x20   :  { %p9657_p1 = pnand %p9656_p0, %p9650_p11 }
  0x22   :  { %9660 = shalt.err (!%p9657_p1)
}
  0x23   :  { %s9760_s16 = smov 64   ;;  %s9761_s17 = smov 4  }
  0x24   :  { %57 = dma.hbm_to_vmem [thread:$0]  %s11499_s3, 576, %s52_s6, [#allocation10], %s9760_s16, %s9760_s16, %s9761_s17  }
  0x25   :  { %s9661_s22 = scalar_lea.hbm %s11496_s0, 4096 }
  0x26   :  { %p9662_p2 = scmp.ne.s32.totalorder %s11496_s0, %s9661_s22  ;;  %p9665_p3 = scmp.lt.u32.totalorder %s9661_s22, %s11496_s0 }
  0x28   :  { %p9667_p4 = pnand %p9665_p3, %p9662_p2 }
  0x2a   :  { %9670 = shalt.err (!%p9667_p4)
}
  0x2b   :  { %s9671_s27 = scalar_lea.vmem %s20_s8, 4096  ;;  %p9676_p6 = scmp.lt.s32.totalorder %s20_s8, %s20_s8 }
  0x2c   :  { %p9672_p5 = scmp.ne.s32.totalorder %s20_s8, %s9671_s27  ;;  %p9677_p7 = scmp.lt.s32.totalorder %s9671_s27, %s9671_s27 }
  0x2e   :  { %p9678_p8 = por %p9677_p7, %p9676_p6 }
  0x30   :  { %p9679_p9 = pnand %p9678_p8, %p9672_p5 }
  0x32   :  { %9682 = shalt.err (!%p9679_p9)
}
  0x33   :  { %25 = dma.hbm_to_vmem [thread:$0]  %s11496_s0, 4096, %s20_s8, [#allocation4], %s9760_s16, %s9760_s16, %s9761_s17  }
  0x34   :  { %s9762_s29 = smov [#allocation8]   ;;  %s9763_s6 = smov [#allocation11]  }
  0x35   :  { %s42_s30 = sshll.u32 %s9762_s29, 4  ;;  %s64_s7 = sshll.u32 %s9763_s6, 4  ;;  %s43_s30 = int_to_ptr.vmem [resolvable:$true] %s42_s30  ;;  %s65_s7 = int_to_ptr.vmem [resolvable:$true] %s64_s7 }
  0x36   :  { %s9683_s11 = scalar_lea.hbm %s11498_s2, 16 }
  0x37   :  { %p9684_p10 = scmp.ne.s32.totalorder %s11498_s2, %s9683_s11  ;;  %p9687_p11 = scmp.lt.u32.totalorder %s9683_s11, %s11498_s2 }
  0x39   :  { %p9689_p12 = pnand %p9687_p11, %p9684_p10 }
  0x3b   :  { %9692 = shalt.err (!%p9689_p12)
}
  0x3c   :  { %s9693_s0 = scalar_lea.vmem %s43_s30, 16  ;;  %s9697_s8 = scalar_lea.vmem %s43_s30, 32 }
  0x3d   :  { %p9694_p13 = scmp.ne.s32.totalorder %s43_s30, %s9693_s0  ;;  %p9698_p0 = scmp.lt.s32.totalorder %s43_s30, %s43_s30 }
  0x3e   :  { %p9699_p1 = scmp.lt.s32.totalorder %s9697_s8, %s9693_s0 }
  0x40   :  { %p9700_p2 = por %p9699_p1, %p9698_p0 }
  0x42   :  { %p9701_p3 = pnand %p9700_p2, %p9694_p13 }
  0x44   :  { %9704 = shalt.err (!%p9701_p3)
}
  0x45   :  { %45 = dma.hbm_to_vmem [thread:$0]  %s11498_s2, 16, %s43_s30, [#allocation7]  }
  0x46   :  { %s9705_s19 = scalar_lea.hbm %s11500_s4, 16 }
  0x47   :  { %p9706_p4 = scmp.ne.s32.totalorder %s11500_s4, %s9705_s19  ;;  %p9709_p5 = scmp.lt.u32.totalorder %s9705_s19, %s11500_s4 }
  0x49   :  { %p9711_p6 = pnand %p9709_p5, %p9706_p4 }
  0x4b   :  { %9714 = shalt.err (!%p9711_p6)
}
  0x4c   :  { %s9715_s24 = scalar_lea.vmem %s65_s7, 16  ;;  %s9719_s25 = scalar_lea.vmem %s65_s7, 32 }
  0x4d   :  { %p9716_p7 = scmp.ne.s32.totalorder %s65_s7, %s9715_s24  ;;  %p9720_p8 = scmp.lt.s32.totalorder %s65_s7, %s65_s7 }
  0x4e   :  { %p9721_p9 = scmp.lt.s32.totalorder %s9719_s25, %s9715_s24 }
  0x50   :  { %p9722_p10 = por %p9721_p9, %p9720_p8 }
  0x52   :  { %p9723_p11 = pnand %p9722_p10, %p9716_p7 }
  0x54   :  { %9726 = shalt.err (!%p9723_p11)
}
  0x55   :  { %67 = dma.hbm_to_vmem [thread:$0]  %s11500_s4, 16, %s65_s7, [#allocation10]  }
  0x56   :  { %9749 = dma.done.wait [#allocation4], 4096  }
  0x57   :  { %9750 = vsyncadd [#allocation4], 4294963200 }
  0x58   :  { %9751 = dma.done.wait [#allocation7], 48  }
  0x59   :  { %9752 = vsyncadd [#allocation7], 4294967248 }
  0x5a   :  { %9753 = dma.done.wait [#allocation10], 592  }
  0x5b   :  { %9754 = vsyncadd [#allocation10], 4294966704  ;;  %vm501_vm0 = vcmask 1041408   ;;  %vm404_vm1 = vcmask 31744   ;;  %v236_v0 = vld [vmem:[#allocation6] sm:$0x3] }
  0x5c   :  { %9543 = vmatprep.subr.msk.bf16.mxu0 %vm501_vm0, %v236_v0  ;;  %v503_v1 = vsel %vm501_vm0, %v236_v0, 0  ;;  %v9564_v2 = vld [vmem:[#allocation3] sm:$0xff]   ;;  %v9565_v3 = vld [vmem:[#allocation3 + $0x8] sm:$0xff]   ;;  %v9566_v4 = vld [vmem:[#allocation3 + $0x10] sm:$0xff]   ;;  %vm84_vm2 = vcmask 64512   ;;  %v9764_v28 = vmov 0  }
  0x5d   :  { %8372 = vmatpush3.bf16.msra.mxu0 %v503_v1  ;;  %8373 = vmatprep.mubr.msk.bf16.mxu0 %vm404_vm1, %v9564_v2  ;;  %v9567_v5 = vld [vmem:[#allocation3 + $0x18] sm:$0xff]   ;;  %v9568_v6 = vld [vmem:[#allocation3 + $0x20] sm:$0xff]   ;;  %v9569_v7 = vld [vmem:[#allocation3 + $0x28] sm:$0xff]   ;;  %86 = vst.msk [vmem:[#allocation2 + $0x8] sm:$0xff] %vm84_vm2, %v9764_v28  ;;  %vm135_vm3 = vcmask 57344   ;;  %vm98_vm4 = vcmask 64519  }
  0x5e   :  { %v9570_v8 = vld [vmem:[#allocation3 + $0x30] sm:$0xff]   ;;  %v9571_v9 = vld [vmem:[#allocation3 + $0x38] sm:$0xff]   ;;  %v9572_v10 = vld [vmem:[#allocation3 + $0x40] sm:$0xff]   ;;  %85 = vst.msk [vmem:[#allocation2] sm:$0xff] %vm84_vm2, %v9764_v28  ;;  %vm1438_vm5 = vcmask 1043456   ;;  %vm7603_vm8 = vcmask 130048  }
  0x5f   :  { %v9573_v11 = vld [vmem:[#allocation3 + $0x48] sm:$0xff]   ;;  %v9574_v12 = vld [vmem:[#allocation3 + $0x50] sm:$0xff]   ;;  %v9575_v13 = vld [vmem:[#allocation3 + $0x58] sm:$0xff]   ;;  %87 = vst.msk [vmem:[#allocation2 + $0x10] sm:$0xff] %vm84_vm2, %v9764_v28  ;;  %vm987_vm6 = vsmask.f32 256 }
  0x60   :  { %8374 = vmatmul.mubr.msk.bf16.vlgmr.msra.gmra.mrb[0].mxu0 %vm404_vm1, %v9565_v3  ;;  %v9576_v14 = vld [vmem:[#allocation3 + $0x60] sm:$0xff]   ;;  %v9577_v15 = vld [vmem:[#allocation3 + $0x68] sm:$0xff]   ;;  %v9578_v16 = vld [vmem:[#allocation3 + $0x70] sm:$0xff]   ;;  %88 = vst.msk [vmem:[#allocation2 + $0x1b0] sm:$0xff] %vm84_vm2, %v9764_v28  ;;  %vm2183_vm7 = vsmask.f32 7424 }
  0x61   :  { %8377 = vmatprep.mubr.msk.bf16.mxu0 %vm404_vm1, %v9566_v4  ;;  %v9579_v17 = vld [vmem:[#allocation3 + $0x78] sm:$0xff]   ;;  %v9580_v18 = vld [vmem:[#allocation3 + $0x80] sm:$0xff]   ;;  %v9581_v19 = vld [vmem:[#allocation3 + $0x88] sm:$0xff]   ;;  %89 = vst.msk [vmem:[#allocation2 + $0x1b8] sm:$0xff] %vm84_vm2, %v9764_v28  ;;  %s9765_s4 = smov [#allocation12]  }
  0x62   :  { %v9582_v20 = vld [vmem:[#allocation3 + $0x90] sm:$0xff]   ;;  %v9583_v21 = vld [vmem:[#allocation3 + $0x98] sm:$0xff]   ;;  %v9584_v22 = vld [vmem:[#allocation3 + $0xa0] sm:$0xff]   ;;  %90 = vst.msk [vmem:[#allocation2 + $0x1c0] sm:$0xff] %vm84_vm2, %v9764_v28  ;;  %s7673_s27 = sshll.u32 %s9765_s4, 4  ;;  %s7674_s27 = int_to_ptr.vmem [resolvable:$true] %s7673_s27 }
  0x63   :  { %v9585_v23 = vld [vmem:[#allocation3 + $0xa8] sm:$0xff]   ;;  %v9586_v24 = vld [vmem:[#allocation3 + $0xb0] sm:$0xff]   ;;  %v9587_v25 = vld [vmem:[#allocation3 + $0xb8] sm:$0xff]   ;;  %92 = vst.msk [vmem:[#allocation2 + $0x198] sm:$0xff] %vm84_vm2, %v9764_v28  ;;  %s9727_s3 = scalar_lea.vmem %s7674_s27, 8192  ;;  %p9732_p13 = scmp.lt.s32.totalorder %s7674_s27, %s7674_s27 }
  0x64   :  { %v9588_v26 = vld [vmem:[#allocation3 + $0xc0] sm:$0xff]   ;;  %v9883_v27 = vld [vmem:[#allocation3 + $0xc8] sm:$0xff]   ;;  %93 = vst.msk [vmem:[#allocation2 + $0x1a0] sm:$0xff] %vm84_vm2, %v9764_v28  ;;  %94 = vst.msk [vmem:[#allocation2 + $0x1a8] sm:$0xff] %vm84_vm2, %v9764_v28  ;;  %p9728_p12 = scmp.ne.s32.totalorder %s7674_s27, %s9727_s3  ;;  %p9733_p0 = scmp.lt.s32.totalorder %s9727_s3, %s9727_s3 }
  0x65   :  { %95 = vst.msk [vmem:[#allocation2 + $0x348] sm:$0xff] %vm84_vm2, %v9764_v28  ;;  %96 = vst.msk [vmem:[#allocation2 + $0x350] sm:$0xff] %vm84_vm2, %v9764_v28  ;;  %v9909_v29 = vld [vmem:[#allocation3 + $0xd0] sm:$0xff]   ;;  %v1373_v30 = vld [vmem:[#allocation9 + $0x4] sm:$0xf] }
  0x66   :  { %97 = vst.msk [vmem:[#allocation2 + $0x358] sm:$0xff] %vm84_vm2, %v9764_v28  ;;  %9544 = vmatprep.subr.msk.bf16.mxu0 %vm1438_vm5, %v1373_v30  ;;  %v3922_v31 = vld [vmem:[#allocation9 + $0x10] sm:$0xf]  ;;  %v1440_v32 = vsel %vm1438_vm5, %v1373_v30, 0  ;;  %v9591_v34 = vld [vmem:[#allocation3 + $0xd8] sm:$0xff]   ;;  %v9592_v35 = vld [vmem:[#allocation3 + $0xe0] sm:$0xff]   ;;  %p9734_p1 = por %p9733_p0, %p9732_p13 }
  0x67   :  { %137 = vst.msk [vmem:[#allocation2 + $0x28] sm:$0x1] %vm135_vm3, %v9764_v28  ;;  %136 = vst.msk [vmem:[#allocation2 + $0x10] sm:$0x1] %vm135_vm3, %v9764_v28  ;;  %9548 = vmatprep.subr.msk.bf16.mxu1 %vm1438_vm5, %v3922_v31  ;;  %8438 = vmatpush3.bf16.msra.mxu0 %v1440_v32  ;;  %v3988_v33 = vsel %vm1438_vm5, %v3922_v31, 0  ;;  %v9593_v36 = vld [vmem:[#allocation3 + $0xe8] sm:$0xff]  }
  0x68   :  { %8378 = vmatmul.mubr.msk.bf16.gmra.mrb[4].mxu0 %vm404_vm1, %v9567_v5  ;;  %138 = vst.msk [vmem:[#allocation2 + $0x40] sm:$0x1] %vm135_vm3, %v9764_v28  ;;  %139 = vst.msk [vmem:[#allocation2 + $0x58] sm:$0x1] %vm135_vm3, %v9764_v28  ;;  %8702 = vmatpush3.bf16.msra.mxu1 %v3988_v33  ;;  %v4791_v37 = vld [vmem:[#allocation9 + $0x14] sm:$0xf]  ;;  %p9735_p2 = pnand %p9734_p1, %p9728_p12 }
  0x69   :  { %8381 = vmatprep.mubr.msk.bf16.mxu0 %vm404_vm1, %v9568_v6  ;;  %140 = vst.msk [vmem:[#allocation2 + $0x70] sm:$0x1] %vm135_vm3, %v9764_v28  ;;  %141 = vst.msk [vmem:[#allocation2 + $0x88] sm:$0x1] %vm135_vm3, %v9764_v28  ;;  %v9594_v38 = vld [vmem:[#allocation3 + $0xf0] sm:$0xff]   ;;  %9549 = vmatprep.subr.msk.bf16.mxu1 %vm1438_vm5, %v4791_v37  ;;  %v9595_v39 = vld [vmem:[#allocation3 + $0xf8] sm:$0xff]  }
  0x6a   :  { %142 = vst.msk [vmem:[#allocation2 + $0xa0] sm:$0x1] %vm135_vm3, %v9764_v28  ;;  %143 = vst.msk [vmem:[#allocation2 + $0xb8] sm:$0x1] %vm135_vm3, %v9764_v28  ;;  %v10068_v40 = vld [vmem:[#allocation2 + $0x8] sm:$0xff] }
  0x6b   :  { %144 = vst.msk [vmem:[#allocation2 + $0xd0] sm:$0x1] %vm135_vm3, %v9764_v28  ;;  %145 = vst.msk [vmem:[#allocation2 + $0xe8] sm:$0x1] %vm135_vm3, %v9764_v28  ;;  %v10073_v41 = vld [vmem:[#allocation8] ss:$0 sm:$0xff] }
  0x6c   :  { %146 = vst.msk [vmem:[#allocation2 + $0x100] sm:$0x1] %vm135_vm3, %v9764_v28  ;;  %147 = vst.msk [vmem:[#allocation2 + $0x118] sm:$0x1] %vm135_vm3, %v9764_v28  ;;  %v1372_v4 = vld [vmem:[#allocation9] sm:$0xf] }
  0x6d   :  { %148 = vst.msk [vmem:[#allocation2 + $0x130] sm:$0x1] %vm135_vm3, %v9764_v28  ;;  %149 = vst.msk [vmem:[#allocation2 + $0x148] sm:$0x1] %vm135_vm3, %v9764_v28  ;;  %9545 = vmatprep.subr.msk.bf16.mxu0 %vm1438_vm5, %v1372_v4 }
  0x6e   :  { %150 = vst.msk [vmem:[#allocation2 + $0x160] sm:$0x1] %vm135_vm3, %v9764_v28  ;;  %151 = vst.msk [vmem:[#allocation2 + $0x178] sm:$0x1] %vm135_vm3, %v9764_v28 }
  0x6f   :  { %152 = vst.msk [vmem:[#allocation2 + $0x190] sm:$0x1] %vm135_vm3, %v9764_v28  ;;  %153 = vst.msk [vmem:[#allocation2 + $0x1a8] sm:$0x1] %vm135_vm3, %v9764_v28 }
  0x70   :  { %8382 = vmatmul.mubr.msk.bf16.gmra.mrb[8].mxu0 %vm404_vm1, %v9569_v7  ;;  %154 = vst.msk [vmem:[#allocation2 + $0x1c0] sm:$0x1] %vm135_vm3, %v9764_v28  ;;  %155 = vst.msk [vmem:[#allocation2 + $0x1d8] sm:$0x1] %vm135_vm3, %v9764_v28 }
  0x71   :  { %8385 = vmatprep.mubr.msk.bf16.mxu0 %vm404_vm1, %v9570_v8  ;;  %156 = vst.msk [vmem:[#allocation2 + $0x1f0] sm:$0x1] %vm135_vm3, %v9764_v28  ;;  %157 = vst.msk [vmem:[#allocation2 + $0x208] sm:$0x1] %vm135_vm3, %v9764_v28 }
  0x72   :  { %158 = vst.msk [vmem:[#allocation2 + $0x220] sm:$0x1] %vm135_vm3, %v9764_v28  ;;  %159 = vst.msk [vmem:[#allocation2 + $0x238] sm:$0x1] %vm135_vm3, %v9764_v28 }
  0x73   :  { %160 = vst.msk [vmem:[#allocation2 + $0x250] sm:$0x1] %vm135_vm3, %v9764_v28  ;;  %161 = vst.msk [vmem:[#allocation2 + $0x268] sm:$0x1] %vm135_vm3, %v9764_v28 }
  0x74   :  { %162 = vst.msk [vmem:[#allocation2 + $0x280] sm:$0x1] %vm135_vm3, %v9764_v28  ;;  %163 = vst.msk [vmem:[#allocation2 + $0x298] sm:$0x1] %vm135_vm3, %v9764_v28 }
  0x75   :  { %164 = vst.msk [vmem:[#allocation2 + $0x2b0] sm:$0x1] %vm135_vm3, %v9764_v28  ;;  %165 = vst.msk [vmem:[#allocation2 + $0x2c8] sm:$0x1] %vm135_vm3, %v9764_v28 }
  0x76   :  { %166 = vst.msk [vmem:[#allocation2 + $0x2e0] sm:$0x1] %vm135_vm3, %v9764_v28  ;;  %167 = vst.msk [vmem:[#allocation2 + $0x2f8] sm:$0x1] %vm135_vm3, %v9764_v28 }
  0x77   :  { %168 = vst.msk [vmem:[#allocation2 + $0x310] sm:$0x1] %vm135_vm3, %v9764_v28  ;;  %169 = vst.msk [vmem:[#allocation2 + $0x328] sm:$0x1] %vm135_vm3, %v9764_v28 }
  0x78   :  { %8386 = vmatmul.mubr.msk.bf16.gmra.mrb[12].mxu0 %vm404_vm1, %v9571_v9  ;;  %170 = vst.msk [vmem:[#allocation2 + $0x340] sm:$0x1] %vm135_vm3, %v9764_v28  ;;  %171 = vst.msk [vmem:[#allocation2 + $0x358] sm:$0x1] %vm135_vm3, %v9764_v28 }
  0x79   :  { %8389 = vmatprep.mubr.msk.bf16.mxu0 %vm404_vm1, %v9572_v10  ;;  %99 = vst.msk [vmem:[#allocation2] sm:$0x80] %vm98_vm4, %v9764_v28  ;;  %100 = vst.msk [vmem:[#allocation2 + $0x18] sm:$0x80] %vm98_vm4, %v9764_v28 }
  0x7a   :  { %101 = vst.msk [vmem:[#allocation2 + $0x30] sm:$0x80] %vm98_vm4, %v9764_v28  ;;  %102 = vst.msk [vmem:[#allocation2 + $0x48] sm:$0x80] %vm98_vm4, %v9764_v28 }
  0x7b   :  { %103 = vst.msk [vmem:[#allocation2 + $0x60] sm:$0x80] %vm98_vm4, %v9764_v28  ;;  %104 = vst.msk [vmem:[#allocation2 + $0x78] sm:$0x80] %vm98_vm4, %v9764_v28 }
  0x7c   :  { %105 = vst.msk [vmem:[#allocation2 + $0x90] sm:$0x80] %vm98_vm4, %v9764_v28  ;;  %106 = vst.msk [vmem:[#allocation2 + $0xa8] sm:$0x80] %vm98_vm4, %v9764_v28 }
  0x7d   :  { %107 = vst.msk [vmem:[#allocation2 + $0xc0] sm:$0x80] %vm98_vm4, %v9764_v28  ;;  %108 = vst.msk [vmem:[#allocation2 + $0xd8] sm:$0x80] %vm98_vm4, %v9764_v28 }
  0x7e   :  { %109 = vst.msk [vmem:[#allocation2 + $0xf0] sm:$0x80] %vm98_vm4, %v9764_v28  ;;  %110 = vst.msk [vmem:[#allocation2 + $0x108] sm:$0x80] %vm98_vm4, %v9764_v28 }
  0x7f   :  { %111 = vst.msk [vmem:[#allocation2 + $0x120] sm:$0x80] %vm98_vm4, %v9764_v28  ;;  %112 = vst.msk [vmem:[#allocation2 + $0x138] sm:$0x80] %vm98_vm4, %v9764_v28 }
  0x80   :  { %8390 = vmatmul.mubr.msk.bf16.gmra.mrb[16].mxu0 %vm404_vm1, %v9573_v11  ;;  %113 = vst.msk [vmem:[#allocation2 + $0x150] sm:$0x80] %vm98_vm4, %v9764_v28  ;;  %114 = vst.msk [vmem:[#allocation2 + $0x168] sm:$0x80] %vm98_vm4, %v9764_v28  ;;  %v4889_v11 = vsel %vm1438_vm5, %v4791_v37, 0 }
  0x81   :  { %8393 = vmatprep.mubr.msk.bf16.mxu0 %vm404_vm1, %v9574_v12  ;;  %115 = vst.msk [vmem:[#allocation2 + $0x180] sm:$0x80] %vm98_vm4, %v9764_v28  ;;  %116 = vst.msk [vmem:[#allocation2 + $0x198] sm:$0x80] %vm98_vm4, %v9764_v28  ;;  %v1828_v12 = vsel %vm1438_vm5, %v1372_v4, 0 }
  0x82   :  { %117 = vst.msk [vmem:[#allocation2 + $0x1b0] sm:$0x80] %vm98_vm4, %v9764_v28  ;;  %118 = vst.msk [vmem:[#allocation2 + $0x1c8] sm:$0x80] %vm98_vm4, %v9764_v28 }
  0x83   :  { %119 = vst.msk [vmem:[#allocation2 + $0x1e0] sm:$0x80] %vm98_vm4, %v9764_v28  ;;  %120 = vst.msk [vmem:[#allocation2 + $0x1f8] sm:$0x80] %vm98_vm4, %v9764_v28 }
  0x84   :  { %121 = vst.msk [vmem:[#allocation2 + $0x210] sm:$0x80] %vm98_vm4, %v9764_v28  ;;  %122 = vst.msk [vmem:[#allocation2 + $0x228] sm:$0x80] %vm98_vm4, %v9764_v28 }
  0x85   :  { %123 = vst.msk [vmem:[#allocation2 + $0x240] sm:$0x80] %vm98_vm4, %v9764_v28  ;;  %124 = vst.msk [vmem:[#allocation2 + $0x258] sm:$0x80] %vm98_vm4, %v9764_v28 }
  0x86   :  { %125 = vst.msk [vmem:[#allocation2 + $0x270] sm:$0x80] %vm98_vm4, %v9764_v28  ;;  %126 = vst.msk [vmem:[#allocation2 + $0x288] sm:$0x80] %vm98_vm4, %v9764_v28 }
  0x87   :  { %127 = vst.msk [vmem:[#allocation2 + $0x2a0] sm:$0x80] %vm98_vm4, %v9764_v28  ;;  %128 = vst.msk [vmem:[#allocation2 + $0x2b8] sm:$0x80] %vm98_vm4, %v9764_v28 }
  0x88   :  { %8394 = vmatmul.mubr.msk.bf16.gmra.mrb[20].mxu0 %vm404_vm1, %v9575_v13  ;;  %129 = vst.msk [vmem:[#allocation2 + $0x2d0] sm:$0x80] %vm98_vm4, %v9764_v28  ;;  %130 = vst.msk [vmem:[#allocation2 + $0x2e8] sm:$0x80] %vm98_vm4, %v9764_v28 }
  0x89   :  { %8397 = vmatprep.mubr.msk.bf16.mxu0 %vm404_vm1, %v9576_v14  ;;  %131 = vst.msk [vmem:[#allocation2 + $0x300] sm:$0x80] %vm98_vm4, %v9764_v28  ;;  %132 = vst.msk [vmem:[#allocation2 + $0x318] sm:$0x80] %vm98_vm4, %v9764_v28 }
  0x8a   :  { %133 = vst.msk [vmem:[#allocation2 + $0x330] sm:$0x80] %vm98_vm4, %v9764_v28  ;;  %134 = vst.msk [vmem:[#allocation2 + $0x348] sm:$0x80] %vm98_vm4, %v9764_v28 }
  0x90   :  { %8398 = vmatmul.mubr.msk.bf16.gmra.mrb[24].mxu0 %vm404_vm1, %v9577_v15 }
  0x91   :  { %8401 = vmatprep.mubr.msk.bf16.mxu0 %vm404_vm1, %v9578_v16  ;;  %v10100_v16 = vld [vmem:[#allocation9 + $0x18] sm:$0xf] }
  0x98   :  { %8402 = vmatmul.mubr.msk.bf16.gmra.mrb[28].mxu0 %vm404_vm1, %v9579_v17 }
  0x99   :  { %8405 = vmatprep.mubr.msk.bf16.mxu0 %vm404_vm1, %v9580_v18 }
  0xa0   :  { %8406 = vmatmul.mubr.msk.bf16.gmra.mrb[32].mxu0 %vm404_vm1, %v9581_v19 }
  0xa1   :  { %8409 = vmatprep.mubr.msk.bf16.mxu0 %vm404_vm1, %v9582_v20 }
  0xa8   :  { %8410 = vmatmul.mubr.msk.bf16.gmra.mrb[36].mxu0 %vm404_vm1, %v9583_v21 }
  0xa9   :  { %8413 = vmatprep.mubr.msk.bf16.mxu0 %vm404_vm1, %v9584_v22 }
  0xb0   :  { %8414 = vmatmul.mubr.msk.bf16.gmra.mrb[40].mxu0 %vm404_vm1, %v9585_v23 }
  0xb1   :  { %8417 = vmatprep.mubr.msk.bf16.mxu0 %vm404_vm1, %v9586_v24 }
  0xb8   :  { %8418 = vmatmul.mubr.msk.bf16.gmra.mrb[44].mxu0 %vm404_vm1, %v9587_v25 }
  0xb9   :  { %8421 = vmatprep.mubr.msk.bf16.mxu0 %vm404_vm1, %v9588_v26 }
  0xc0   :  { %8422 = vmatmul.mubr.msk.bf16.gmra.mrb[48].mxu0 %vm404_vm1, %v9883_v27 }
  0xc1   :  { %8425 = vmatprep.mubr.msk.bf16.mxu0 %vm404_vm1, %v9909_v29 }
  0xc8   :  { %8426 = vmatmul.mubr.msk.bf16.gmra.mrb[52].mxu0 %vm404_vm1, %v9591_v34 }
  0xc9   :  { %8429 = vmatprep.mubr.msk.bf16.mxu0 %vm404_vm1, %v9592_v35 }
  0xd0   :  { %8430 = vmatmul.mubr.msk.bf16.gmra.mrb[56].mxu0 %vm404_vm1, %v9593_v36 }
  0xd1   :  { %8433 = vmatprep.mubr.msk.bf16.mxu0 %vm404_vm1, %v9594_v38 }
  0xd8   :  { %8434 = vmatmul.mubr.msk.bf16.gmra.mrb[60].mxu0 %vm404_vm1, %v9595_v39 }
  0xd9   :  { %8439 = vmatprep.mubr.msk.bf16.mxu0 %vm84_vm2, %v10068_v40 }
 0x133   :  { %v8375_v42 = vpop.f32.mrb[0].mxu0 }
 0x134   :  { %v548_v43 = vadd.f32 %v8375_v42, %v10073_v41  ;;  %v539_v44 = vpop.f32.mrb[1].mxu0 }
 0x135   :  { %v540_v45 = vadd.f32 %v10073_v41, %v539_v44  ;;  %v8376_v46 = vpop.f32.mrb[2].mxu0 }
 0x136   :  { %v551_v47 = vadd.f32 %v8376_v46, %v10073_v41  ;;  %v542_v48 = vpop.f32.mrb[3].mxu0  ;;  %v796_v50 = vmax.f32 %v548_v43, 0.0 }
 0x137   :  { %v543_v49 = vadd.f32 %v10073_v41, %v542_v48  ;;  %v794_v52 = vmax.f32 %v540_v45, 0.0 }
 0x138   :  { %v797_v51 = vmax.f32 %v551_v47, 0.0 }
 0x139   :  { %v795_v53 = vmax.f32 %v543_v49, 0.0 }
 0x13a   :  { %v859_v54 = vpack.c.bf16 %v797_v51, %v796_v50 }
 0x13b   :  { %v858_v55 = vpack.c.bf16 %v795_v53, %v794_v52  ;;  %v8379_v56 = vpop.f32.mrb[4].mxu0 }
 0x13c   :  { %892 = vst.msk [vmem:[#allocation2 + $0x38] sm:$0xff] %vm84_vm2, %v859_v54  ;;  %v564_v57 = vadd.f32 %v8379_v56, %v10073_v41  ;;  %v555_v58 = vpop.f32.mrb[5].mxu0 }
 0x13d   :  { %891 = vst.msk [vmem:[#allocation2 + $0x20] sm:$0xff] %vm84_vm2, %v858_v55  ;;  %v556_v59 = vadd.f32 %v10073_v41, %v555_v58  ;;  %v8380_v60 = vpop.f32.mrb[6].mxu0 }
 0x13e   :  { %v567_v61 = vadd.f32 %v8380_v60, %v10073_v41  ;;  %v558_v62 = vpop.f32.mrb[7].mxu0  ;;  %v800_v0 = vmax.f32 %v564_v57, 0.0 }
 0x13f   :  { %v559_v63 = vadd.f32 %v10073_v41, %v558_v62  ;;  %v798_v2 = vmax.f32 %v556_v59, 0.0 }
 0x140   :  { %v801_v1 = vmax.f32 %v567_v61, 0.0 }
 0x141   :  { %v799_v3 = vmax.f32 %v559_v63, 0.0 }
 0x142   :  { %v861_v5 = vpack.c.bf16 %v801_v1, %v800_v0 }
 0x143   :  { %v860_v6 = vpack.c.bf16 %v799_v3, %v798_v2  ;;  %v8383_v7 = vpop.f32.mrb[8].mxu0  ;;  %v10098_v15 = vld [vmem:[#allocation2 + $0x38] sm:$0xff] }
 0x144   :  { %894 = vst.msk [vmem:[#allocation2 + $0x68] sm:$0xff] %vm84_vm2, %v861_v5  ;;  %v580_v8 = vadd.f32 %v8383_v7, %v10073_v41  ;;  %v571_v9 = vpop.f32.mrb[9].mxu0  ;;  %v10088_v10 = vld [vmem:[#allocation2 + $0x20] sm:$0xff]  ;;  %v10128_v38 = vld [vmem:[#allocation2 + $0x38] sm:$0xff] }
 0x145   :  { %893 = vst.msk [vmem:[#allocation2 + $0x50] sm:$0xff] %vm84_vm2, %v860_v6  ;;  %v572_v13 = vadd.f32 %v10073_v41, %v571_v9  ;;  %v8384_v14 = vpop.f32.mrb[10].mxu0  ;;  %8440 = vmatmul.mubr.msk.bf16.vlgmr.msra.gmra.mrb[64].mxu0 %vm84_vm2, %v10088_v10  ;;  %8703 = vmatprep.mubr.msk.bf16.mxu1 %vm84_vm2, %v10088_v10  ;;  %v4420_v46 = vshrl.u32 %v10128_v38, 16  ;;  %v4422_v61 = vshll.u32 %v10128_v38, 16 }
 0x146   :  { %v583_v17 = vadd.f32 %v8384_v14, %v10073_v41  ;;  %v574_v18 = vpop.f32.mrb[11].mxu0  ;;  %8443 = vmatprep.mubr.msk.bf16.mxu0 %vm84_vm2, %v10098_v15  ;;  %8704 = vmatmul.mubr.msk.bf16.vlgmr.msra.gmra.mrb[0].mxu1 %vm84_vm2, %v10098_v15  ;;  %v804_v20 = vmax.f32 %v580_v8, 0.0 }
 0x147   :  { %v575_v19 = vadd.f32 %v10073_v41, %v574_v18  ;;  %8768 = vmatpush3.bf16.msra.mxu1 %v4889_v11  ;;  %8504 = vmatpush3.bf16.msra.mxu0 %v1828_v12  ;;  %v802_v22 = vmax.f32 %v572_v13, 0.0  ;;  %v5316_v56 = vrot.slane %v4420_v46, 7 }
 0x148   :  { %v805_v21 = vmax.f32 %v583_v17, 0.0  ;;  %9550 = vmatprep.subr.msk.bf16.mxu1 %vm1438_vm5, %v10100_v16 }
 0x149   :  { %v803_v23 = vmax.f32 %v575_v19, 0.0  ;;  %v10154_v1 = vor.u32 %v5316_v56, %v4422_v61 }
 0x14a   :  { %v863_v24 = vpack.c.bf16 %v805_v21, %v804_v20 }
 0x14b   :  { %v862_v25 = vpack.c.bf16 %v803_v23, %v802_v22  ;;  %v8387_v26 = vpop.f32.mrb[12].mxu0  ;;  %v10120_v32 = vld [vmem:[#allocation2 + $0x68] sm:$0xff] }
 0x14c   :  { %896 = vst.msk [vmem:[#allocation2 + $0x98] sm:$0xff] %vm84_vm2, %v863_v24  ;;  %v596_v27 = vadd.f32 %v8387_v26, %v10073_v41  ;;  %v587_v28 = vpop.f32.mrb[13].mxu0  ;;  %v10112_v29 = vld [vmem:[#allocation2 + $0x50] sm:$0xff] }
 0x14d   :  { %895 = vst.msk [vmem:[#allocation2 + $0x80] sm:$0xff] %vm84_vm2, %v862_v25  ;;  %v588_v30 = vadd.f32 %v10073_v41, %v587_v28  ;;  %v8388_v31 = vpop.f32.mrb[14].mxu0  ;;  %8444 = vmatmul.mubr.msk.bf16.gmra.mrb[68].mxu0 %vm84_vm2, %v10112_v29  ;;  %8707 = vmatprep.mubr.msk.bf16.mxu1 %vm84_vm2, %v10112_v29  ;;  %v10210_v56 = vld [vmem:[#allocation2 + $0x50] sm:$0xff] }
 0x14e   :  { %v599_v33 = vadd.f32 %v8388_v31, %v10073_v41  ;;  %v590_v34 = vpop.f32.mrb[15].mxu0  ;;  %8447 = vmatprep.mubr.msk.bf16.mxu0 %vm84_vm2, %v10120_v32  ;;  %8708 = vmatmul.mubr.msk.bf16.gmra.mrb[4].mxu1 %vm84_vm2, %v10120_v32  ;;  %v808_v36 = vmax.f32 %v596_v27, 0.0 }
 0x14f   :  { %v591_v35 = vadd.f32 %v10073_v41, %v590_v34  ;;  %v806_v39 = vmax.f32 %v588_v30, 0.0 }
 0x150   :  { %v809_v37 = vmax.f32 %v599_v33, 0.0 }
 0x151   :  { %v807_v42 = vmax.f32 %v591_v35, 0.0 }
 0x152   :  { %v865_v43 = vpack.c.bf16 %v809_v37, %v808_v36 }
 0x153   :  { %v864_v44 = vpack.c.bf16 %v807_v42, %v806_v39  ;;  %v8391_v45 = vpop.f32.mrb[16].mxu0  ;;  %v10141_v52 = vld [vmem:[#allocation2 + $0x98] sm:$0xff] }
 0x154   :  { %898 = vst.msk [vmem:[#allocation2 + $0xc8] sm:$0xff] %vm84_vm2, %v865_v43  ;;  %v612_v47 = vadd.f32 %v8391_v45, %v10073_v41  ;;  %v603_v48 = vpop.f32.mrb[17].mxu0  ;;  %v10133_v49 = vld [vmem:[#allocation2 + $0x80] sm:$0xff] }
 0x155   :  { %897 = vst.msk [vmem:[#allocation2 + $0xb0] sm:$0xff] %vm84_vm2, %v864_v44  ;;  %v604_v50 = vadd.f32 %v10073_v41, %v603_v48  ;;  %v8392_v51 = vpop.f32.mrb[18].mxu0  ;;  %8448 = vmatmul.mubr.msk.bf16.gmra.mrb[72].mxu0 %vm84_vm2, %v10133_v49  ;;  %8711 = vmatprep.mubr.msk.bf16.mxu1 %vm84_vm2, %v10133_v49 }
 0x156   :  { %v615_v53 = vadd.f32 %v8392_v51, %v10073_v41  ;;  %v606_v54 = vpop.f32.mrb[19].mxu0  ;;  %8451 = vmatprep.mubr.msk.bf16.mxu0 %vm84_vm2, %v10141_v52  ;;  %8712 = vmatmul.mubr.msk.bf16.gmra.mrb[8].mxu1 %vm84_vm2, %v10141_v52  ;;  %v812_v57 = vmax.f32 %v612_v47, 0.0 }
 0x157   :  { %v607_v55 = vadd.f32 %v10073_v41, %v606_v54  ;;  %v810_v59 = vmax.f32 %v604_v50, 0.0 }
 0x158   :  { %v813_v58 = vmax.f32 %v615_v53, 0.0 }
 0x159   :  { %v811_v60 = vmax.f32 %v607_v55, 0.0 }
 0x15a   :  { %v867_v62 = vpack.c.bf16 %v813_v58, %v812_v57 }
 0x15b   :  { %v866_v63 = vpack.c.bf16 %v811_v60, %v810_v59  ;;  %v8395_v0 = vpop.f32.mrb[20].mxu0  ;;  %v10166_v7 = vld [vmem:[#allocation2 + $0xc8] sm:$0xff] }
 0x15c   :  { %900 = vst.msk [vmem:[#allocation2 + $0xf8] sm:$0xff] %vm84_vm2, %v867_v62  ;;  %v628_v2 = vadd.f32 %v8395_v0, %v10073_v41  ;;  %v619_v3 = vpop.f32.mrb[21].mxu0  ;;  %v10158_v4 = vld [vmem:[#allocation2 + $0xb0] sm:$0xff] }
 0x15d   :  { %899 = vst.msk [vmem:[#allocation2 + $0xe0] sm:$0xff] %vm84_vm2, %v866_v63  ;;  %v620_v5 = vadd.f32 %v10073_v41, %v619_v3  ;;  %v8396_v6 = vpop.f32.mrb[22].mxu0  ;;  %8452 = vmatmul.mubr.msk.bf16.gmra.mrb[76].mxu0 %vm84_vm2, %v10158_v4  ;;  %8715 = vmatprep.mubr.msk.bf16.mxu1 %vm84_vm2, %v10158_v4  ;;  %v4432_v63 = vshrl.u32 %v10210_v56, 16 }
 0x15e   :  { %v631_v8 = vadd.f32 %v8396_v6, %v10073_v41  ;;  %v622_v9 = vpop.f32.mrb[23].mxu0  ;;  %8455 = vmatprep.mubr.msk.bf16.mxu0 %vm84_vm2, %v10166_v7  ;;  %8716 = vmatmul.mubr.msk.bf16.gmra.mrb[12].mxu1 %vm84_vm2, %v10166_v7  ;;  %v816_v12 = vmax.f32 %v628_v2, 0.0 }
 0x15f   :  { %v623_v11 = vadd.f32 %v10073_v41, %v622_v9  ;;  %v814_v14 = vmax.f32 %v620_v5, 0.0 }
 0x160   :  { %v817_v13 = vmax.f32 %v631_v8, 0.0 }
 0x161   :  { %v815_v17 = vmax.f32 %v623_v11, 0.0 }
 0x162   :  { %v869_v18 = vpack.c.bf16 %v817_v13, %v816_v12  ;;  %v5328_v13 = vrot.slane %v4432_v63, 7 }
 0x163   :  { %v868_v19 = vpack.c.bf16 %v815_v17, %v814_v14  ;;  %v8399_v20 = vpop.f32.mrb[24].mxu0  ;;  %v10184_v26 = vld [vmem:[#allocation2 + $0xf8] sm:$0xff] }
 0x164   :  { %902 = vst.msk [vmem:[#allocation2 + $0x128] sm:$0xff] %vm84_vm2, %v869_v18  ;;  %v644_v21 = vadd.f32 %v8399_v20, %v10073_v41  ;;  %v635_v22 = vpop.f32.mrb[25].mxu0  ;;  %v10176_v23 = vld [vmem:[#allocation2 + $0xe0] sm:$0xff]  ;;  %v4434_v20 = vshll.u32 %v10210_v56, 16 }
 0x165   :  { %901 = vst.msk [vmem:[#allocation2 + $0x110] sm:$0xff] %vm84_vm2, %v868_v19  ;;  %v636_v24 = vadd.f32 %v10073_v41, %v635_v22  ;;  %v8400_v25 = vpop.f32.mrb[26].mxu0  ;;  %8456 = vmatmul.mubr.msk.bf16.gmra.mrb[80].mxu0 %vm84_vm2, %v10176_v23  ;;  %8719 = vmatprep.mubr.msk.bf16.mxu1 %vm84_vm2, %v10176_v23  ;;  %v4354_v56 = vld [vmem:[#allocation2 + $0xa0] sm:$0x1] }
 0x166   :  { %v647_v27 = vadd.f32 %v8400_v25, %v10073_v41  ;;  %v638_v28 = vpop.f32.mrb[27].mxu0  ;;  %8459 = vmatprep.mubr.msk.bf16.mxu0 %vm84_vm2, %v10184_v26  ;;  %8720 = vmatmul.mubr.msk.bf16.gmra.mrb[16].mxu1 %vm84_vm2, %v10184_v26  ;;  %v820_v31 = vmax.f32 %v644_v21, 0.0  ;;  %v10234_v25 = vld [vmem:[#allocation2 + $0x1b8] sm:$0xff] }
 0x167   :  { %v639_v30 = vadd.f32 %v10073_v41, %v638_v28  ;;  %v818_v34 = vmax.f32 %v636_v24, 0.0 }
 0x168   :  { %v821_v33 = vmax.f32 %v647_v27, 0.0  ;;  %v10238_v27 = vor.u32 %v5328_v13, %v4434_v20 }
 0x169   :  { %v819_v35 = vmax.f32 %v639_v30, 0.0 }
 0x16a   :  { %v871_v36 = vpack.c.bf16 %v821_v33, %v820_v31 }
 0x16b   :  { %v870_v37 = vpack.c.bf16 %v819_v35, %v818_v34  ;;  %v8403_v39 = vpop.f32.mrb[28].mxu0  ;;  %v10202_v48 = vld [vmem:[#allocation2 + $0x128] sm:$0xff] }
 0x16c   :  { %904 = vst.msk [vmem:[#allocation2 + $0x158] sm:$0xff] %vm84_vm2, %v871_v36  ;;  %v660_v42 = vadd.f32 %v8403_v39, %v10073_v41  ;;  %v651_v43 = vpop.f32.mrb[29].mxu0  ;;  %v10194_v44 = vld [vmem:[#allocation2 + $0x110] sm:$0xff] }
 0x16d   :  { %903 = vst.msk [vmem:[#allocation2 + $0x140] sm:$0xff] %vm84_vm2, %v870_v37  ;;  %v652_v45 = vadd.f32 %v10073_v41, %v651_v43  ;;  %v8404_v47 = vpop.f32.mrb[30].mxu0  ;;  %8460 = vmatmul.mubr.msk.bf16.gmra.mrb[84].mxu0 %vm84_vm2, %v10194_v44  ;;  %8723 = vmatprep.mubr.msk.bf16.mxu1 %vm84_vm2, %v10194_v44 }
 0x16e   :  { %v663_v50 = vadd.f32 %v8404_v47, %v10073_v41  ;;  %v654_v51 = vpop.f32.mrb[31].mxu0  ;;  %8463 = vmatprep.mubr.msk.bf16.mxu0 %vm84_vm2, %v10202_v48  ;;  %8724 = vmatmul.mubr.msk.bf16.gmra.mrb[20].mxu1 %vm84_vm2, %v10202_v48  ;;  %v824_v54 = vmax.f32 %v660_v42, 0.0 }
 0x16f   :  { %v655_v53 = vadd.f32 %v10073_v41, %v654_v51  ;;  %v822_v57 = vmax.f32 %v652_v45, 0.0 }
 0x170   :  { %v825_v55 = vmax.f32 %v663_v50, 0.0 }
 0x171   :  { %v823_v58 = vmax.f32 %v655_v53, 0.0 }
 0x172   :  { %v873_v59 = vpack.c.bf16 %v825_v55, %v824_v54 }
 0x173   :  { %v872_v60 = vpack.c.bf16 %v823_v58, %v822_v57  ;;  %v8407_v62 = vpop.f32.mrb[32].mxu0  ;;  %v10223_v8 = vld [vmem:[#allocation2 + $0x158] sm:$0xff] }
 0x174   :  { %906 = vst.msk [vmem:[#allocation2 + $0x188] sm:$0xff] %vm84_vm2, %v873_v59  ;;  %v676_v0 = vadd.f32 %v8407_v62, %v10073_v41  ;;  %v667_v2 = vpop.f32.mrb[33].mxu0  ;;  %v10215_v3 = vld [vmem:[#allocation2 + $0x140] sm:$0xff] }
 0x175   :  { %905 = vst.msk [vmem:[#allocation2 + $0x170] sm:$0xff] %vm84_vm2, %v872_v60  ;;  %v668_v5 = vadd.f32 %v10073_v41, %v667_v2  ;;  %v8408_v6 = vpop.f32.mrb[34].mxu0  ;;  %8464 = vmatmul.mubr.msk.bf16.gmra.mrb[88].mxu0 %vm84_vm2, %v10215_v3  ;;  %8727 = vmatprep.mubr.msk.bf16.mxu1 %vm84_vm2, %v10215_v3 }
 0x176   :  { %v679_v9 = vadd.f32 %v8408_v6, %v10073_v41  ;;  %v670_v11 = vpop.f32.mrb[35].mxu0  ;;  %8467 = vmatprep.mubr.msk.bf16.mxu0 %vm84_vm2, %v10223_v8  ;;  %8728 = vmatmul.mubr.msk.bf16.gmra.mrb[24].mxu1 %vm84_vm2, %v10223_v8  ;;  %v828_v14 = vmax.f32 %v676_v0, 0.0 }
 0x177   :  { %v671_v12 = vadd.f32 %v10073_v41, %v670_v11  ;;  %v826_v18 = vmax.f32 %v668_v5, 0.0 }
 0x178   :  { %v829_v17 = vmax.f32 %v679_v9, 0.0  ;;  %v10273_v9 = vld [vmem:[#allocation2 + $0x68] sm:$0xff] }
 0x179   :  { %v827_v19 = vmax.f32 %v671_v12, 0.0 }
 0x17a   :  { %v875_v21 = vpack.c.bf16 %v829_v17, %v828_v14 }
 0x17b   :  { %v874_v22 = vpack.c.bf16 %v827_v19, %v826_v18  ;;  %v8411_v24 = vpop.f32.mrb[36].mxu0  ;;  %v3052_v35 = vld [vmem:[#allocation2 + $0x188] sm:$0xff]  ;;  %v4444_v18 = vshrl.u32 %v10273_v9, 16 }
 0x17c   :  { %908 = vst.msk [vmem:[#allocation2 + $0x1e8] sm:$0xff] %vm84_vm2, %v875_v21  ;;  %v692_v28 = vadd.f32 %v8411_v24, %v10073_v41  ;;  %v683_v30 = vpop.f32.mrb[37].mxu0  ;;  %v10242_v31 = vld [vmem:[#allocation2 + $0x170] sm:$0xff] }
 0x17d   :  { %907 = vst.msk [vmem:[#allocation2 + $0x1d0] sm:$0xff] %vm84_vm2, %v874_v22  ;;  %v684_v33 = vadd.f32 %v10073_v41, %v683_v30  ;;  %v8412_v34 = vpop.f32.mrb[38].mxu0  ;;  %8468 = vmatmul.mubr.msk.bf16.gmra.mrb[92].mxu0 %vm84_vm2, %v10242_v31  ;;  %8731 = vmatprep.mubr.msk.bf16.mxu1 %vm84_vm2, %v10242_v31 }
 0x17e   :  { %v695_v36 = vadd.f32 %v8412_v34, %v10073_v41  ;;  %v686_v37 = vpop.f32.mrb[39].mxu0  ;;  %8732 = vmatmul.mubr.msk.bf16.gmra.mrb[28].mxu1 %vm84_vm2, %v3052_v35  ;;  %8471 = vmatprep.mubr.msk.bf16.mxu0 %vm84_vm2, %v10234_v25  ;;  %v832_v42 = vmax.f32 %v692_v28, 0.0 }
 0x17f   :  { %v687_v39 = vadd.f32 %v10073_v41, %v686_v37  ;;  %v830_v45 = vmax.f32 %v684_v33, 0.0 }
 0x180   :  { %v833_v43 = vmax.f32 %v695_v36, 0.0  ;;  %v5340_v36 = vrot.slane %v4444_v18, 7 }
 0x181   :  { %v831_v47 = vmax.f32 %v687_v39, 0.0 }
 0x182   :  { %v877_v50 = vpack.c.bf16 %v833_v43, %v832_v42 }
 0x183   :  { %v876_v51 = vpack.c.bf16 %v831_v47, %v830_v45  ;;  %v8415_v53 = vpop.f32.mrb[40].mxu0  ;;  %v10265_v60 = vld [vmem:[#allocation2 + $0x1e8] sm:$0xff]  ;;  %v4446_v45 = vshll.u32 %v10273_v9, 16 }
 0x184   :  { %910 = vst.msk [vmem:[#allocation2 + $0x218] sm:$0xff] %vm84_vm2, %v877_v50  ;;  %v708_v54 = vadd.f32 %v8415_v53, %v10073_v41  ;;  %v699_v55 = vpop.f32.mrb[41].mxu0  ;;  %v10257_v57 = vld [vmem:[#allocation2 + $0x1d0] sm:$0xff] }
 0x185   :  { %909 = vst.msk [vmem:[#allocation2 + $0x200] sm:$0xff] %vm84_vm2, %v876_v51  ;;  %v700_v58 = vadd.f32 %v10073_v41, %v699_v55  ;;  %v8416_v59 = vpop.f32.mrb[42].mxu0  ;;  %8472 = vmatmul.mubr.msk.bf16.gmra.mrb[96].mxu0 %vm84_vm2, %v10257_v57  ;;  %8735 = vmatprep.mubr.msk.bf16.mxu1 %vm84_vm2, %v10257_v57  ;;  %v10299_v53 = vor.u32 %v5340_v36, %v4446_v45 }
 0x186   :  { %v711_v62 = vadd.f32 %v8416_v59, %v10073_v41  ;;  %v702_v0 = vpop.f32.mrb[43].mxu0  ;;  %8475 = vmatprep.mubr.msk.bf16.mxu0 %vm84_vm2, %v10265_v60  ;;  %8736 = vmatmul.mubr.msk.bf16.gmra.mrb[32].mxu1 %vm84_vm2, %v10265_v60  ;;  %v836_v5 = vmax.f32 %v708_v54, 0.0 }
 0x187   :  { %v703_v2 = vadd.f32 %v10073_v41, %v702_v0  ;;  %v834_v11 = vmax.f32 %v700_v58, 0.0 }
 0x188   :  { %v837_v6 = vmax.f32 %v711_v62, 0.0 }
 0x189   :  { %v835_v12 = vmax.f32 %v703_v2, 0.0 }
 0x18a   :  { %v879_v13 = vpack.c.bf16 %v837_v6, %v836_v5 }
 0x18b   :  { %v878_v14 = vpack.c.bf16 %v835_v12, %v834_v11  ;;  %v8419_v17 = vpop.f32.mrb[44].mxu0  ;;  %v10286_v30 = vld [vmem:[#allocation2 + $0x218] sm:$0xff] }
 0x18c   :  { %912 = vst.msk [vmem:[#allocation2 + $0x248] sm:$0xff] %vm84_vm2, %v879_v13  ;;  %v724_v19 = vadd.f32 %v8419_v17, %v10073_v41  ;;  %v715_v21 = vpop.f32.mrb[45].mxu0  ;;  %v10278_v22 = vld [vmem:[#allocation2 + $0x200] sm:$0xff] }
 0x18d   :  { %911 = vst.msk [vmem:[#allocation2 + $0x230] sm:$0xff] %vm84_vm2, %v878_v14  ;;  %v716_v24 = vadd.f32 %v10073_v41, %v715_v21  ;;  %v8420_v28 = vpop.f32.mrb[46].mxu0  ;;  %8476 = vmatmul.mubr.msk.bf16.gmra.mrb[100].mxu0 %vm84_vm2, %v10278_v22  ;;  %8739 = vmatprep.mubr.msk.bf16.mxu1 %vm84_vm2, %v10278_v22 }
 0x18e   :  { %v727_v33 = vadd.f32 %v8420_v28, %v10073_v41  ;;  %v718_v34 = vpop.f32.mrb[47].mxu0  ;;  %8479 = vmatprep.mubr.msk.bf16.mxu0 %vm84_vm2, %v10286_v30  ;;  %8740 = vmatmul.mubr.msk.bf16.gmra.mrb[36].mxu1 %vm84_vm2, %v10286_v30  ;;  %v840_v37 = vmax.f32 %v724_v19, 0.0 }
 0x18f   :  { %v719_v35 = vadd.f32 %v10073_v41, %v718_v34  ;;  %v838_v42 = vmax.f32 %v716_v24, 0.0 }
 0x190   :  { %v841_v39 = vmax.f32 %v727_v33, 0.0 }
 0x191   :  { %v839_v43 = vmax.f32 %v719_v35, 0.0 }
 0x192   :  { %v881_v47 = vpack.c.bf16 %v841_v39, %v840_v37 }
 0x193   :  { %v880_v50 = vpack.c.bf16 %v839_v43, %v838_v42  ;;  %v8423_v51 = vpop.f32.mrb[48].mxu0  ;;  %v10311_v0 = vld [vmem:[#allocation2 + $0x248] sm:$0xff] }
 0x194   :  { %914 = vst.msk [vmem:[#allocation2 + $0x278] sm:$0xff] %vm84_vm2, %v881_v47  ;;  %v740_v54 = vadd.f32 %v8423_v51, %v10073_v41  ;;  %v731_v55 = vpop.f32.mrb[49].mxu0  ;;  %v10303_v58 = vld [vmem:[#allocation2 + $0x230] sm:$0xff] }
 0x195   :  { %913 = vst.msk [vmem:[#allocation2 + $0x260] sm:$0xff] %vm84_vm2, %v880_v50  ;;  %v732_v59 = vadd.f32 %v10073_v41, %v731_v55  ;;  %v8424_v62 = vpop.f32.mrb[50].mxu0  ;;  %8480 = vmatmul.mubr.msk.bf16.gmra.mrb[104].mxu0 %vm84_vm2, %v10303_v58  ;;  %8743 = vmatprep.mubr.msk.bf16.mxu1 %vm84_vm2, %v10303_v58 }
 0x196   :  { %v743_v2 = vadd.f32 %v8424_v62, %v10073_v41  ;;  %v734_v5 = vpop.f32.mrb[51].mxu0  ;;  %8483 = vmatprep.mubr.msk.bf16.mxu0 %vm84_vm2, %v10311_v0  ;;  %8744 = vmatmul.mubr.msk.bf16.gmra.mrb[40].mxu1 %vm84_vm2, %v10311_v0  ;;  %v844_v11 = vmax.f32 %v740_v54, 0.0 }
 0x197   :  { %v735_v6 = vadd.f32 %v10073_v41, %v734_v5  ;;  %v842_v13 = vmax.f32 %v732_v59, 0.0 }
 0x198   :  { %v845_v12 = vmax.f32 %v743_v2, 0.0 }
 0x199   :  { %v843_v14 = vmax.f32 %v735_v6, 0.0 }
 0x19a   :  { %v883_v17 = vpack.c.bf16 %v845_v12, %v844_v11 }
 0x19b   :  { %v882_v19 = vpack.c.bf16 %v843_v14, %v842_v13  ;;  %v8427_v21 = vpop.f32.mrb[52].mxu0  ;;  %v10329_v36 = vld [vmem:[#allocation2 + $0x278] sm:$0xff] }
 0x19c   :  { %916 = vst.msk [vmem:[#allocation2 + $0x2a8] sm:$0xff] %vm84_vm2, %v883_v17  ;;  %v756_v24 = vadd.f32 %v8427_v21, %v10073_v41  ;;  %v747_v28 = vpop.f32.mrb[53].mxu0  ;;  %v10321_v33 = vld [vmem:[#allocation2 + $0x260] sm:$0xff] }
 0x19d   :  { %915 = vst.msk [vmem:[#allocation2 + $0x290] sm:$0xff] %vm84_vm2, %v882_v19  ;;  %v748_v34 = vadd.f32 %v10073_v41, %v747_v28  ;;  %v8428_v35 = vpop.f32.mrb[54].mxu0  ;;  %8484 = vmatmul.mubr.msk.bf16.gmra.mrb[108].mxu0 %vm84_vm2, %v10321_v33  ;;  %8747 = vmatprep.mubr.msk.bf16.mxu1 %vm84_vm2, %v10321_v33 }
 0x19e   :  { %v759_v37 = vadd.f32 %v8428_v35, %v10073_v41  ;;  %v750_v39 = vpop.f32.mrb[55].mxu0  ;;  %8487 = vmatprep.mubr.msk.bf16.mxu0 %vm84_vm2, %v10329_v36  ;;  %8748 = vmatmul.mubr.msk.bf16.gmra.mrb[44].mxu1 %vm84_vm2, %v10329_v36  ;;  %v848_v43 = vmax.f32 %v756_v24, 0.0 }
 0x19f   :  { %v751_v42 = vadd.f32 %v10073_v41, %v750_v39  ;;  %v846_v50 = vmax.f32 %v748_v34, 0.0 }
 0x1a0   :  { %v849_v47 = vmax.f32 %v759_v37, 0.0 }
 0x1a1   :  { %v847_v51 = vmax.f32 %v751_v42, 0.0 }
 0x1a2   :  { %v885_v54 = vpack.c.bf16 %v849_v47, %v848_v43 }
 0x1a3   :  { %v884_v55 = vpack.c.bf16 %v847_v51, %v846_v50  ;;  %v8431_v59 = vpop.f32.mrb[56].mxu0  ;;  %v976_v12 = vld [vmem:[#allocation2 + $0x2a8] sm:$0xff] }
 0x1a4   :  { %918 = vst.msk [vmem:[#allocation2 + $0x2d8] sm:$0xff] %vm84_vm2, %v885_v54  ;;  %v772_v62 = vadd.f32 %v8431_v59, %v10073_v41  ;;  %v763_v2 = vpop.f32.mrb[57].mxu0  ;;  %v974_v5 = vld [vmem:[#allocation2 + $0x290] sm:$0xff]  ;;  %v993_v59 = vshrl.u32 %v10068_v40, 16 }
 0x1a5   :  { %917 = vst.msk [vmem:[#allocation2 + $0x2c0] sm:$0xff] %vm84_vm2, %v884_v55  ;;  %v764_v6 = vadd.f32 %v10073_v41, %v763_v2  ;;  %v8432_v11 = vpop.f32.mrb[58].mxu0  ;;  %8488 = vmatmul.mubr.msk.bf16.gmra.mrb[112].mxu0 %vm84_vm2, %v974_v5  ;;  %8751 = vmatprep.mubr.msk.bf16.mxu1 %vm84_vm2, %v974_v5  ;;  %v4343_v2 = vld [vmem:[#allocation2 + $0x20] sm:$0xff] }
 0x1a6   :  { %v775_v13 = vadd.f32 %v8432_v11, %v10073_v41  ;;  %v766_v14 = vpop.f32.mrb[59].mxu0  ;;  %8491 = vmatprep.mubr.msk.bf16.mxu0 %vm84_vm2, %v976_v12  ;;  %8752 = vmatmul.mubr.msk.bf16.gmra.mrb[48].mxu1 %vm84_vm2, %v976_v12  ;;  %v852_v19 = vmax.f32 %v772_v62, 0.0  ;;  %v923_v11 = vld [vmem:[#allocation2] sm:$0x80] }
 0x1a7   :  { %v767_v17 = vadd.f32 %v10073_v41, %v766_v14  ;;  %v850_v24 = vmax.f32 %v764_v6, 0.0 }
 0x1a8   :  { %v853_v21 = vmax.f32 %v775_v13, 0.0 }
 0x1a9   :  { %v851_v28 = vmax.f32 %v767_v17, 0.0  ;;  %v4410_v17 = vshll.u32 %v4343_v2, 16 }
 0x1aa   :  { %v887_v34 = vpack.c.bf16 %v853_v21, %v852_v19  ;;  %v995_v19 = vrot.slane %v993_v59, 7  ;;  %v996_v21 = vshll.u32 %v10068_v40, 16 }
 0x1ab   :  { %v886_v35 = vpack.c.bf16 %v851_v28, %v850_v24  ;;  %v8435_v37 = vpop.f32.mrb[60].mxu0  ;;  %v980_v51 = vld [vmem:[#allocation2 + $0x2d8] sm:$0xff]  ;;  %v4344_v28 = vld [vmem:[#allocation2 + $0x28] sm:$0x1] }
 0x1ac   :  { %920 = vst.msk [vmem:[#allocation2 + $0x308] sm:$0xff] %vm84_vm2, %v887_v34  ;;  %v788_v39 = vadd.f32 %v8435_v37, %v10073_v41  ;;  %v779_v42 = vpop.f32.mrb[61].mxu0  ;;  %v978_v43 = vld [vmem:[#allocation2 + $0x2c0] sm:$0xff]  ;;  %v989_v34 = vshrl.u32 %v923_v11, 16  ;;  %v4412_v37 = vrot.slane %v4410_v17, 1  ;;  %v998_v40 = vor.u32 %v996_v21, %v995_v19 }
 0x1ad   :  { %919 = vst.msk [vmem:[#allocation2 + $0x2f0] sm:$0xff] %vm84_vm2, %v886_v35  ;;  %v780_v47 = vadd.f32 %v10073_v41, %v779_v42  ;;  %v8436_v50 = vpop.f32.mrb[62].mxu0  ;;  %8492 = vmatmul.mubr.msk.bf16.gmra.mrb[116].mxu0 %vm84_vm2, %v978_v43  ;;  %8755 = vmatprep.mubr.msk.bf16.mxu1 %vm84_vm2, %v978_v43  ;;  %v1005_v43 = vshrl.u32 %v10088_v10, 16  ;;  %v931_v19 = vld [vmem:[#allocation2 + $0x60] sm:$0x80]  ;;  %v4424_v21 = vrot.slane %v4422_v61, 1 }
 0x1ae   :  { %v791_v54 = vadd.f32 %v8436_v50, %v10073_v41  ;;  %v782_v55 = vpop.f32.mrb[63].mxu0  ;;  %8495 = vmatprep.mubr.msk.bf16.mxu0 %vm84_vm2, %v980_v51  ;;  %8756 = vmatmul.mubr.msk.bf16.gmra.mrb[52].mxu1 %vm84_vm2, %v980_v51  ;;  %v856_v5 = vmax.f32 %v788_v39, 0.0  ;;  %v4415_v39 = vshll.u32 %v4344_v28, 16  ;;  %v991_v42 = vrot.slane %v989_v34, 7  ;;  %v927_v51 = vld [vmem:[#allocation2 + $0x30] sm:$0x80] }
 0x1af   :  { %v783_v62 = vadd.f32 %v10073_v41, %v782_v55  ;;  %v854_v12 = vmax.f32 %v780_v47, 0.0  ;;  %v1017_v47 = vshrl.u32 %v10098_v15, 16  ;;  %v4408_v50 = vshrl.u32 %v4343_v2, 16  ;;  %v4346_v55 = vld [vmem:[#allocation2 + $0x40] sm:$0x1] }
 0x1b0   :  { %v857_v6 = vmax.f32 %v791_v54, 0.0  ;;  %v925_v54 = vld [vmem:[#allocation2 + $0x18] sm:$0x80]  ;;  %v1013_v11 = vshrl.u32 %v927_v51, 16  ;;  %v1008_v34 = vshll.u32 %v10088_v10, 16  ;;  %v10380_v61 = vld [vmem:[#allocation2 + $0x80] sm:$0xff] }
 0x1b1   :  { %v855_v13 = vmax.f32 %v783_v62, 0.0  ;;  %v4413_v59 = vor.u32 %v4412_v37, %v4408_v50  ;;  %v4417_v62 = vrot.slane %v4415_v39, 1  ;;  %v1001_v17 = vshrl.u32 %v925_v54, 16  ;;  %v929_v50 = vld [vmem:[#allocation2 + $0x48] sm:$0x80] }
 0x1b2   :  { %v889_v14 = vpack.c.bf16 %v857_v6, %v856_v5  ;;  %v4348_v5 = vld [vmem:[#allocation2 + $0x58] sm:$0x1]  ;;  %v999_v6 = vsel %vm987_vm6, %v991_v42, %v998_v40  ;;  %v4436_v37 = vrot.slane %v4434_v20, 1  ;;  %v1015_v39 = vrot.slane %v1013_v11, 7  ;;  %v2568_v42 = vld [vmem:[#allocation9 + $0x8] sm:$0xf] }
 0x1b3   :  { %v888_v24 = vpack.c.bf16 %v855_v13, %v854_v12  ;;  %v984_v41 = vld [vmem:[#allocation2 + $0x308] sm:$0xff]  ;;  %v1007_v12 = vrot.slane %v1005_v43, 7  ;;  %v1019_v13 = vrot.slane %v1017_v47, 7  ;;  %v4439_v28 = vshll.u32 %v4348_v5, 16  ;;  %v4350_v51 = vld [vmem:[#allocation2 + $0x70] sm:$0x1]  ;;  %9546 = vmatprep.subr.msk.bf16.mxu0 %vm1438_vm5, %v2568_v42 }
 0x1b4   :  { %922 = vst.msk [vmem:[#allocation2 + $0x338] sm:$0xff] %vm84_vm2, %v889_v14  ;;  %v982_v35 = vld [vmem:[#allocation2 + $0x2f0] sm:$0xff]  ;;  %v1037_v40 = vshrl.u32 %v931_v19, 16  ;;  %v1003_v47 = vrot.slane %v1001_v17, 7  ;;  %v1041_v20 = vshrl.u32 %v10120_v32, 16  ;;  %v10391_v54 = vor.u32 %v4424_v21, %v4420_v46 }
 0x1b5   :  { %921 = vst.msk [vmem:[#allocation2 + $0x320] sm:$0xff] %vm84_vm2, %v888_v24  ;;  %8496 = vmatmul.mubr.msk.bf16.gmra.mrb[120].mxu0 %vm84_vm2, %v982_v35  ;;  %8759 = vmatprep.mubr.msk.bf16.mxu1 %vm84_vm2, %v982_v35  ;;  %v4427_v24 = vshll.u32 %v4346_v55, 16  ;;  %v1020_v35 = vshll.u32 %v10098_v15, 16  ;;  %v10382_v43 = vor.u32 %v1008_v34, %v1007_v12  ;;  %v1029_v15 = vshrl.u32 %v10112_v29, 16  ;;  %v935_v19 = vld [vmem:[#allocation2 + $0x90] sm:$0x80] }
 0x1b6   :  { %8499 = vmatprep.mubr.msk.bf16.mxu0 %vm84_vm2, %v984_v41  ;;  %8760 = vmatmul.mubr.msk.bf16.gmra.mrb[56].mxu1 %vm84_vm2, %v984_v41  ;;  %v4418_v41 = vsel %vm2183_vm7, %v4413_v59, %v4417_v62  ;;  %v4437_v59 = vor.u32 %v4436_v37, %v4432_v63  ;;  %v4441_v62 = vrot.slane %v4439_v28, 1  ;;  %v11505_v5 = vshll.u32 %v10380_v61, 16  ;;  %v6146_v28 = vld [vmem:[#allocation9 + $0x1c] sm:$0xf]  ;;  %v10414_v37 = vld [vmem:[#allocation2 + $0x98] sm:$0xff] }
 0x1b7   :  { %v10384_v10 = vor.u32 %v1020_v35, %v1019_v13  ;;  %v4429_v55 = vrot.slane %v4427_v24, 1  ;;  %v1039_v11 = vrot.slane %v1037_v40, 7  ;;  %v4451_v12 = vshll.u32 %v4350_v51, 16  ;;  %v4352_v13 = vld [vmem:[#allocation2 + $0x88] sm:$0x1] }
 0x1b8   :  { %v1011_v17 = vsel %vm987_vm6, %v1003_v47, %v10382_v43  ;;  %v5791_v46 = vsel %vm1438_vm5, %v10100_v16, 0  ;;  %v1043_v63 = vrot.slane %v1041_v20, 7  ;;  %v4448_v21 = vrot.slane %v4446_v45, 1  ;;  %v933_v51 = vld [vmem:[#allocation2 + $0x78] sm:$0x80] }
 0x1b9   :  { %v1023_v38 = vsel %vm987_vm6, %v1015_v39, %v10384_v10  ;;  %v2666_v24 = vsel %vm1438_vm5, %v2568_v42, 0  ;;  %v1032_v34 = vshll.u32 %v10112_v29, 16  ;;  %v4442_v16 = vsel %vm2183_vm7, %v4437_v59, %v4441_v62  ;;  %v4355_v42 = vld [vmem:[#allocation2 + $0xb0] sm:$0xff] }
 0x1ba   :  { %v4460_v35 = vrot.slane %v11505_v5, 1  ;;  %v1044_v39 = vshll.u32 %v10120_v32, 16  ;;  %v4453_v40 = vrot.slane %v4451_v12, 1  ;;  %v1061_v29 = vshrl.u32 %v935_v19, 16 }
 0x1bb   :  { %v3084_v2 = vld [vmem:[#allocation2 + $0x338] sm:$0xff]  ;;  %v1053_v47 = vshrl.u32 %v10133_v49, 16  ;;  %v4475_v20 = vshll.u32 %v4354_v56, 16  ;;  %v1065_v32 = vshrl.u32 %v10141_v52, 16  ;;  %v10428_v59 = vor.u32 %v4448_v21, %v4444_v18 }
 0x1bc   :  { %v986_v14 = vld [vmem:[#allocation2 + $0x320] sm:$0xff]  ;;  %v11503_v62 = vshll.u32 %v10414_v37, 16  ;;  %v1063_v19 = vrot.slane %v1061_v29, 7 }
 0x1bd   :  { %8500 = vmatmul.mubr.msk.bf16.gmra.mrb[124].mxu0 %vm84_vm2, %v986_v14  ;;  %8763 = vmatprep.mubr.msk.bf16.mxu1 %vm84_vm2, %v986_v14  ;;  %v1031_v14 = vrot.slane %v1029_v15, 7  ;;  %v4477_v56 = vrot.slane %v4475_v20, 1  ;;  %v4454_v18 = vsel %vm2183_vm7, %v10428_v59, %v4453_v40  ;;  %v4359_v29 = vld [vmem:[#allocation2 + $0xe0] sm:$0xff]  ;;  %v937_v20 = vld [vmem:[#allocation2 + $0xa8] sm:$0x80] }
 0x1be   :  { %8764 = vmatmul.mubr.msk.bf16.gmra.mrb[60].mxu1 %vm84_vm2, %v3084_v2  ;;  %8505 = vmatprep.mubr.msk.bf16.mxu0 %vm84_vm2, %v999_v6  ;;  %v1025_v6 = vshrl.u32 %v929_v50, 16  ;;  %v4430_v2 = vsel %vm2183_vm7, %v10391_v54, %v4429_v55  ;;  %v11507_v50 = vshrl.u32 %v10380_v61, 16  ;;  %v10423_v55 = vor.u32 %v1044_v39, %v1043_v63  ;;  %v939_v63 = vld [vmem:[#allocation2 + $0xc0] sm:$0x80] }
 0x1bf   :  { %8769 = vmatprep.mubr.msk.bf16.mxu1 %vm84_vm2, %v4418_v41  ;;  %v4463_v41 = vshll.u32 %v4352_v13, 16  ;;  %v10418_v15 = vor.u32 %v1032_v34, %v1031_v14  ;;  %v4482_v13 = vshll.u32 %v4355_v42, 16  ;;  %v1049_v14 = vshrl.u32 %v933_v51, 16 }
 0x1c0   :  { %v1027_v45 = vrot.slane %v1025_v6, 7  ;;  %v4461_v6 = vor.u32 %v4460_v35, %v11507_v50  ;;  %v1047_v9 = vsel %vm987_vm6, %v1039_v11, %v10423_v55  ;;  %v4472_v21 = vrot.slane %v11503_v62, 1 }
 0x1c1   :  { %v4465_v12 = vrot.slane %v4463_v41, 1  ;;  %v10446_v41 = vld [vmem:[#allocation2 + $0xc8] sm:$0xff]  ;;  %v1068_v11 = vshll.u32 %v10141_v52, 16  ;;  %v1051_v39 = vrot.slane %v1049_v14, 7  ;;  %v1085_v40 = vshrl.u32 %v939_v63, 16 }
 0x1c2   :  { %v4480_v51 = vshrl.u32 %v4355_v42, 16  ;;  %v1073_v63 = vshrl.u32 %v937_v20, 16  ;;  %v1092_v20 = vshll.u32 %v10166_v7, 16 }
 0x1c3   :  { %v4466_v34 = vsel %vm2183_vm7, %v4461_v6, %v4465_v12  ;;  %v1089_v12 = vshrl.u32 %v10166_v7, 16 }
 0x1c5   :  { %8506 = vmatmul.mubr.msk.bf16.vlgmr.msra.gmra.mrb[64].mxu0 %vm84_vm2, %v1011_v17  ;;  %v4356_v17 = vld [vmem:[#allocation2 + $0xb8] sm:$0x1] }
 0x1c6   :  { %8509 = vmatprep.mubr.msk.bf16.mxu0 %vm84_vm2, %v1023_v38  ;;  %8770 = vmatmul.mubr.msk.bf16.vlgmr.msra.gmra.mrb[0].mxu1 %vm84_vm2, %v4430_v2  ;;  %v1055_v38 = vrot.slane %v1053_v47, 7  ;;  %v1067_v2 = vrot.slane %v1065_v32, 7  ;;  %v4487_v35 = vshll.u32 %v4356_v17, 16  ;;  %v1077_v47 = vshrl.u32 %v10158_v4, 16 }
 0x1c7   :  { %8834 = vmatpush3.bf16.msra.mxu1 %v5791_v46  ;;  %8773 = vmatprep.mubr.msk.bf16.mxu1 %vm84_vm2, %v4442_v16  ;;  %v1035_v46 = vsel %vm987_vm6, %v1027_v45, %v10418_v15  ;;  %v4484_v16 = vrot.slane %v4482_v13, 1  ;;  %v11506_v45 = vshrl.u32 %v10414_v37, 16  ;;  %v11502_v13 = vshll.u32 %v10446_v41, 16 }
 0x1c8   :  { %8570 = vmatpush3.bf16.msra.mxu0 %v2666_v24  ;;  %9551 = vmatprep.subr.msk.bf16.mxu1 %vm1438_vm5, %v6146_v28  ;;  %v4358_v24 = vld [vmem:[#allocation2 + $0xd0] sm:$0x1]  ;;  %v1056_v28 = vshll.u32 %v10133_v49, 16  ;;  %v10454_v6 = vor.u32 %v1068_v11, %v1067_v2  ;;  %v4489_v17 = vrot.slane %v4487_v35, 1  ;;  %v943_v2 = vld [vmem:[#allocation2 + $0xf0] sm:$0x80] }
 0x1c9   :  { %v4499_v32 = vshll.u32 %v4358_v24, 16  ;;  %v4473_v52 = vor.u32 %v4472_v21, %v11506_v45  ;;  %v4485_v14 = vor.u32 %v4484_v16, %v4480_v51  ;;  %v4496_v16 = vrot.slane %v11502_v13, 1  ;;  %v4362_v35 = vld [vmem:[#allocation2 + $0x100] sm:$0x1]  ;;  %v4361_v51 = vld [vmem:[#allocation2 + $0xf8] sm:$0xff] }
 0x1ca   :  { %v10451_v49 = vor.u32 %v1056_v28, %v1055_v38  ;;  %v4360_v38 = vld [vmem:[#allocation2 + $0xe8] sm:$0x1]  ;;  %v1091_v28 = vrot.slane %v1089_v12, 7  ;;  %v1071_v21 = vsel %vm987_vm6, %v1063_v19, %v10454_v6  ;;  %v1080_v11 = vshll.u32 %v10158_v4, 16  ;;  %v4363_v12 = vld [vmem:[#allocation2 + $0x110] sm:$0xff] }
 0x1cb   :  { %v4501_v24 = vrot.slane %v4499_v32, 1  ;;  %v1075_v19 = vrot.slane %v1073_v63, 7  ;;  %v1109_v32 = vshrl.u32 %v943_v2, 16  ;;  %v1101_v4 = vshrl.u32 %v10176_v23, 16  ;;  %v4364_v13 = vld [vmem:[#allocation2 + $0x118] sm:$0x1] }
 0x1cc   :  { %v1059_v42 = vsel %vm987_vm6, %v1051_v39, %v10451_v49  ;;  %v4490_v39 = vsel %vm2183_vm7, %v4485_v14, %v4489_v17  ;;  %v10478_v14 = vor.u32 %v1092_v20, %v1091_v28  ;;  %v1113_v17 = vshrl.u32 %v10184_v26, 16 }
 0x1cd   :  { %8510 = vmatmul.mubr.msk.bf16.gmra.mrb[68].mxu0 %vm84_vm2, %v1035_v46  ;;  %v4506_v46 = vshll.u32 %v4359_v29, 16 }
 0x1ce   :  { %8513 = vmatprep.mubr.msk.bf16.mxu0 %vm84_vm2, %v1047_v9  ;;  %8774 = vmatmul.mubr.msk.bf16.gmra.mrb[4].mxu1 %vm84_vm2, %v4454_v18  ;;  %v1079_v9 = vrot.slane %v1077_v47, 7  ;;  %v1087_v18 = vrot.slane %v1085_v40, 7  ;;  %v4511_v47 = vshll.u32 %v4360_v38, 16  ;;  %v1115_v28 = vrot.slane %v1113_v17, 7 }
 0x1cf   :  { %8777 = vmatprep.mubr.msk.bf16.mxu1 %vm84_vm2, %v4466_v34  ;;  %v4478_v34 = vsel %vm2183_vm7, %v4473_v52, %v4477_v56  ;;  %v4508_v40 = vrot.slane %v4506_v46, 1  ;;  %v11504_v56 = vshrl.u32 %v10446_v41, 16  ;;  %v4518_v46 = vshll.u32 %v4361_v51, 16 }
 0x1d0   :  { %v10475_v52 = vor.u32 %v1080_v11, %v1079_v9  ;;  %v4513_v38 = vrot.slane %v4511_v47, 1  ;;  %v1103_v9 = vrot.slane %v1101_v4, 7  ;;  %v1095_v20 = vsel %vm987_vm6, %v1087_v18, %v10478_v14  ;;  %v4366_v47 = vld [vmem:[#allocation2 + $0x130] sm:$0x1] }
 0x1d1   :  { %v4497_v7 = vor.u32 %v4496_v16, %v11504_v56  ;;  %v4535_v4 = vshll.u32 %v4364_v13, 16  ;;  %v4516_v17 = vshrl.u32 %v4361_v51, 16  ;;  %v1137_v13 = vshrl.u32 %v10202_v48, 16  ;;  %v4368_v51 = vld [vmem:[#allocation2 + $0x148] sm:$0x1] }
 0x1d2   :  { %v1083_v11 = vsel %vm987_vm6, %v1075_v19, %v10475_v52 }
 0x1d3   :  { %v4502_v16 = vsel %vm2183_vm7, %v4497_v7, %v4501_v24  ;;  %v4367_v7 = vld [vmem:[#allocation2 + $0x140] sm:$0xff]  ;;  %v1139_v45 = vrot.slane %v1137_v13, 7 }
 0x1d4   :  { %v4552_v13 = vshrl.u32 %v4367_v7, 16 }
 0x1d5   :  { %8514 = vmatmul.mubr.msk.bf16.gmra.mrb[72].mxu0 %vm84_vm2, %v1059_v42  ;;  %v4504_v42 = vshrl.u32 %v4359_v29, 16  ;;  %v1111_v29 = vrot.slane %v1109_v32, 7 }
 0x1d6   :  { %8517 = vmatprep.mubr.msk.bf16.mxu0 %vm84_vm2, %v1071_v21  ;;  %8778 = vmatmul.mubr.msk.bf16.gmra.mrb[8].mxu1 %vm84_vm2, %v4478_v34  ;;  %v941_v21 = vld [vmem:[#allocation2 + $0xd8] sm:$0x80]  ;;  %v4523_v34 = vshll.u32 %v4362_v35, 16  ;;  %v947_v35 = vld [vmem:[#allocation2 + $0x120] sm:$0x80] }
 0x1d7   :  { %8781 = vmatprep.mubr.msk.bf16.mxu1 %vm84_vm2, %v4490_v39  ;;  %v4509_v63 = vor.u32 %v4508_v40, %v4504_v42  ;;  %v4530_v39 = vshll.u32 %v4363_v12, 16  ;;  %v1097_v2 = vshrl.u32 %v941_v21, 16  ;;  %v4520_v40 = vrot.slane %v4518_v46, 1  ;;  %v4365_v21 = vld [vmem:[#allocation2 + $0x128] sm:$0xff] }
 0x1d8   :  { %v4525_v62 = vrot.slane %v4523_v34, 1  ;;  %v1104_v42 = vshll.u32 %v10176_v23, 16  ;;  %v1116_v34 = vshll.u32 %v10184_v26, 16  ;;  %v1133_v24 = vshrl.u32 %v947_v35, 16 }
 0x1d9   :  { %v4514_v19 = vsel %vm2183_vm7, %v4509_v63, %v4513_v38  ;;  %v4532_v32 = vrot.slane %v4530_v39, 1  ;;  %v1099_v18 = vrot.slane %v1097_v2, 7  ;;  %v1125_v23 = vshrl.u32 %v10194_v44, 16 }
 0x1da   :  { %v10495_v46 = vor.u32 %v1104_v42, %v1103_v9  ;;  %v10498_v56 = vor.u32 %v1116_v34, %v1115_v28  ;;  %v4521_v63 = vor.u32 %v4520_v40, %v4516_v17  ;;  %v4542_v38 = vshll.u32 %v4365_v21, 16 }
 0x1db   :  { %v4537_v39 = vrot.slane %v4535_v4, 1  ;;  %v1127_v35 = vrot.slane %v1125_v23, 7  ;;  %v1135_v42 = vrot.slane %v1133_v24, 7  ;;  %v1128_v4 = vshll.u32 %v10194_v44, 16  ;;  %v4369_v24 = vld [vmem:[#allocation2 + $0x158] sm:$0xff] }
 0x1dc   :  { %v1107_v9 = vsel %vm987_vm6, %v1099_v18, %v10495_v46  ;;  %v1119_v28 = vsel %vm987_vm6, %v1111_v29, %v10498_v56  ;;  %v4526_v40 = vsel %vm2183_vm7, %v4521_v63, %v4525_v62  ;;  %v4559_v17 = vshll.u32 %v4368_v51, 16  ;;  %v949_v63 = vld [vmem:[#allocation2 + $0x138] sm:$0x80] }
 0x1dd   :  { %8518 = vmatmul.mubr.msk.bf16.gmra.mrb[76].mxu0 %vm84_vm2, %v1083_v11  ;;  %v4528_v11 = vshrl.u32 %v4363_v12, 16  ;;  %v951_v12 = vld [vmem:[#allocation2 + $0x150] sm:$0x80]  ;;  %v1140_v23 = vshll.u32 %v10202_v48, 16  ;;  %v1149_v44 = vshrl.u32 %v10215_v3, 16 }
 0x1de   :  { %8521 = vmatprep.mubr.msk.bf16.mxu0 %vm84_vm2, %v1095_v20  ;;  %8782 = vmatmul.mubr.msk.bf16.gmra.mrb[12].mxu1 %vm84_vm2, %v4502_v16  ;;  %v945_v20 = vld [vmem:[#allocation2 + $0x108] sm:$0x80]  ;;  %v4547_v16 = vshll.u32 %v4366_v47, 16  ;;  %v4544_v47 = vrot.slane %v4542_v38, 1  ;;  %v1157_v62 = vshrl.u32 %v951_v12, 16  ;;  %v4561_v51 = vrot.slane %v4559_v17, 1 }
 0x1df   :  { %8785 = vmatprep.mubr.msk.bf16.mxu1 %vm84_vm2, %v4514_v19  ;;  %v4533_v26 = vor.u32 %v4532_v32, %v4528_v11  ;;  %v4554_v19 = vshll.u32 %v4367_v7, 16  ;;  %v1121_v2 = vshrl.u32 %v945_v20, 16  ;;  %v4370_v32 = vld [vmem:[#allocation2 + $0x160] sm:$0x1]  ;;  %v4540_v11 = vshrl.u32 %v4365_v21, 16  ;;  %v4371_v20 = vld [vmem:[#allocation2 + $0x170] sm:$0xff] }
 0x1e0   :  { %v4549_v5 = vrot.slane %v4547_v16, 1  ;;  %v10513_v16 = vor.u32 %v1128_v4, %v1127_v35  ;;  %v4571_v38 = vshll.u32 %v4370_v32, 16  ;;  %v4372_v21 = vld [vmem:[#allocation2 + $0x178] sm:$0x1]  ;;  %v1151_v12 = vrot.slane %v1149_v44, 7 }
 0x1e1   :  { %v4538_v34 = vsel %vm2183_vm7, %v4533_v26, %v4537_v39  ;;  %v4556_v18 = vrot.slane %v4554_v19, 1  ;;  %v1123_v29 = vrot.slane %v1121_v2, 7  ;;  %v1161_v26 = vshrl.u32 %v10223_v8, 16 }
 0x1e2   :  { %v4545_v39 = vor.u32 %v4544_v47, %v4540_v11  ;;  %v4566_v19 = vshll.u32 %v4369_v24, 16  ;;  %v1145_v2 = vshrl.u32 %v949_v63, 16  ;;  %v4573_v4 = vrot.slane %v4571_v38, 1  ;;  %v4374_v11 = vld [vmem:[#allocation2 + $0x190] sm:$0x1] }
 0x1e3   :  { %v4557_v48 = vor.u32 %v4556_v18, %v4552_v13  ;;  %v1131_v35 = vsel %vm987_vm6, %v1123_v29, %v10513_v16  ;;  %v1163_v7 = vrot.slane %v1161_v26, 7  ;;  %v4373_v29 = vld [vmem:[#allocation2 + $0x188] sm:$0xff]  ;;  %v1185_v44 = vshrl.u32 %v10234_v25, 16  ;;  %v4375_v13 = vld [vmem:[#allocation2 + $0x1d0] sm:$0xff] }
 0x1e4   :  { %v4550_v47 = vsel %vm2183_vm7, %v4545_v39, %v4549_v5  ;;  %v4568_v32 = vrot.slane %v4566_v19, 1  ;;  %v1147_v5 = vrot.slane %v1145_v2, 7  ;;  %v1173_v63 = vshrl.u32 %v10242_v31, 16  ;;  %v953_v26 = vld [vmem:[#allocation2 + $0x168] sm:$0x80] }
 0x1e5   :  { %8522 = vmatmul.mubr.msk.bf16.gmra.mrb[80].mxu0 %vm84_vm2, %v1107_v9  ;;  %v10516_v9 = vor.u32 %v1140_v23, %v1139_v45  ;;  %v4562_v18 = vsel %vm2183_vm7, %v4557_v48, %v4561_v51  ;;  %v4583_v23 = vshll.u32 %v4372_v21, 16  ;;  %v4576_v38 = vshrl.u32 %v4371_v20, 16  ;;  %v955_v39 = vld [vmem:[#allocation2 + $0x1b0] sm:$0x80] }
 0x1e6   :  { %8525 = vmatprep.mubr.msk.bf16.mxu0 %vm84_vm2, %v1119_v28  ;;  %8786 = vmatmul.mubr.msk.bf16.gmra.mrb[16].mxu1 %vm84_vm2, %v4526_v40  ;;  %v4578_v28 = vshll.u32 %v4371_v20, 16  ;;  %v1159_v40 = vrot.slane %v1157_v62, 7  ;;  %v1164_v62 = vshll.u32 %v10223_v8, 16  ;;  %v4590_v51 = vshll.u32 %v4373_v29, 16 }
 0x1e7   :  { %8789 = vmatprep.mubr.msk.bf16.mxu1 %vm84_vm2, %v4538_v34  ;;  %v1143_v45 = vsel %vm987_vm6, %v1135_v42, %v10516_v9  ;;  %v1152_v34 = vshll.u32 %v10215_v3, 16  ;;  %v4564_v42 = vshrl.u32 %v4369_v24, 16  ;;  %v4585_v21 = vrot.slane %v4583_v23, 1  ;;  %v959_v23 = vld [vmem:[#allocation2 + $0x1e0] sm:$0x80] }
 0x1e8   :  { %v4580_v17 = vrot.slane %v4578_v28, 1  ;;  %v10535_v19 = vor.u32 %v1164_v62, %v1163_v7  ;;  %v4595_v28 = vshll.u32 %v4374_v11, 16  ;;  %v1188_v2 = vshll.u32 %v10234_v25, 16 }
 0x1e9   :  { %v10532_v3 = vor.u32 %v1152_v34, %v1151_v12  ;;  %v4569_v48 = vor.u32 %v4568_v32, %v4564_v42  ;;  %v1169_v24 = vshrl.u32 %v953_v26, 16  ;;  %v1181_v12 = vshrl.u32 %v955_v39, 16  ;;  %v4377_v42 = vld [vmem:[#allocation2 + $0x1e8] sm:$0xff]  ;;  %v4379_v26 = vld [vmem:[#allocation2 + $0x200] sm:$0xff] }
 0x1ea   :  { %v4581_v8 = vor.u32 %v4580_v17, %v4576_v38  ;;  %v1175_v34 = vrot.slane %v1173_v63, 7  ;;  %v1167_v7 = vsel %vm987_vm6, %v1159_v40, %v10535_v19  ;;  %v4597_v17 = vrot.slane %v4595_v28, 1  ;;  %v4378_v28 = vld [vmem:[#allocation2 + $0x1f0] sm:$0x1] }
 0x1eb   :  { %v1155_v20 = vsel %vm987_vm6, %v1147_v5, %v10532_v3  ;;  %v4574_v32 = vsel %vm2183_vm7, %v4569_v48, %v4573_v4  ;;  %v1176_v11 = vshll.u32 %v10242_v31, 16  ;;  %v957_v5 = vld [vmem:[#allocation2 + $0x1c8] sm:$0x80]  ;;  %v1171_v40 = vrot.slane %v1169_v24, 7 }
 0x1ec   :  { %v4586_v25 = vsel %vm2183_vm7, %v4581_v8, %v4585_v21  ;;  %v4588_v4 = vshrl.u32 %v4373_v29, 16  ;;  %v1183_v38 = vrot.slane %v1181_v12, 7  ;;  %v1197_v31 = vshrl.u32 %v10257_v57, 16  ;;  %v4380_v12 = vld [vmem:[#allocation2 + $0x208] sm:$0x1] }
 0x1ed   :  { %8526 = vmatmul.mubr.msk.bf16.gmra.mrb[84].mxu0 %vm84_vm2, %v1131_v35  ;;  %v4602_v35 = vshll.u32 %v4375_v13, 16  ;;  %v10549_v39 = vor.u32 %v1176_v11, %v1175_v34  ;;  %v4600_v48 = vshrl.u32 %v4375_v13, 16  ;;  %v1209_v8 = vshrl.u32 %v10265_v60, 16  ;;  %v963_v13 = vld [vmem:[#allocation2 + $0x210] sm:$0x80] }
 0x1ee   :  { %8529 = vmatprep.mubr.msk.bf16.mxu0 %vm84_vm2, %v1143_v45  ;;  %8790 = vmatmul.mubr.msk.bf16.gmra.mrb[20].mxu1 %vm84_vm2, %v4550_v47  ;;  %v1187_v45 = vrot.slane %v1185_v44, 7  ;;  %v4376_v47 = vld [vmem:[#allocation2 + $0x1d8] sm:$0x1]  ;;  %v4619_v29 = vshll.u32 %v4378_v28, 16 }
 0x1ef   :  { %8793 = vmatprep.mubr.msk.bf16.mxu1 %vm84_vm2, %v4562_v18  ;;  %v4592_v18 = vrot.slane %v4590_v51, 1  ;;  %v4604_v62 = vrot.slane %v4602_v35, 1  ;;  %v4607_v44 = vshll.u32 %v4376_v47, 16  ;;  %v1205_v51 = vshrl.u32 %v959_v23, 16 }
 0x1f0   :  { %v1190_v63 = vor.u32 %v1188_v2, %v1187_v45  ;;  %v1193_v35 = vshrl.u32 %v957_v5, 16  ;;  %v4614_v47 = vshll.u32 %v4377_v42, 16  ;;  %v4626_v2 = vshll.u32 %v4379_v26, 16 }
 0x1f1   :  { %v4593_v21 = vor.u32 %v4592_v18, %v4588_v4  ;;  %v4609_v45 = vrot.slane %v4607_v44, 1  ;;  %v1179_v34 = vsel %vm987_vm6, %v1171_v40, %v10549_v39  ;;  %v1211_v23 = vrot.slane %v1209_v8, 7  ;;  %v4381_v4 = vld [vmem:[#allocation2 + $0x218] sm:$0xff] }
 0x1f2   :  { %v1191_v24 = vsel %vm987_vm6, %v1183_v38, %v1190_v63  ;;  %v1195_v11 = vrot.slane %v1193_v35, 7  ;;  %v1200_v44 = vshll.u32 %v10257_v57, 16  ;;  %v4628_v63 = vrot.slane %v4626_v2, 1 }
 0x1f3   :  { %v4598_v18 = vsel %vm2183_vm7, %v4593_v21, %v4597_v17  ;;  %v4631_v40 = vshll.u32 %v4380_v12, 16  ;;  %v1212_v38 = vshll.u32 %v10265_v60, 16  ;;  %v4621_v17 = vrot.slane %v4619_v29, 1  ;;  %v961_v21 = vld [vmem:[#allocation2 + $0x1f8] sm:$0x80] }
 0x1f4   :  { %v1221_v57 = vshrl.u32 %v10278_v22, 16  ;;  %v4624_v8 = vshrl.u32 %v4379_v26, 16  ;;  %v4638_v2 = vshll.u32 %v4381_v4, 16  ;;  %v4384_v29 = vld [vmem:[#allocation2 + $0x238] sm:$0x1] }
 0x1f5   :  { %8530 = vmatmul.mubr.msk.bf16.gmra.mrb[88].mxu0 %vm84_vm2, %v1155_v20  ;;  %v4605_v20 = vor.u32 %v4604_v62, %v4600_v48  ;;  %v4382_v62 = vld [vmem:[#allocation2 + $0x220] sm:$0x1]  ;;  %v1229_v48 = vshrl.u32 %v963_v13, 16  ;;  %v967_v26 = vld [vmem:[#allocation2 + $0x240] sm:$0x80] }
 0x1f6   :  { %8533 = vmatprep.mubr.msk.bf16.mxu0 %vm84_vm2, %v1167_v7  ;;  %8794 = vmatmul.mubr.msk.bf16.gmra.mrb[24].mxu1 %vm84_vm2, %v4574_v32  ;;  %v1199_v7 = vrot.slane %v1197_v31, 7  ;;  %v1207_v32 = vrot.slane %v1205_v51, 7  ;;  %v4612_v31 = vshrl.u32 %v4377_v42, 16  ;;  %v4383_v51 = vld [vmem:[#allocation2 + $0x230] sm:$0xff]  ;;  %v4643_v35 = vshll.u32 %v4382_v62, 16 }
 0x1f7   :  { %8797 = vmatprep.mubr.msk.bf16.mxu1 %vm84_vm2, %v4586_v25  ;;  %v4616_v25 = vrot.slane %v4614_v47, 1  ;;  %v4610_v5 = vsel %vm2183_vm7, %v4605_v20, %v4609_v45  ;;  %v10567_v47 = vor.u32 %v1212_v38, %v1211_v23  ;;  %v1233_v20 = vshrl.u32 %v10286_v30, 16 }
 0x1f8   :  { %v10564_v28 = vor.u32 %v1200_v44, %v1199_v7  ;;  %v4629_v60 = vor.u32 %v4628_v63, %v4624_v8  ;;  %v4650_v12 = vshll.u32 %v4383_v51, 16  ;;  %v1217_v42 = vshrl.u32 %v961_v21, 16  ;;  %v4387_v8 = vld [vmem:[#allocation2 + $0x260] sm:$0xff] }
 0x1f9   :  { %v4617_v45 = vor.u32 %v4616_v25, %v4612_v31  ;;  %v1231_v13 = vrot.slane %v1229_v48, 7  ;;  %v1235_v44 = vrot.slane %v1233_v20, 7  ;;  %v1215_v23 = vsel %vm987_vm6, %v1207_v32, %v10567_v47  ;;  %v4385_v31 = vld [vmem:[#allocation2 + $0x248] sm:$0xff] }
 0x1fa   :  { %v1203_v7 = vsel %vm987_vm6, %v1195_v11, %v10564_v28  ;;  %v4640_v62 = vrot.slane %v4638_v2, 1  ;;  %v1224_v63 = vshll.u32 %v10278_v22, 16  ;;  %v4655_v38 = vshll.u32 %v4384_v29, 16  ;;  %v965_v20 = vld [vmem:[#allocation2 + $0x228] sm:$0x80] }
 0x1fb   :  { %v4622_v25 = vsel %vm2183_vm7, %v4617_v45, %v4621_v17  ;;  %v1236_v48 = vshll.u32 %v10286_v30, 16  ;;  %v1219_v32 = vrot.slane %v1217_v42, 7  ;;  %v1253_v17 = vshrl.u32 %v967_v26, 16 }
 0x1fc   :  { %v1245_v22 = vshrl.u32 %v10303_v58, 16  ;;  %v4657_v29 = vrot.slane %v4655_v38, 1  ;;  %v1241_v42 = vshrl.u32 %v965_v20, 16 }
 0x1fd   :  { %8534 = vmatmul.mubr.msk.bf16.gmra.mrb[92].mxu0 %vm84_vm2, %v1179_v34  ;;  %v1223_v34 = vrot.slane %v1221_v57, 7  ;;  %v4636_v57 = vshrl.u32 %v4381_v4, 16  ;;  %v10585_v2 = vor.u32 %v1236_v48, %v1235_v44  ;;  %v4388_v4 = vld [vmem:[#allocation2 + $0x268] sm:$0x1] }
 0x1fe   :  { %8798 = vmatmul.mubr.msk.bf16.gmra.mrb[28].mxu1 %vm84_vm2, %v4598_v18  ;;  %8537 = vmatprep.mubr.msk.bf16.mxu0 %vm84_vm2, %v1191_v24  ;;  %v4633_v24 = vrot.slane %v4631_v40, 1  ;;  %v4645_v18 = vrot.slane %v4643_v35, 1  ;;  %v4652_v40 = vrot.slane %v4650_v12, 1  ;;  %v4648_v35 = vshrl.u32 %v4383_v51, 16  ;;  %v971_v51 = vld [vmem:[#allocation2 + $0x270] sm:$0x80] }
 0x1ff   :  { %8801 = vmatprep.mubr.msk.bf16.mxu1 %vm84_vm2, %v4610_v5  ;;  %v4386_v5 = vld [vmem:[#allocation2 + $0x250] sm:$0x1]  ;;  %v10582_v21 = vor.u32 %v1224_v63, %v1223_v34  ;;  %11531 = vst [vmem:[#allocation17_spill] sm:$0xff] %v10585_v2  ;;  %v4662_v12 = vshll.u32 %v4385_v31, 16  ;;  %v1247_v26 = vrot.slane %v1245_v22, 7  ;;  %v4679_v48 = vshll.u32 %v4388_v4, 16 }
 0x200   :  { %v4634_v11 = vsel %vm2183_vm7, %v4629_v60, %v4633_v24  ;;  %v4667_v45 = vshll.u32 %v4386_v5, 16  ;;  %v1257_v60 = vshrl.u32 %v10311_v0, 16  ;;  %v4641_v24 = vor.u32 %v4640_v62, %v4636_v57  ;;  %v4390_v5 = vld [vmem:[#allocation2 + $0x280] sm:$0x1]  ;;  %v9596_v63 = vld [vmem:[#allocation2 + $0x230] sm:$0xff]  ;;  %v9597_v57 = vld [vmem:[#allocation2 + $0x248] sm:$0xff] }
 0x201   :  { %v4653_v30 = vor.u32 %v4652_v40, %v4648_v35  ;;  %v1227_v34 = vsel %vm987_vm6, %v1219_v32, %v10582_v21  ;;  %v1239_v0 = vsel %vm987_vm6, %v1231_v13, %v10585_v2  ;;  %v4664_v62 = vrot.slane %v4662_v12, 1  ;;  %v4389_v32 = vld [vmem:[#allocation2 + $0x278] sm:$0xff]  ;;  %v4391_v35 = vld [vmem:[#allocation2 + $0x290] sm:$0xff]  ;;  %v5293_v2 = vld [vmem:[#allocation2 + $0x2a0] sm:$0x80] }
 0x202   :  { %v4669_v58 = vrot.slane %v4667_v45, 1  ;;  %v4646_v44 = vsel %vm2183_vm7, %v4641_v24, %v4645_v18  ;;  %v1243_v13 = vrot.slane %v1241_v42, 7  ;;  %v4660_v22 = vshrl.u32 %v4385_v31, 16  ;;  %v969_v24 = vld [vmem:[#allocation2 + $0x258] sm:$0x80] }
 0x203   :  { %v4658_v40 = vsel %vm2183_vm7, %v4653_v30, %v4657_v29  ;;  %v1277_v18 = vshrl.u32 %v971_v51, 16  ;;  %v1269_v45 = vshrl.u32 %v10321_v33, 16  ;;  %v4691_v12 = vshll.u32 %v4390_v5, 16  ;;  %v4392_v31 = vld [vmem:[#allocation2 + $0x298] sm:$0x1] }
 0x204   :  { %v1281_v30 = vshrl.u32 %v10329_v36, 16  ;;  %v4665_v29 = vor.u32 %v4664_v62, %v4660_v22  ;;  %v1265_v42 = vshrl.u32 %v969_v24, 16  ;;  %v975_v5 = vld [vmem:[#allocation2 + $0x2a0] sm:$0x80]  ;;  %v9600_v24 = vld [vmem:[#allocation2 + $0x290] sm:$0xff] }
 0x205   :  { %8538 = vmatmul.mubr.msk.bf16.gmra.mrb[96].mxu0 %vm84_vm2, %v1203_v7  ;;  %v4674_v7 = vshll.u32 %v4387_v8, 16  ;;  %v1271_v51 = vrot.slane %v1269_v45, 7  ;;  %v4693_v33 = vrot.slane %v4691_v12, 1  ;;  %v4395_v45 = vld [vmem:[#allocation2 + $0x2c0] sm:$0xff]  ;;  %v1293_v12 = vshrl.u32 %v9600_v24, 16 }
 0x206   :  { %8541 = vmatprep.mubr.msk.bf16.mxu0 %vm84_vm2, %v1215_v23  ;;  %8802 = vmatmul.mubr.msk.bf16.gmra.mrb[32].mxu1 %vm84_vm2, %v4622_v25  ;;  %v1255_v23 = vrot.slane %v1253_v17, 7  ;;  %v1259_v25 = vrot.slane %v1257_v60, 7  ;;  %v1260_v17 = vshll.u32 %v9597_v57, 16  ;;  %v4672_v60 = vshrl.u32 %v4387_v8, 16 }
 0x207   :  { %8805 = vmatprep.mubr.msk.bf16.mxu1 %vm84_vm2, %v4634_v11  ;;  %v1248_v11 = vshll.u32 %v9596_v63, 16  ;;  %v4676_v38 = vrot.slane %v4674_v7, 1  ;;  %v4686_v7 = vshll.u32 %v4389_v32, 16  ;;  %v1279_v63 = vrot.slane %v1277_v18, 7 }
 0x208   :  { %v1283_v8 = vrot.slane %v1281_v30, 7  ;;  %v4670_v36 = vsel %vm2183_vm7, %v4665_v29, %v4669_v58  ;;  %v4703_v57 = vshll.u32 %v4392_v31, 16  ;;  %v4684_v18 = vshrl.u32 %v4389_v32, 16  ;;  %v4394_v58 = vld [vmem:[#allocation2 + $0x2b0] sm:$0x1] }
 0x209   :  { %v10598_v20 = vor.u32 %v1248_v11, %v1247_v26  ;;  %v4677_v4 = vor.u32 %v4676_v38, %v4672_v60  ;;  %v4688_v62 = vrot.slane %v4686_v7, 1  ;;  %v9598_v11 = vld [vmem:[#allocation2 + $0x260] sm:$0xff]  ;;  %v4696_v30 = vshrl.u32 %v4391_v35, 16  ;;  %v973_v29 = vld [vmem:[#allocation2 + $0x288] sm:$0x80] }
 0x20a   :  { %v1301_v7 = vshrl.u32 %v975_v5, 16  ;;  %v4715_v32 = vshll.u32 %v4394_v58, 16 }
 0x20b   :  { %11532 = vst [vmem:[#allocation18_spill] sm:$0xff] %v10598_v20  ;;  %v1251_v26 = vsel %vm987_vm6, %v1243_v13, %v10598_v20  ;;  %v9599_v13 = vld [vmem:[#allocation2 + $0x278] sm:$0xff]  ;;  %v5285_v20 = vld [vmem:[#allocation2 + $0x240] sm:$0x80] }
 0x20c   :  { %v1284_v22 = vshll.u32 %v9599_v13, 16  ;;  %v1295_v13 = vrot.slane %v1293_v12, 7 }
 0x20d   :  { %8542 = vmatmul.mubr.msk.bf16.gmra.mrb[100].mxu0 %vm84_vm2, %v1227_v34  ;;  %v10601_v34 = vor.u32 %v1260_v17, %v1259_v25  ;;  %v4393_v17 = vld [vmem:[#allocation2 + $0x2a8] sm:$0xff] }
 0x20e   :  { %8545 = vmatprep.mubr.msk.bf16.mxu0 %vm84_vm2, %v1239_v0  ;;  %8806 = vmatmul.mubr.msk.bf16.gmra.mrb[36].mxu1 %vm84_vm2, %v4646_v44  ;;  %v4681_v0 = vrot.slane %v4679_v48, 1  ;;  %v4698_v44 = vshll.u32 %v4391_v35, 16  ;;  %v4710_v31 = vshll.u32 %v4393_v17, 16 }
 0x20f   :  { %8809 = vmatprep.mubr.msk.bf16.mxu1 %vm84_vm2, %v4658_v40  ;;  %11533 = vst [vmem:[#allocation19_spill] sm:$0xff] %v10601_v34  ;;  %v1263_v25 = vsel %vm987_vm6, %v1255_v23, %v10601_v34  ;;  %v1272_v40 = vshll.u32 %v9598_v11, 16  ;;  %v1267_v23 = vrot.slane %v1265_v42, 7  ;;  %v4722_v11 = vshll.u32 %v4395_v45, 16 }
 0x210   :  { %v4682_v38 = vsel %vm2183_vm7, %v4677_v4, %v4681_v0  ;;  %v4700_v48 = vrot.slane %v4698_v44, 1  ;;  %v9601_v4 = vld [vmem:[#allocation2 + $0x2a8] sm:$0xff]  ;;  %v4689_v44 = vor.u32 %v4688_v62, %v4684_v18  ;;  %v1289_v42 = vshrl.u32 %v973_v29, 16 }
 0x211   :  { %v10614_v60 = vor.u32 %v1272_v40, %v1271_v51  ;;  %v1305_v0 = vshrl.u32 %v9601_v4, 16  ;;  %v1303_v40 = vrot.slane %v1301_v7, 7  ;;  %v4712_v5 = vrot.slane %v4710_v31, 1  ;;  %v979_v31 = vld [vmem:[#allocation2 + $0x2d0] sm:$0x80] }
 0x212   :  { %v4694_v62 = vsel %vm2183_vm7, %v4689_v44, %v4693_v33  ;;  %v1308_v58 = vshll.u32 %v9601_v4, 16  ;;  %v1291_v12 = vrot.slane %v1289_v42, 7  ;;  %v4717_v29 = vrot.slane %v4715_v32, 1  ;;  %v9602_v33 = vld [vmem:[#allocation2 + $0x2c0] sm:$0xff]  ;;  %v977_v44 = vld [vmem:[#allocation2 + $0x2b8] sm:$0x80] }
 0x213   :  { %11534 = vst [vmem:[#allocation20_spill] sm:$0xff] %v10614_v60  ;;  %v1275_v51 = vsel %vm987_vm6, %v1267_v23, %v10614_v60  ;;  %v1307_v35 = vrot.slane %v1305_v0, 7  ;;  %v4397_v23 = vld [vmem:[#allocation2 + $0x2d8] sm:$0xff]  ;;  %v4720_v0 = vshrl.u32 %v4395_v45, 16  ;;  %v1325_v32 = vshrl.u32 %v979_v31, 16 }
 0x214   :  { %v4734_v4 = vshll.u32 %v4397_v23, 16 }
 0x215   :  { %8546 = vmatmul.mubr.msk.bf16.gmra.mrb[104].mxu0 %vm84_vm2, %v1251_v26  ;;  %v10616_v26 = vor.u32 %v1284_v22, %v1283_v8  ;;  %v4724_v22 = vrot.slane %v4722_v11, 1  ;;  %v1327_v31 = vrot.slane %v1325_v32, 7 }
 0x216   :  { %8549 = vmatprep.mubr.msk.bf16.mxu0 %vm84_vm2, %v1263_v25  ;;  %8810 = vmatmul.mubr.msk.bf16.gmra.mrb[40].mxu1 %vm84_vm2, %v4670_v36  ;;  %v4701_v25 = vor.u32 %v4700_v48, %v4696_v30  ;;  %v4705_v36 = vrot.slane %v4703_v57, 1  ;;  %v1296_v48 = vshll.u32 %v9600_v24, 16  ;;  %v4708_v30 = vshrl.u32 %v4393_v17, 16 }
 0x217   :  { %8813 = vmatprep.mubr.msk.bf16.mxu1 %vm84_vm2, %v4682_v38  ;;  %11535 = vst [vmem:[#allocation21_spill] sm:$0xff] %v10616_v26  ;;  %v4396_v38 = vld [vmem:[#allocation2 + $0x2c8] sm:$0x1]  ;;  %v1287_v8 = vsel %vm987_vm6, %v1279_v63, %v10616_v26  ;;  %v4399_v63 = vld [vmem:[#allocation2 + $0x2f0] sm:$0xff]  ;;  %v1317_v24 = vshrl.u32 %v9602_v33, 16  ;;  %v1313_v17 = vshrl.u32 %v977_v44, 16 }
 0x218   :  { %v4706_v57 = vsel %vm2183_vm7, %v4701_v25, %v4705_v36  ;;  %v4727_v18 = vshll.u32 %v4396_v38, 16  ;;  %v10628_v7 = vor.u32 %v1296_v48, %v1295_v13  ;;  %v9603_v25 = vld [vmem:[#allocation2 + $0x2d8] sm:$0xff]  ;;  %v4713_v11 = vor.u32 %v4712_v5, %v4708_v30  ;;  %v4398_v38 = vld [vmem:[#allocation2 + $0x2e0] sm:$0x1] }
 0x219   :  { %v1329_v36 = vshrl.u32 %v9603_v25, 16  ;;  %v4746_v42 = vshll.u32 %v4399_v63, 16  ;;  %v1319_v13 = vrot.slane %v1317_v24, 7  ;;  %v4739_v45 = vshll.u32 %v4398_v38, 16 }
 0x21a   :  { %11536 = vst [vmem:[#allocation22_spill] sm:$0xff] %v10628_v7  ;;  %v1299_v48 = vsel %vm987_vm6, %v1291_v12, %v10628_v7  ;;  %v4718_v5 = vsel %vm2183_vm7, %v4713_v11, %v4717_v29  ;;  %v4401_v12 = vld [vmem:[#allocation2 + $0x308] sm:$0xff]  ;;  %v1315_v44 = vrot.slane %v1313_v17, 7  ;;  %v9604_v29 = vld [vmem:[#allocation2 + $0x2f0] sm:$0xff] }
 0x21b   :  { %v1331_v50 = vrot.slane %v1329_v36, 7  ;;  %v4748_v30 = vrot.slane %v4746_v42, 1  ;;  %v4732_v36 = vshrl.u32 %v4397_v23, 16  ;;  %v4741_v11 = vrot.slane %v4739_v45, 1  ;;  %v2119_v7 = vld [vmem:[#allocation2 + $0x8] sm:$0xff] }
 0x21d   :  { %8550 = vmatmul.mubr.msk.bf16.gmra.mrb[108].mxu0 %vm84_vm2, %v1275_v51  ;;  %v10630_v51 = vor.u32 %v1308_v58, %v1307_v35  ;;  %v4736_v58 = vrot.slane %v4734_v4, 1  ;;  %v4744_v4 = vshrl.u32 %v4399_v63, 16 }
 0x21e   :  { %8553 = vmatprep.mubr.msk.bf16.mxu0 %vm84_vm2, %v1287_v8  ;;  %8814 = vmatmul.mubr.msk.bf16.gmra.mrb[44].mxu1 %vm84_vm2, %v4694_v62  ;;  %v4725_v8 = vor.u32 %v4724_v22, %v4720_v0  ;;  %v4729_v62 = vrot.slane %v4727_v18, 1  ;;  %v1320_v22 = vshll.u32 %v9602_v33, 16  ;;  %v1332_v0 = vshll.u32 %v9603_v25, 16  ;;  %v4402_v25 = vld [vmem:[#allocation2 + $0x310] sm:$0x1] }
 0x21f   :  { %8817 = vmatprep.mubr.msk.bf16.mxu1 %vm84_vm2, %v4706_v57  ;;  %11537 = vst [vmem:[#allocation23_spill] sm:$0xff] %v10630_v51  ;;  %v4400_v57 = vld [vmem:[#allocation2 + $0x2f8] sm:$0x1]  ;;  %v1311_v35 = vsel %vm987_vm6, %v1303_v40, %v10630_v51  ;;  %v4403_v40 = vld [vmem:[#allocation2 + $0x320] sm:$0xff]  ;;  %v1341_v33 = vshrl.u32 %v9604_v29, 16  ;;  %v4737_v42 = vor.u32 %v4736_v58, %v4732_v36  ;;  %v4763_v63 = vshll.u32 %v4402_v25, 16 }
 0x220   :  { %v4730_v18 = vsel %vm2183_vm7, %v4725_v8, %v4729_v62  ;;  %v4751_v24 = vshll.u32 %v4400_v57, 16  ;;  %v10642_v38 = vor.u32 %v1320_v22, %v1319_v13  ;;  %v9605_v8 = vld [vmem:[#allocation2 + $0x308] sm:$0xff]  ;;  %v4770_v32 = vshll.u32 %v4403_v40, 16 }
 0x221   :  { %v1353_v62 = vshrl.u32 %v9605_v8, 16  ;;  %v981_v57 = vld [vmem:[#allocation2 + $0x2e8] sm:$0x80]  ;;  %v4404_v51 = vld [vmem:[#allocation2 + $0x328] sm:$0x1]  ;;  %v1343_v13 = vrot.slane %v1341_v33, 7 }
 0x222   :  { %11538 = vst [vmem:[#allocation24_spill] sm:$0xff] %v10642_v38  ;;  %v4753_v17 = vrot.slane %v4751_v24, 1  ;;  %v1323_v22 = vsel %vm987_vm6, %v1315_v44, %v10642_v38  ;;  %v1337_v45 = vshrl.u32 %v981_v57, 16  ;;  %v1344_v24 = vshll.u32 %v9604_v29, 16 }
 0x223   :  { %v4772_v44 = vrot.slane %v4770_v32, 1  ;;  %v4775_v33 = vshll.u32 %v4404_v51, 16  ;;  %v4756_v57 = vshrl.u32 %v4401_v12, 16  ;;  %v2187_v25 = vshll.u32 %v2119_v7, 16 }
 0x224   :  { %v1339_v29 = vrot.slane %v1337_v45, 7 }
 0x225   :  { %8554 = vmatmul.mubr.msk.bf16.gmra.mrb[112].mxu0 %vm84_vm2, %v1299_v48  ;;  %v983_v48 = vld [vmem:[#allocation2 + $0x300] sm:$0x80] }
 0x226   :  { %8557 = vmatprep.mubr.msk.bf16.mxu0 %vm84_vm2, %v1311_v35  ;;  %8818 = vmatmul.mubr.msk.bf16.gmra.mrb[48].mxu1 %vm84_vm2, %v4718_v5  ;;  %v10644_v35 = vor.u32 %v1332_v0, %v1331_v50  ;;  %v4758_v5 = vshll.u32 %v4401_v12, 16  ;;  %v1349_v23 = vshrl.u32 %v983_v48, 16  ;;  %v1355_v50 = vrot.slane %v1353_v62, 7 }
 0x227   :  { %8821 = vmatprep.mubr.msk.bf16.mxu1 %vm84_vm2, %v4730_v18  ;;  %v4749_v18 = vor.u32 %v4748_v30, %v4744_v4  ;;  %v4742_v0 = vsel %vm2183_vm7, %v4737_v42, %v4741_v11  ;;  %v4405_v4 = vld [vmem:[#allocation2 + $0x338] sm:$0xff]  ;;  %v1356_v48 = vshll.u32 %v9605_v8, 16  ;;  %v9606_v11 = vld [vmem:[#allocation2 + $0x320] sm:$0xff]  ;;  %v4777_v8 = vrot.slane %v4775_v33, 1 }
 0x228   :  { %11539 = vst [vmem:[#allocation25_spill] sm:$0xff] %v10644_v35  ;;  %v1335_v58 = vsel %vm987_vm6, %v1327_v31, %v10644_v35  ;;  %v4760_v30 = vrot.slane %v4758_v5, 1  ;;  %v1351_v62 = vrot.slane %v1349_v23, 7  ;;  %v10656_v31 = vor.u32 %v1344_v24, %v1343_v13  ;;  %v4406_v35 = vld [vmem:[#allocation2 + $0x340] sm:$0x1] }
 0x229   :  { %v4754_v36 = vsel %vm2183_vm7, %v4749_v18, %v4753_v17  ;;  %v1365_v42 = vshrl.u32 %v9606_v11, 16  ;;  %v4768_v5 = vshrl.u32 %v4403_v40, 16  ;;  %v4765_v18 = vrot.slane %v4763_v63, 1  ;;  %v985_v17 = vld [vmem:[#allocation2 + $0x318] sm:$0x80] }
 0x22a   :  { %11540 = vst [vmem:[#allocation26_spill] sm:$0xff] %v10656_v31  ;;  %v4782_v51 = vshll.u32 %v4405_v4, 16  ;;  %v2185_v23 = vshrl.u32 %v2119_v7, 16  ;;  %v2189_v12 = vrot.slane %v2187_v25, 1  ;;  %v1347_v24 = vsel %vm987_vm6, %v1339_v29, %v10656_v31 }
 0x22b   :  { %v4773_v32 = vor.u32 %v4772_v44, %v4768_v5  ;;  %v1367_v13 = vrot.slane %v1365_v42, 7  ;;  %v1361_v45 = vshrl.u32 %v985_v17, 16  ;;  %v2121_v44 = vld [vmem:[#allocation2 + $0x20] sm:$0xff]  ;;  %v1368_v33 = vshll.u32 %v9606_v11, 16  ;;  %v5247_v17 = vld [vmem:[#allocation2 + $0x48] sm:$0x80] }
 0x22c   :  { %v2190_v25 = vor.u32 %v2189_v12, %v2185_v23  ;;  %v2199_v5 = vshll.u32 %v2121_v44, 16  ;;  %v5322_v23 = vshrl.u32 %v5247_v17, 16  ;;  %v2125_v12 = vld [vmem:[#allocation2 + $0x50] sm:$0xff] }
 0x22d   :  { %8558 = vmatmul.mubr.msk.bf16.gmra.mrb[116].mxu0 %vm84_vm2, %v1323_v22  ;;  %v2120_v22 = vld [vmem:[#allocation2 + $0x10] sm:$0x1]  ;;  %v4778_v7 = vsel %vm2183_vm7, %v4773_v32, %v4777_v8  ;;  %v10670_v29 = vor.u32 %v1368_v33, %v1367_v13  ;;  %v2126_v33 = vld [vmem:[#allocation2 + $0x58] sm:$0x1] }
 0x22e   :  { %8561 = vmatprep.mubr.msk.bf16.mxu0 %vm84_vm2, %v1335_v58  ;;  %8822 = vmatmul.mubr.msk.bf16.gmra.mrb[52].mxu1 %vm84_vm2, %v4742_v0  ;;  %v10658_v58 = vor.u32 %v1356_v48, %v1355_v50  ;;  %v4761_v0 = vor.u32 %v4760_v30, %v4756_v57  ;;  %v2192_v38 = vshll.u32 %v2120_v22, 16  ;;  %v4784_v50 = vrot.slane %v4782_v51, 1 }
 0x22f   :  { %8825 = vmatprep.mubr.msk.bf16.mxu1 %vm84_vm2, %v4754_v36  ;;  %v5245_v36 = vld [vmem:[#allocation2 + $0x30] sm:$0x80]  ;;  %v4787_v30 = vshll.u32 %v4406_v35, 16  ;;  %v4780_v57 = vshrl.u32 %v4405_v4, 16  ;;  %11542 = vst [vmem:[#allocation28_spill] sm:$0xff] %v10670_v29  ;;  %v2201_v8 = vrot.slane %v2199_v5, 1 }
 0x230   :  { %11541 = vst [vmem:[#allocation27_spill] sm:$0xff] %v10658_v58  ;;  %v1359_v40 = vsel %vm987_vm6, %v1351_v62, %v10658_v58  ;;  %v4766_v63 = vsel %vm2183_vm7, %v4761_v0, %v4765_v18  ;;  %v5310_v48 = vshrl.u32 %v5245_v36, 16  ;;  %v2194_v42 = vrot.slane %v2192_v38, 1  ;;  %v2122_v0 = vld [vmem:[#allocation2 + $0x28] sm:$0x1] }
 0x231   :  { %v1363_v62 = vrot.slane %v1361_v45, 7  ;;  %v4785_v22 = vor.u32 %v4784_v50, %v4780_v57  ;;  %v4789_v35 = vrot.slane %v4787_v30, 1  ;;  %v2124_v18 = vld [vmem:[#allocation2 + $0x40] sm:$0x1]  ;;  %v2204_v4 = vshll.u32 %v2122_v0, 16 }
 0x232   :  { %v5312_v11 = vrot.slane %v5310_v48, 7  ;;  %v2195_v51 = vsel %vm2183_vm7, %v2190_v25, %v2194_v42  ;;  %v2216_v36 = vshll.u32 %v2124_v18, 16  ;;  %v2197_v45 = vshrl.u32 %v2121_v44, 16  ;;  %v2128_v48 = vld [vmem:[#allocation2 + $0x70] sm:$0x1] }
 0x233   :  { %v1371_v32 = vsel %vm987_vm6, %v1363_v62, %v10670_v29  ;;  %v4790_v38 = vsel %vm2183_vm7, %v4785_v22, %v4789_v35  ;;  %v2206_v30 = vrot.slane %v2204_v4, 1  ;;  %v5324_v25 = vrot.slane %v5322_v23, 7  ;;  %v5251_v42 = vld [vmem:[#allocation2 + $0x78] sm:$0x80]  ;;  %v5253_v22 = vld [vmem:[#allocation2 + $0x90] sm:$0x80] }
 0x234   :  { %v5320_v13 = vsel %vm987_vm6, %v5312_v11, %v10154_v1  ;;  %v2202_v50 = vor.u32 %v2201_v8, %v2197_v45  ;;  %v2218_v57 = vrot.slane %v2216_v36, 1  ;;  %v2228_v5 = vshll.u32 %v2126_v33, 16  ;;  %v9607_v35 = vld [vmem:[#allocation9 + $0x1c] sm:$0xf]  ;;  %v2131_v45 = vld [vmem:[#allocation2 + $0x98] sm:$0xff] }
 0x235   :  { %8562 = vmatmul.mubr.msk.bf16.gmra.mrb[120].mxu0 %vm84_vm2, %v1347_v24  ;;  %v5249_v24 = vld [vmem:[#allocation2 + $0x60] sm:$0x80]  ;;  %v2240_v1 = vshll.u32 %v2128_v48, 16  ;;  %v6212_v0 = vsel %vm1438_vm5, %v9607_v35, 0  ;;  %v5346_v18 = vshrl.u32 %v5251_v42, 16  ;;  %v2221_v23 = vshrl.u32 %v2125_v12, 16 }
 0x236   :  { %8565 = vmatprep.mubr.msk.bf16.mxu0 %vm84_vm2, %v1359_v40  ;;  %8826 = vmatmul.mubr.msk.bf16.gmra.mrb[56].mxu1 %vm84_vm2, %v4766_v63  ;;  %v5334_v40 = vshrl.u32 %v5249_v24, 16  ;;  %v3469_v63 = vld [vmem:[#allocation9 + $0xc] sm:$0xf]  ;;  %v2207_v44 = vsel %vm2183_vm7, %v2202_v50, %v2206_v30  ;;  %v2219_v17 = vsel %vm2183_vm7, %v10391_v54, %v2218_v57  ;;  %v11543_v24 = vshrl.u32 %v10380_v61, 16  ;;  %v2129_v8 = vld [vmem:[#allocation2 + $0x80] sm:$0xff] }
 0x237   :  { %8829 = vmatprep.mubr.msk.bf16.mxu1 %vm84_vm2, %v4778_v7  ;;  %v2223_v7 = vshll.u32 %v2125_v12, 16  ;;  %9547 = vmatprep.subr.msk.bf16.mxu0 %vm1438_vm5, %v3469_v63  ;;  %v3567_v4 = vsel %vm1438_vm5, %v3469_v63, 0  ;;  %v5358_v54 = vshrl.u32 %v5253_v22, 16  ;;  %v2230_v50 = vrot.slane %v2228_v5, 1  ;;  %v2130_v33 = vld [vmem:[#allocation2 + $0x88] sm:$0x1] }
 0x238   :  { %v5336_v62 = vrot.slane %v5334_v40, 7  ;;  %v10701_v40 = vld [vmem:[#allocation2 + $0xb0] sm:$0xff]  ;;  %v2242_v30 = vrot.slane %v2240_v1, 1  ;;  %v11545_v12 = vshll.u32 %v10380_v61, 16  ;;  %v2132_v57 = vld [vmem:[#allocation2 + $0xa0] sm:$0x1] }
 0x239   :  { %v2225_v11 = vrot.slane %v2223_v7, 1  ;;  %v2247_v7 = vshll.u32 %v2129_v8, 16  ;;  %v5374_v42 = vshrl.u32 %v10701_v40, 16  ;;  %v11546_v22 = vshll.u32 %v10414_v37, 16  ;;  %v5255_v5 = vld [vmem:[#allocation2 + $0xa8] sm:$0x80] }
 0x23a   :  { %v5344_v36 = vsel %vm987_vm6, %v5336_v62, %v10299_v53  ;;  %v5348_v53 = vrot.slane %v5346_v18, 7  ;;  %v5360_v62 = vrot.slane %v5358_v54, 7  ;;  %v2252_v1 = vshll.u32 %v2130_v33, 16  ;;  %v5257_v35 = vld [vmem:[#allocation2 + $0xc0] sm:$0x80] }
 0x23b   :  { %v2226_v63 = vor.u32 %v2225_v11, %v2221_v23  ;;  %v2243_v11 = vsel %vm2183_vm7, %v10428_v59, %v2242_v30  ;;  %v2249_v18 = vrot.slane %v2247_v7, 1  ;;  %v5382_v23 = vshrl.u32 %v5257_v35, 16  ;;  %v5269_v29 = vld [vmem:[#allocation2 + $0x150] sm:$0x80] }
 0x23c   :  { %v11547_v59 = vshrl.u32 %v10446_v41, 16  ;;  %v2254_v33 = vrot.slane %v2252_v1, 1 }
 0x23d   :  { %8566 = vmatmul.mubr.msk.bf16.gmra.mrb[124].mxu0 %vm84_vm2, %v1371_v32  ;;  %v5352_v32 = vrot.slane %v11543_v24, 7  ;;  %v5370_v24 = vshrl.u32 %v5255_v5, 16 }
 0x23e   :  { %8830 = vmatmul.mubr.msk.bf16.gmra.mrb[60].mxu1 %vm84_vm2, %v4790_v38  ;;  %8571 = vmatprep.mubr.msk.bf16.mxu0 %vm84_vm2, %v2195_v51  ;;  %v5332_v51 = vsel %vm987_vm6, %v5324_v25, %v10238_v27  ;;  %v10693_v38 = vld [vmem:[#allocation9 + $0x20] sm:$0xf]  ;;  %v2259_v25 = vshll.u32 %v2131_v45, 16  ;;  %v5388_v54 = vrot.slane %v11547_v59, 7  ;;  %v10738_v59 = vld [vmem:[#allocation2 + $0x110] sm:$0xff] }
 0x23f   :  { %8835 = vmatprep.mubr.msk.bf16.mxu1 %vm84_vm2, %v5320_v13  ;;  %v11544_v13 = vshrl.u32 %v10414_v37, 16  ;;  %v5355_v48 = vor.u32 %v5352_v32, %v11545_v12  ;;  %v5376_v32 = vrot.slane %v5374_v42, 7 }
 0x241   :  { %v5364_v27 = vrot.slane %v11544_v13, 7  ;;  %v5356_v61 = vsel %vm987_vm6, %v5348_v53, %v5355_v48  ;;  %v10721_v13 = vld [vmem:[#allocation2 + $0xe0] sm:$0xff]  ;;  %v2134_v53 = vld [vmem:[#allocation2 + $0xb8] sm:$0x1] }
 0x245   :  { %8572 = vmatmul.mubr.msk.bf16.vlgmr.msra.gmra.mrb[64].mxu0 %vm84_vm2, %v2207_v44  ;;  %v5367_v44 = vor.u32 %v5364_v27, %v11546_v22  ;;  %v2257_v27 = vshrl.u32 %v2131_v45, 16  ;;  %v5384_v22 = vrot.slane %v5382_v23, 7  ;;  %v5259_v45 = vld [vmem:[#allocation2 + $0xd8] sm:$0x80] }
 0x246   :  { %8575 = vmatprep.mubr.msk.bf16.mxu0 %vm84_vm2, %v2219_v17  ;;  %8836 = vmatmul.mubr.msk.bf16.vlgmr.msra.gmra.mrb[0].mxu1 %vm84_vm2, %v5332_v51  ;;  %v2264_v17 = vshll.u32 %v2132_v57, 16  ;;  %v2261_v51 = vrot.slane %v2259_v25, 1  ;;  %v2136_v25 = vld [vmem:[#allocation2 + $0xd0] sm:$0x1] }
 0x247   :  { %8900 = vmatpush3.bf16.msra.mxu1 %v6212_v0  ;;  %8839 = vmatprep.mubr.msk.bf16.mxu1 %vm84_vm2, %v5344_v36  ;;  %v2231_v0 = vsel %vm2183_vm7, %v2226_v63, %v2230_v50  ;;  %v5368_v37 = vsel %vm987_vm6, %v5360_v62, %v5367_v44  ;;  %v2245_v36 = vshrl.u32 %v2129_v8, 16  ;;  %v5377_v63 = vshll.u32 %v10701_v40, 16  ;;  %v10725_v50 = vld [vmem:[#allocation2 + $0xf8] sm:$0xff] }
 0x248   :  { %8636 = vmatpush3.bf16.msra.mxu0 %v3567_v4  ;;  %9552 = vmatprep.subr.msk.bf16.mxu1 %vm1438_vm5, %v10693_v38  ;;  %v2135_v4 = vld [vmem:[#allocation2 + $0xc8] sm:$0xff]  ;;  %v2266_v7 = vrot.slane %v2264_v17, 1  ;;  %v2262_v48 = vor.u32 %v2261_v51, %v2257_v27  ;;  %v5372_v8 = vrot.slane %v5370_v24, 7  ;;  %v5398_v62 = vshrl.u32 %v10721_v13, 16 }
 0x249   :  { %v2250_v30 = vor.u32 %v2249_v18, %v2245_v36  ;;  %v2283_v12 = vshll.u32 %v2135_v4, 16  ;;  %v5379_v57 = vor.u32 %v5377_v63, %v5376_v32  ;;  %v11548_v44 = vshll.u32 %v10446_v41, 16 }
 0x24a   :  { %v5410_v40 = vshrl.u32 %v10725_v50, 16  ;;  %v2273_v35 = vrot.slane %v5377_v63, 1  ;;  %v2288_v17 = vshll.u32 %v2136_v25, 16  ;;  %v5394_v24 = vshrl.u32 %v5259_v45, 16  ;;  %v5265_v45 = vld [vmem:[#allocation2 + $0x120] sm:$0x80] }
 0x24b   :  { %v5391_v5 = vor.u32 %v5388_v54, %v11548_v44  ;;  %v2255_v1 = vsel %vm2183_vm7, %v2250_v30, %v2254_v33  ;;  %v2285_v18 = vrot.slane %v2283_v12, 1  ;;  %v5380_v51 = vsel %vm987_vm6, %v5372_v8, %v5379_v57  ;;  %v10742_v30 = vld [vmem:[#allocation2 + $0x128] sm:$0xff] }
 0x24c   :  { %v5400_v32 = vrot.slane %v5398_v62, 7  ;;  %v5412_v23 = vrot.slane %v5410_v40, 7  ;;  %v2274_v54 = vor.u32 %v5374_v42, %v2273_v35  ;;  %v5401_v63 = vshll.u32 %v10721_v13, 16  ;;  %v2138_v8 = vld [vmem:[#allocation2 + $0xe8] sm:$0x1] }
 0x24d   :  { %8576 = vmatmul.mubr.msk.bf16.gmra.mrb[68].mxu0 %vm84_vm2, %v2231_v0  ;;  %v2276_v0 = vshll.u32 %v2134_v53, 16  ;;  %v5392_v41 = vsel %vm987_vm6, %v5384_v22, %v5391_v5  ;;  %v5413_v53 = vshll.u32 %v10725_v50, 16  ;;  %v5396_v12 = vrot.slane %v5394_v24, 7  ;;  %v5263_v44 = vld [vmem:[#allocation2 + $0x108] sm:$0x80] }
 0x24e   :  { %8579 = vmatprep.mubr.msk.bf16.mxu0 %vm84_vm2, %v2243_v11  ;;  %8840 = vmatmul.mubr.msk.bf16.gmra.mrb[4].mxu1 %vm84_vm2, %v5356_v61  ;;  %v5261_v11 = vld [vmem:[#allocation2 + $0xf0] sm:$0x80]  ;;  %v2267_v61 = vsel %vm2183_vm7, %v2262_v48, %v2266_v7  ;;  %v2290_v7 = vrot.slane %v2288_v17, 1  ;;  %v5403_v48 = vor.u32 %v5401_v63, %v5400_v32  ;;  %v5422_v57 = vshrl.u32 %v10738_v59, 16 }
 0x24f   :  { %8843 = vmatprep.mubr.msk.bf16.mxu1 %vm84_vm2, %v5368_v37  ;;  %v2281_v37 = vshrl.u32 %v2135_v4, 16  ;;  %v5406_v36 = vshrl.u32 %v5261_v11, 16  ;;  %v2278_v27 = vrot.slane %v2276_v0, 1  ;;  %v2140_v4 = vld [vmem:[#allocation2 + $0x100] sm:$0x1]  ;;  %v5415_v22 = vor.u32 %v5413_v53, %v5412_v23 }
 0x250   :  { %v5434_v42 = vshrl.u32 %v10742_v30, 16  ;;  %v2297_v0 = vrot.slane %v5401_v63, 1  ;;  %v2300_v11 = vshll.u32 %v2138_v8, 16  ;;  %v2309_v17 = vrot.slane %v5413_v53, 1  ;;  %v2144_v53 = vld [vmem:[#allocation2 + $0x130] sm:$0x1] }
 0x251   :  { %v2286_v33 = vor.u32 %v2285_v18, %v2281_v37  ;;  %v5408_v25 = vrot.slane %v5406_v36, 7  ;;  %v2279_v5 = vsel %vm2183_vm7, %v2274_v54, %v2278_v27  ;;  %v5404_v18 = vsel %vm987_vm6, %v5396_v12, %v5403_v48  ;;  %v10755_v36 = vld [vmem:[#allocation2 + $0x140] sm:$0xff]  ;;  %v10759_v54 = vld [vmem:[#allocation2 + $0x158] sm:$0xff] }
 0x252   :  { %v5425_v32 = vshll.u32 %v10738_v59, 16  ;;  %v5436_v37 = vrot.slane %v5434_v42, 7  ;;  %v5437_v23 = vshll.u32 %v10742_v30, 16  ;;  %v2298_v27 = vor.u32 %v5398_v62, %v2297_v0 }
 0x253   :  { %v2291_v35 = vsel %vm2183_vm7, %v2286_v33, %v2290_v7  ;;  %v5416_v24 = vsel %vm987_vm6, %v5408_v25, %v5415_v22  ;;  %v2302_v63 = vrot.slane %v2300_v11, 1  ;;  %v2142_v7 = vld [vmem:[#allocation2 + $0x118] sm:$0x1]  ;;  %v2310_v12 = vor.u32 %v5410_v40, %v2309_v17 }
 0x254   :  { %v5439_v22 = vor.u32 %v5437_v23, %v5436_v37 }
 0x255   :  { %8580 = vmatmul.mubr.msk.bf16.gmra.mrb[72].mxu0 %vm84_vm2, %v2255_v1  ;;  %v2312_v1 = vshll.u32 %v2140_v4, 16  ;;  %v5446_v4 = vshrl.u32 %v10755_v36, 16  ;;  %v2303_v62 = vsel %vm2183_vm7, %v2298_v27, %v2302_v63  ;;  %v5449_v63 = vshll.u32 %v10755_v36, 16 }
 0x256   :  { %8583 = vmatprep.mubr.msk.bf16.mxu0 %vm84_vm2, %v2267_v61  ;;  %8844 = vmatmul.mubr.msk.bf16.gmra.mrb[8].mxu1 %vm84_vm2, %v5380_v51  ;;  %v5418_v61 = vshrl.u32 %v5263_v44, 16  ;;  %v5424_v51 = vrot.slane %v5422_v57, 7  ;;  %v2321_v44 = vrot.slane %v5425_v32, 1 }
 0x257   :  { %8847 = vmatprep.mubr.msk.bf16.mxu1 %vm84_vm2, %v5392_v41  ;;  %v5430_v41 = vshrl.u32 %v5265_v45, 16  ;;  %v2314_v33 = vrot.slane %v2312_v1, 1  ;;  %v5458_v45 = vshrl.u32 %v10759_v54, 16  ;;  %v5448_v1 = vrot.slane %v5446_v4, 7 }
 0x258   :  { %v5420_v48 = vrot.slane %v5418_v61, 7  ;;  %v5427_v8 = vor.u32 %v5425_v32, %v5424_v51  ;;  %v2322_v61 = vor.u32 %v5422_v57, %v2321_v44  ;;  %v5454_v51 = vshrl.u32 %v5269_v29, 16  ;;  %v2146_v57 = vld [vmem:[#allocation2 + $0x148] sm:$0x1]  ;;  %v2148_v29 = vld [vmem:[#allocation2 + $0x160] sm:$0x1] }
 0x259   :  { %v5432_v25 = vrot.slane %v5430_v41, 7  ;;  %v2315_v40 = vsel %vm2183_vm7, %v2310_v12, %v2314_v33  ;;  %v5460_v32 = vrot.slane %v5458_v45, 7  ;;  %v10774_v41 = vld [vmem:[#allocation2 + $0x170] sm:$0xff]  ;;  %v10778_v33 = vld [vmem:[#allocation2 + $0x188] sm:$0xff]  ;;  %v5451_v12 = vor.u32 %v5449_v63, %v5448_v1  ;;  %v5273_v44 = vld [vmem:[#allocation2 + $0x180] sm:$0x80] }
 0x25a   :  { %v5428_v0 = vsel %vm987_vm6, %v5420_v48, %v5427_v8  ;;  %v11513_v48 = vshrl.u32 %v10774_v41, 16  ;;  %v5456_v8 = vrot.slane %v5454_v51, 7 }
 0x25b   :  { %v5440_v17 = vsel %vm987_vm6, %v5432_v25, %v5439_v22  ;;  %v5271_v22 = vld [vmem:[#allocation2 + $0x168] sm:$0x80] }
 0x25c   :  { %v5472_v51 = vrot.slane %v11513_v48, 7 }
 0x25d   :  { %8584 = vmatmul.mubr.msk.bf16.gmra.mrb[76].mxu0 %vm84_vm2, %v2279_v5  ;;  %v5267_v5 = vld [vmem:[#allocation2 + $0x138] sm:$0x80] }
 0x25e   :  { %8587 = vmatprep.mubr.msk.bf16.mxu0 %vm84_vm2, %v2291_v35  ;;  %8848 = vmatmul.mubr.msk.bf16.gmra.mrb[12].mxu1 %vm84_vm2, %v5404_v18  ;;  %v2324_v35 = vshll.u32 %v2142_v7, 16  ;;  %v2333_v18 = vrot.slane %v5437_v23, 1  ;;  %v5442_v11 = vshrl.u32 %v5267_v5, 16  ;;  %v5461_v7 = vshll.u32 %v10759_v54, 16 }
 0x25f   :  { %8851 = vmatprep.mubr.msk.bf16.mxu1 %vm84_vm2, %v5416_v24  ;;  %v2336_v24 = vshll.u32 %v2144_v53, 16  ;;  %v5482_v5 = vshrl.u32 %v10778_v33, 16 }
 0x260   :  { %v2326_v37 = vrot.slane %v2324_v35, 1  ;;  %v2334_v23 = vor.u32 %v5434_v42, %v2333_v18  ;;  %v5444_v53 = vrot.slane %v5442_v11, 7  ;;  %v5463_v25 = vor.u32 %v5461_v7, %v5460_v32  ;;  %v2151_v11 = vld [vmem:[#allocation2 + $0x1b8] sm:$0xff] }
 0x261   :  { %v2338_v27 = vrot.slane %v2336_v24, 1  ;;  %v2345_v18 = vrot.slane %v5449_v63, 1  ;;  %v2348_v24 = vshll.u32 %v2146_v57, 16  ;;  %v5478_v32 = vshrl.u32 %v5273_v44, 16  ;;  %v2152_v44 = vld [vmem:[#allocation2 + $0x1c0] sm:$0x1] }
 0x262   :  { %v2327_v42 = vsel %vm2183_vm7, %v2322_v61, %v2326_v37  ;;  %v5452_v1 = vsel %vm987_vm6, %v5444_v53, %v5451_v12  ;;  %v5464_v61 = vsel %vm987_vm6, %v5456_v8, %v5463_v25  ;;  %v5484_v37 = vrot.slane %v5482_v5, 7 }
 0x263   :  { %v2339_v35 = vsel %vm2183_vm7, %v2334_v23, %v2338_v27  ;;  %v5473_v23 = vshll.u32 %v10774_v41, 16  ;;  %v5275_v27 = vld [vmem:[#allocation2 + $0x198] sm:$0x80]  ;;  %v2379_v53 = vshll.u32 %v2151_v11, 16  ;;  %v2346_v12 = vor.u32 %v5446_v4, %v2345_v18  ;;  %v5277_v4 = vld [vmem:[#allocation2 + $0x1e0] sm:$0x80] }
 0x264   :  { %v2350_v57 = vrot.slane %v2348_v24, 1  ;;  %v2377_v18 = vshrl.u32 %v2151_v11, 16  ;;  %v5502_v11 = vshrl.u32 %v5277_v4, 16  ;;  %v5281_v4 = vld [vmem:[#allocation2 + $0x210] sm:$0x80] }
 0x265   :  { %8588 = vmatmul.mubr.msk.bf16.gmra.mrb[80].mxu0 %vm84_vm2, %v2303_v62  ;;  %v2357_v62 = vrot.slane %v5461_v7, 1  ;;  %v10797_v7 = vld [vmem:[#allocation2 + $0x1e8] sm:$0xff]  ;;  %v5475_v5 = vor.u32 %v5473_v23, %v5472_v51  ;;  %v2381_v24 = vrot.slane %v2379_v53, 1  ;;  %v2369_v60 = vrot.slane %v5473_v23, 1  ;;  %v10816_v53 = vld [vmem:[#allocation2 + $0x218] sm:$0xff] }
 0x266   :  { %8591 = vmatprep.mubr.msk.bf16.mxu0 %vm84_vm2, %v2315_v40  ;;  %8852 = vmatmul.mubr.msk.bf16.gmra.mrb[16].mxu1 %vm84_vm2, %v5428_v0  ;;  %v2360_v40 = vshll.u32 %v2148_v29, 16  ;;  %v10785_v0 = vld [vmem:[#allocation2 + $0x1a0] sm:$0xff]  ;;  %v5506_v58 = vshrl.u32 %v10797_v7, 16  ;;  %v2351_v26 = vsel %vm2183_vm7, %v2346_v12, %v2350_v57  ;;  %v11549_v12 = vshrl.u32 %v10774_v41, 16 }
 0x267   :  { %8855 = vmatprep.mubr.msk.bf16.mxu1 %vm84_vm2, %v5440_v17  ;;  %v5466_v17 = vshrl.u32 %v5271_v22, 16  ;;  %v5494_v63 = vshrl.u32 %v10785_v0, 16  ;;  %v5485_v22 = vshll.u32 %v10778_v33, 16  ;;  %v2358_v8 = vor.u32 %v5458_v45, %v2357_v62 }
 0x268   :  { %v2362_v29 = vrot.slane %v2360_v40, 1  ;;  %v5497_v48 = vshll.u32 %v10785_v0, 16  ;;  %v2384_v40 = vshll.u32 %v2152_v44, 16  ;;  %v2370_v57 = vor.u32 %v11549_v12, %v2369_v60 }
 0x269   :  { %v5468_v25 = vrot.slane %v5466_v17, 7  ;;  %v5496_v31 = vrot.slane %v5494_v63, 7  ;;  %v2153_v17 = vld [vmem:[#allocation2 + $0x1d0] sm:$0xff] }
 0x26a   :  { %v2363_v45 = vsel %vm2183_vm7, %v2358_v8, %v2362_v29  ;;  %v2386_v63 = vrot.slane %v2384_v40, 1  ;;  %v2391_v44 = vshll.u32 %v2153_v17, 16  ;;  %v2154_v8 = vld [vmem:[#allocation2 + $0x1d8] sm:$0x1] }
 0x26b   :  { %v5476_v62 = vsel %vm987_vm6, %v5468_v25, %v5475_v5  ;;  %v5504_v5 = vrot.slane %v5502_v11, 7  ;;  %v2389_v11 = vshrl.u32 %v2153_v17, 16  ;;  %v2160_v17 = vld [vmem:[#allocation2 + $0x220] sm:$0x1] }
 0x26d   :  { %8592 = vmatmul.mubr.msk.bf16.gmra.mrb[84].mxu0 %vm84_vm2, %v2327_v42  ;;  %v5480_v42 = vrot.slane %v5478_v32, 7  ;;  %v5508_v32 = vrot.slane %v5506_v58, 7 }
 0x26e   :  { %8595 = vmatprep.mubr.msk.bf16.mxu0 %vm84_vm2, %v2339_v35  ;;  %8856 = vmatmul.mubr.msk.bf16.gmra.mrb[20].mxu1 %vm84_vm2, %v5452_v1  ;;  %v2150_v35 = vld [vmem:[#allocation2 + $0x178] sm:$0x1]  ;;  %v5487_v1 = vor.u32 %v5485_v22, %v5484_v37  ;;  %v10813_v37 = vld [vmem:[#allocation2 + $0x200] sm:$0xff]  ;;  %v5509_v22 = vshll.u32 %v10797_v7, 16 }
 0x26f   :  { %8859 = vmatprep.mubr.msk.bf16.mxu1 %vm84_vm2, %v5464_v61  ;;  %v5490_v61 = vshrl.u32 %v5275_v27, 16  ;;  %v2372_v34 = vshll.u32 %v2150_v35, 16  ;;  %v5499_v27 = vor.u32 %v5497_v48, %v5496_v31  ;;  %v5518_v25 = vshrl.u32 %v10813_v37, 16  ;;  %v2156_v35 = vld [vmem:[#allocation2 + $0x1f0] sm:$0x1] }
 0x270   :  { %v5488_v51 = vsel %vm987_vm6, %v5480_v42, %v5487_v1  ;;  %v5511_v42 = vor.u32 %v5509_v22, %v5508_v32  ;;  %v5279_v1 = vld [vmem:[#allocation2 + $0x1f8] sm:$0x80]  ;;  %v5530_v31 = vshrl.u32 %v10816_v53, 16  ;;  %v2408_v40 = vshll.u32 %v2156_v35, 16 }
 0x271   :  { %v5492_v23 = vrot.slane %v5490_v61, 7  ;;  %v2374_v29 = vrot.slane %v2372_v34, 1  ;;  %v2393_v34 = vrot.slane %v2391_v44, 1  ;;  %v5526_v32 = vshrl.u32 %v5281_v4, 16  ;;  %v2158_v44 = vld [vmem:[#allocation2 + $0x208] sm:$0x1] }
 0x273   :  { %v5500_v48 = vsel %vm987_vm6, %v5492_v23, %v5499_v27  ;;  %v2375_v60 = vsel %vm2183_vm7, %v2370_v57, %v2374_v29  ;;  %v5532_v23 = vrot.slane %v5530_v31, 7  ;;  %v10830_v27 = vld [vmem:[#allocation2 + $0x230] sm:$0xff]  ;;  %v2394_v12 = vor.u32 %v2393_v34, %v2389_v11 }
 0x274   :  { %11550 = vst [vmem:[#allocation29_spill] sm:$0xff] %v10830_v27  ;;  %v5542_v35 = vshrl.u32 %v10830_v27, 16 }
 0x275   :  { %8596 = vmatmul.mubr.msk.bf16.gmra.mrb[88].mxu0 %vm84_vm2, %v2351_v26  ;;  %v2382_v26 = vor.u32 %v2381_v24, %v2377_v18  ;;  %v2396_v18 = vshll.u32 %v2154_v8, 16  ;;  %v2405_v24 = vrot.slane %v5509_v22, 1  ;;  %v5533_v22 = vshll.u32 %v10816_v53, 16 }
 0x276   :  { %8599 = vmatprep.mubr.msk.bf16.mxu0 %vm84_vm2, %v2363_v45  ;;  %8860 = vmatmul.mubr.msk.bf16.gmra.mrb[24].mxu1 %vm84_vm2, %v5476_v62  ;;  %v5514_v45 = vshrl.u32 %v5279_v1, 16  ;;  %v5520_v62 = vrot.slane %v5518_v25, 7  ;;  %v2410_v8 = vrot.slane %v2408_v40, 1  ;;  %v5528_v1 = vrot.slane %v5526_v32, 7 }
 0x277   :  { %8863 = vmatprep.mubr.msk.bf16.mxu1 %vm84_vm2, %v5488_v51  ;;  %v2387_v61 = vsel %vm2183_vm7, %v2382_v26, %v2386_v63  ;;  %v5512_v51 = vsel %vm987_vm6, %v5504_v5, %v5511_v42  ;;  %v5521_v26 = vshll.u32 %v10813_v37, 16  ;;  %v10834_v63 = vld [vmem:[#allocation2 + $0x248] sm:$0xff]  ;;  %v2398_v57 = vrot.slane %v2396_v18, 1 }
 0x278   :  { %11551 = vst [vmem:[#allocation30_spill] sm:$0xff] %v10834_v63  ;;  %v2406_v29 = vor.u32 %v5506_v58, %v2405_v24  ;;  %v5516_v5 = vrot.slane %v5514_v45, 7  ;;  %v5554_v4 = vshrl.u32 %v10834_v63, 16  ;;  %v2429_v58 = vrot.slane %v5533_v22, 1 }
 0x279   :  { %v5523_v42 = vor.u32 %v5521_v26, %v5520_v62  ;;  %v2399_v34 = vsel %vm2183_vm7, %v2394_v12, %v2398_v57  ;;  %v2432_v18 = vshll.u32 %v2160_v17, 16  ;;  %v5544_v62 = vrot.slane %v5542_v35, 7 }
 0x27a   :  { %v2411_v24 = vsel %vm2183_vm7, %v2406_v29, %v2410_v8  ;;  %v5550_v32 = vshrl.u32 %v5285_v20, 16  ;;  %v5545_v29 = vshll.u32 %v10830_v27, 16 }
 0x27b   :  { %v5524_v40 = vsel %vm987_vm6, %v5516_v5, %v5523_v42  ;;  %v2434_v8 = vrot.slane %v2432_v18, 1  ;;  %v5557_v5 = vshll.u32 %v10834_v63, 16  ;;  %v10862_v63 = vld [vmem:[#allocation2 + $0x290] sm:$0xff] }
 0x27c   :  { %v5547_v17 = vor.u32 %v5545_v29, %v5544_v62  ;;  %11554 = vst [vmem:[#allocation33_spill] sm:$0xff] %v10862_v63 }
 0x27d   :  { %8600 = vmatmul.mubr.msk.bf16.gmra.mrb[92].mxu0 %vm84_vm2, %v2375_v60  ;;  %v2417_v60 = vrot.slane %v5521_v26, 1  ;;  %v10846_v26 = vld [vmem:[#allocation2 + $0x260] sm:$0xff]  ;;  %v2453_v18 = vrot.slane %v5557_v5, 1 }
 0x27e   :  { %8864 = vmatmul.mubr.msk.bf16.gmra.mrb[28].mxu1 %vm84_vm2, %v5500_v48  ;;  %8603 = vmatprep.mubr.msk.bf16.mxu0 %vm84_vm2, %v2387_v61  ;;  %v5535_v48 = vor.u32 %v5533_v22, %v5532_v23  ;;  %v5283_v61 = vld [vmem:[#allocation2 + $0x228] sm:$0x80]  ;;  %v5556_v23 = vrot.slane %v5554_v4, 7  ;;  %11552 = vst [vmem:[#allocation31_spill] sm:$0xff] %v10846_v26  ;;  %v10850_v22 = vld [vmem:[#allocation2 + $0x278] sm:$0xff]  ;;  %v5566_v20 = vshrl.u32 %v10846_v26, 16 }
 0x27f   :  { %8867 = vmatprep.mubr.msk.bf16.mxu1 %vm84_vm2, %v5512_v51  ;;  %v2420_v51 = vshll.u32 %v2158_v44, 16  ;;  %v5538_v45 = vshrl.u32 %v5283_v61, 16  ;;  %v2418_v12 = vor.u32 %v5518_v25, %v2417_v60  ;;  %11553 = vst [vmem:[#allocation32_spill] sm:$0xff] %v10850_v22  ;;  %v2430_v44 = vor.u32 %v5530_v31, %v2429_v58  ;;  %v2162_v61 = vld [vmem:[#allocation2 + $0x238] sm:$0x1] }
 0x280   :  { %v5536_v11 = vsel %vm987_vm6, %v5528_v1, %v5535_v48  ;;  %v5552_v1 = vrot.slane %v5550_v32, 7  ;;  %v5559_v48 = vor.u32 %v5557_v5, %v5556_v23  ;;  %v5578_v25 = vshrl.u32 %v10850_v22, 16 }
 0x281   :  { %v2422_v57 = vrot.slane %v2420_v51, 1  ;;  %v5540_v42 = vrot.slane %v5538_v45, 7  ;;  %v5289_v51 = vld [vmem:[#allocation2 + $0x270] sm:$0x80]  ;;  %v2441_v31 = vrot.slane %v5545_v29, 1  ;;  %v2444_v58 = vshll.u32 %v2162_v61, 16 }
 0x282   :  { %v5568_v32 = vrot.slane %v5566_v20, 7  ;;  %v5560_v23 = vsel %vm987_vm6, %v5552_v1, %v5559_v48  ;;  %v5569_v29 = vshll.u32 %v10846_v26, 16  ;;  %v2166_v61 = vld [vmem:[#allocation2 + $0x268] sm:$0x1]  ;;  %v2168_v1 = vld [vmem:[#allocation2 + $0x280] sm:$0x1] }
 0x283   :  { %v2423_v60 = vsel %vm2183_vm7, %v2418_v12, %v2422_v57  ;;  %v5548_v45 = vsel %vm987_vm6, %v5540_v42, %v5547_v17  ;;  %v5574_v12 = vshrl.u32 %v5289_v51, 16  ;;  %v5580_v57 = vrot.slane %v5578_v25, 7 }
 0x284   :  { %v2446_v5 = vrot.slane %v2444_v58, 1  ;;  %v2454_v42 = vor.u32 %v5554_v4, %v2453_v18  ;;  %v5581_v17 = vshll.u32 %v10850_v22, 16  ;;  %v5590_v48 = vshrl.u32 %v10862_v63, 16  ;;  %v5301_v22 = vld [vmem:[#allocation2 + $0x300] sm:$0x80] }
 0x285   :  { %8604 = vmatmul.mubr.msk.bf16.gmra.mrb[96].mxu0 %vm84_vm2, %v2399_v34  ;;  %v2164_v34 = vld [vmem:[#allocation2 + $0x250] sm:$0x1]  ;;  %v5576_v51 = vrot.slane %v5574_v12, 7  ;;  %v2465_v26 = vrot.slane %v5569_v29, 1  ;;  %v2468_v27 = vshll.u32 %v2166_v61, 16  ;;  %v5598_v12 = vshrl.u32 %v5293_v2, 16 }
 0x286   :  { %8607 = vmatprep.mubr.msk.bf16.mxu0 %vm84_vm2, %v2411_v24  ;;  %8868 = vmatmul.mubr.msk.bf16.gmra.mrb[32].mxu1 %vm84_vm2, %v5524_v40  ;;  %v5287_v24 = vld [vmem:[#allocation2 + $0x258] sm:$0x80]  ;;  %v2435_v40 = vsel %vm2183_vm7, %v2430_v44, %v2434_v8  ;;  %v2456_v62 = vshll.u32 %v2164_v34, 16  ;;  %v10866_v44 = vld [vmem:[#allocation2 + $0x2a8] sm:$0xff]  ;;  %v2442_v8 = vor.u32 %v5542_v35, %v2441_v31  ;;  %v2477_v4 = vrot.slane %v5581_v17, 1 }
 0x287   :  { %8871 = vmatprep.mubr.msk.bf16.mxu1 %vm84_vm2, %v5536_v11  ;;  %v5562_v11 = vshrl.u32 %v5287_v24, 16  ;;  %11555 = vst [vmem:[#allocation34_spill] sm:$0xff] %v10866_v44  ;;  %v2480_v31 = vshll.u32 %v2168_v1, 16 }
 0x288   :  { %v2458_v34 = vrot.slane %v2456_v62, 1  ;;  %v2447_v35 = vsel %vm2183_vm7, %v2442_v8, %v2446_v5  ;;  %v2466_v8 = vor.u32 %v5566_v20, %v2465_v26  ;;  %v2470_v5 = vrot.slane %v2468_v27, 1  ;;  %v5297_v20 = vld [vmem:[#allocation2 + $0x2d0] sm:$0x80] }
 0x289   :  { %v5564_v24 = vrot.slane %v5562_v11, 7  ;;  %v5592_v11 = vrot.slane %v5590_v48, 7  ;;  %v2478_v61 = vor.u32 %v5578_v25, %v2477_v4 }
 0x28a   :  { %v2459_v58 = vsel %vm2183_vm7, %v2454_v42, %v2458_v34  ;;  %v5593_v42 = vshll.u32 %v10862_v63, 16  ;;  %v2482_v34 = vrot.slane %v2480_v31, 1  ;;  %v2471_v27 = vsel %vm2183_vm7, %v2466_v8, %v2470_v5 }
 0x28b   :  { %v5622_v8 = vshrl.u32 %v5297_v20, 16 }
 0x28c   :  { %v5595_v1 = vor.u32 %v5593_v42, %v5592_v11  ;;  %v2489_v25 = vrot.slane %v5593_v42, 1 }
 0x28d   :  { %8608 = vmatmul.mubr.msk.bf16.gmra.mrb[100].mxu0 %vm84_vm2, %v2423_v60  ;;  %v5571_v60 = vor.u32 %v5569_v29, %v5568_v32  ;;  %v10878_v29 = vld [vmem:[#allocation2 + $0x2c0] sm:$0xff]  ;;  %v5624_v20 = vrot.slane %v5622_v8, 7  ;;  %v5646_v8 = vshrl.u32 %v5301_v22, 16 }
 0x28e   :  { %8611 = vmatprep.mubr.msk.bf16.mxu0 %vm84_vm2, %v2435_v40  ;;  %8872 = vmatmul.mubr.msk.bf16.gmra.mrb[36].mxu1 %vm84_vm2, %v5548_v45  ;;  %v5583_v40 = vor.u32 %v5581_v17, %v5580_v57  ;;  %v5291_v45 = vld [vmem:[#allocation2 + $0x288] sm:$0x80]  ;;  %11556 = vst [vmem:[#allocation35_spill] sm:$0xff] %v10878_v29  ;;  %v10882_v17 = vld [vmem:[#allocation2 + $0x2d8] sm:$0xff]  ;;  %v5614_v2 = vshrl.u32 %v10878_v29, 16  ;;  %v5617_v42 = vshll.u32 %v10878_v29, 16 }
 0x28f   :  { %8875 = vmatprep.mubr.msk.bf16.mxu1 %vm84_vm2, %v5560_v23  ;;  %v5602_v23 = vshrl.u32 %v10866_v44, 16  ;;  %v5572_v18 = vsel %vm987_vm6, %v5564_v24, %v5571_v60  ;;  %v5586_v62 = vshrl.u32 %v5291_v45, 16  ;;  %v5605_v24 = vshll.u32 %v10866_v44, 16  ;;  %v2170_v45 = vld [vmem:[#allocation2 + $0x298] sm:$0x1]  ;;  %v10894_v44 = vld [vmem:[#allocation2 + $0x2f0] sm:$0xff] }
 0x290   :  { %v5584_v32 = vsel %vm987_vm6, %v5576_v51, %v5583_v40  ;;  %v5600_v51 = vrot.slane %v5598_v12, 7  ;;  %v5626_v26 = vshrl.u32 %v10882_v17, 16  ;;  %v2492_v4 = vshll.u32 %v2170_v45, 16  ;;  %11557 = vst [vmem:[#allocation36_spill] sm:$0xff] %v10894_v44  ;;  %v2174_v45 = vld [vmem:[#allocation2 + $0x2c8] sm:$0x1] }
 0x291   :  { %v5604_v57 = vrot.slane %v5602_v23, 7  ;;  %v5588_v60 = vrot.slane %v5586_v62, 7  ;;  %v2501_v31 = vrot.slane %v5605_v24, 1  ;;  %v5616_v12 = vrot.slane %v5614_v2, 7 }
 0x292   :  { %v5628_v5 = vrot.slane %v5626_v26, 7  ;;  %v2513_v29 = vrot.slane %v5617_v42, 1  ;;  %v2516_v63 = vshll.u32 %v2174_v45, 16 }
 0x293   :  { %v5607_v40 = vor.u32 %v5605_v24, %v5604_v57  ;;  %v5596_v62 = vsel %vm987_vm6, %v5588_v60, %v5595_v1  ;;  %v2494_v24 = vrot.slane %v2492_v4, 1  ;;  %v2502_v60 = vor.u32 %v5602_v23, %v2501_v31 }
 0x294   :  { %v5629_v1 = vshll.u32 %v10882_v17, 16 }
 0x295   :  { %8612 = vmatmul.mubr.msk.bf16.gmra.mrb[104].mxu0 %vm84_vm2, %v2447_v35  ;;  %v2172_v35 = vld [vmem:[#allocation2 + $0x2b0] sm:$0x1]  ;;  %v5608_v57 = vsel %vm987_vm6, %v5600_v51, %v5607_v40  ;;  %v2176_v51 = vld [vmem:[#allocation2 + $0x2e0] sm:$0x1]  ;;  %v5638_v40 = vshrl.u32 %v10894_v44, 16 }
 0x296   :  { %8615 = vmatprep.mubr.msk.bf16.mxu0 %vm84_vm2, %v2459_v58  ;;  %8876 = vmatmul.mubr.msk.bf16.gmra.mrb[40].mxu1 %vm84_vm2, %v5572_v18  ;;  %v5295_v58 = vld [vmem:[#allocation2 + $0x2b8] sm:$0x80]  ;;  %v2483_v18 = vsel %vm2183_vm7, %v2478_v61, %v2482_v34  ;;  %v2504_v11 = vshll.u32 %v2172_v35, 16  ;;  %v10898_v61 = vld [vmem:[#allocation2 + $0x308] sm:$0xff]  ;;  %v2490_v34 = vor.u32 %v5590_v48, %v2489_v25  ;;  %v2525_v23 = vrot.slane %v5629_v1, 1 }
 0x297   :  { %8879 = vmatprep.mubr.msk.bf16.mxu1 %vm84_vm2, %v5584_v32  ;;  %v5610_v32 = vshrl.u32 %v5295_v58, 16  ;;  %11558 = vst [vmem:[#allocation37_spill] sm:$0xff] %v10898_v61  ;;  %v2528_v25 = vshll.u32 %v2176_v51, 16 }
 0x298   :  { %v2506_v35 = vrot.slane %v2504_v11, 1  ;;  %v2495_v48 = vsel %vm2183_vm7, %v2490_v34, %v2494_v24  ;;  %v2514_v34 = vor.u32 %v5614_v2, %v2513_v29  ;;  %v2518_v24 = vrot.slane %v2516_v63, 1  ;;  %v5305_v2 = vld [vmem:[#allocation2 + $0x330] sm:$0x80] }
 0x299   :  { %v5612_v58 = vrot.slane %v5610_v32, 7  ;;  %v5640_v32 = vrot.slane %v5638_v40, 7  ;;  %v2526_v45 = vor.u32 %v5626_v26, %v2525_v23 }
 0x29a   :  { %v2507_v4 = vsel %vm2183_vm7, %v2502_v60, %v2506_v35  ;;  %v5641_v60 = vshll.u32 %v10894_v44, 16  ;;  %v2530_v35 = vrot.slane %v2528_v25, 1  ;;  %v2519_v63 = vsel %vm2183_vm7, %v2514_v34, %v2518_v24 }
 0x29b   :  { %v5670_v24 = vshrl.u32 %v5305_v2, 16 }
 0x29c   :  { %v5643_v51 = vor.u32 %v5641_v60, %v5640_v32  ;;  %v2537_v26 = vrot.slane %v5641_v60, 1 }
 0x29d   :  { %8616 = vmatmul.mubr.msk.bf16.gmra.mrb[108].mxu0 %vm84_vm2, %v2471_v27  ;;  %v5619_v27 = vor.u32 %v5617_v42, %v5616_v12  ;;  %v10910_v42 = vld [vmem:[#allocation2 + $0x320] sm:$0xff] }
 0x29e   :  { %8619 = vmatprep.mubr.msk.bf16.mxu0 %vm84_vm2, %v2483_v18  ;;  %8880 = vmatmul.mubr.msk.bf16.gmra.mrb[44].mxu1 %vm84_vm2, %v5596_v62  ;;  %v5631_v18 = vor.u32 %v5629_v1, %v5628_v5  ;;  %v5299_v62 = vld [vmem:[#allocation2 + $0x2e8] sm:$0x80]  ;;  %11559 = vst [vmem:[#allocation38_spill] sm:$0xff] %v10910_v42  ;;  %v10914_v1 = vld [vmem:[#allocation2 + $0x338] sm:$0xff]  ;;  %v5662_v22 = vshrl.u32 %v10910_v42, 16  ;;  %v5665_v60 = vshll.u32 %v10910_v42, 16 }
 0x29f   :  { %8883 = vmatprep.mubr.msk.bf16.mxu1 %vm84_vm2, %v5608_v57  ;;  %v5650_v57 = vshrl.u32 %v10898_v61, 16  ;;  %v5620_v31 = vsel %vm987_vm6, %v5612_v58, %v5619_v27  ;;  %v5634_v11 = vshrl.u32 %v5299_v62, 16  ;;  %v5653_v58 = vshll.u32 %v10898_v61, 16  ;;  %v2178_v62 = vld [vmem:[#allocation2 + $0x2f8] sm:$0x1] }
 0x2a0   :  { %v5632_v12 = vsel %vm987_vm6, %v5624_v20, %v5631_v18  ;;  %v2180_v20 = vld [vmem:[#allocation2 + $0x310] sm:$0x1]  ;;  %v5648_v18 = vrot.slane %v5646_v8, 7  ;;  %v5674_v29 = vshrl.u32 %v10914_v1, 16  ;;  %v2540_v23 = vshll.u32 %v2178_v62, 16 }
 0x2a1   :  { %v5652_v5 = vrot.slane %v5650_v57, 7  ;;  %v5636_v27 = vrot.slane %v5634_v11, 7  ;;  %v2552_v25 = vshll.u32 %v2180_v20, 16  ;;  %v2549_v32 = vrot.slane %v5653_v58, 1 }
 0x2a2   :  { %v2538_v62 = vor.u32 %v5638_v40, %v2537_v26  ;;  %v2542_v20 = vrot.slane %v2540_v23, 1  ;;  %v5672_v61 = vrot.slane %v5670_v24, 7  ;;  %v2561_v44 = vrot.slane %v5665_v60, 1 }
 0x2a3   :  { %v5644_v11 = vsel %vm987_vm6, %v5636_v27, %v5643_v51  ;;  %v5307_v27 = vld [vmem:[#allocation2 + $0x348] sm:$0x80]  ;;  %v2550_v51 = vor.u32 %v5650_v57, %v2549_v32 }
 0x2a4   :  { %v2543_v42 = vsel %vm2183_vm7, %v2538_v62, %v2542_v20 }
 0x2a5   :  { %8620 = vmatmul.mubr.msk.bf16.gmra.mrb[112].mxu0 %vm84_vm2, %v2495_v48  ;;  %v5655_v48 = vor.u32 %v5653_v58, %v5652_v5  ;;  %v5664_v5 = vrot.slane %v5662_v22, 7  ;;  %v5677_v58 = vshll.u32 %v10914_v1, 16 }
 0x2a6   :  { %8623 = vmatprep.mubr.msk.bf16.mxu0 %vm84_vm2, %v2507_v4  ;;  %8884 = vmatmul.mubr.msk.bf16.gmra.mrb[48].mxu1 %vm84_vm2, %v5620_v31  ;;  %v5303_v4 = vld [vmem:[#allocation2 + $0x318] sm:$0x80]  ;;  %v2531_v31 = vsel %vm2183_vm7, %v2526_v45, %v2530_v35  ;;  %v5676_v45 = vrot.slane %v5674_v29, 7  ;;  %v5682_v29 = vshrl.u32 %v5307_v27, 16 }
 0x2a7   :  { %8887 = vmatprep.mubr.msk.bf16.mxu1 %vm84_vm2, %v5632_v12  ;;  %v10921_v12 = vld [vmem:[#allocation2 + $0x350] sm:$0xff]  ;;  %v5658_v8 = vshrl.u32 %v5303_v4, 16  ;;  %v5656_v34 = vsel %vm987_vm6, %v5648_v18, %v5655_v48  ;;  %v2554_v4 = vrot.slane %v2552_v25, 1  ;;  %v3021_v48 = vld [vmem:[#allocation2 + $0x18] sm:$0x80] }
 0x2a8   :  { %v5686_v35 = vshrl.u32 %v10921_v12, 16  ;;  %v5679_v18 = vor.u32 %v5677_v58, %v5676_v45  ;;  %v3086_v23 = vshrl.u32 %v3021_v48, 16  ;;  %v5684_v32 = vrot.slane %v5682_v29, 7  ;;  %v9609_v48 = vld [vmem:[#allocation2 + $0x50] sm:$0xff]  ;;  %v9610_v29 = vld [vmem:[#allocation2 + $0x68] sm:$0xff] }
 0x2a9   :  { %v2555_v26 = vsel %vm2183_vm7, %v2550_v51, %v2554_v4  ;;  %v3027_v51 = vld [vmem:[#allocation2 + $0x60] sm:$0x80]  ;;  %v3029_v4 = vld [vmem:[#allocation2 + $0x78] sm:$0x80] }
 0x2aa   :  { %v5688_v2 = vrot.slane %v5686_v35, 7  ;;  %v5680_v25 = vsel %vm987_vm6, %v5672_v61, %v5679_v18  ;;  %v3088_v45 = vrot.slane %v3086_v23, 7  ;;  %v3134_v18 = vshrl.u32 %v3029_v4, 16  ;;  %v9611_v23 = vld [vmem:[#allocation2 + $0x80] sm:$0xff] }
 0x2ab   :  { %v3043_v4 = vld [vmem:[#allocation2 + $0x120] sm:$0x80] }
 0x2ac   :  { %v3096_v58 = vsel %vm987_vm6, %v3088_v45, %v10382_v43 }
 0x2ad   :  { %8624 = vmatmul.mubr.msk.bf16.gmra.mrb[116].mxu0 %vm84_vm2, %v2519_v63  ;;  %v5660_v63 = vrot.slane %v5658_v8, 7 }
 0x2ae   :  { %8627 = vmatprep.mubr.msk.bf16.mxu0 %vm84_vm2, %v2531_v31  ;;  %8888 = vmatmul.mubr.msk.bf16.gmra.mrb[52].mxu1 %vm84_vm2, %v5644_v11  ;;  %v5667_v31 = vor.u32 %v5665_v60, %v5664_v5  ;;  %v2182_v11 = vld [vmem:[#allocation2 + $0x328] sm:$0x1]  ;;  %v2562_v5 = vor.u32 %v5662_v22, %v2561_v44  ;;  %v3023_v60 = vld [vmem:[#allocation2 + $0x30] sm:$0x80]  ;;  %v9608_v44 = vld [vmem:[#allocation2 + $0x38] sm:$0xff] }
 0x2af   :  { %8891 = vmatprep.mubr.msk.bf16.mxu1 %vm84_vm2, %v5656_v34  ;;  %v5689_v34 = vshll.u32 %v10921_v12, 16  ;;  %v2564_v40 = vshll.u32 %v2182_v11, 16  ;;  %v3098_v20 = vshrl.u32 %v3023_v60, 16  ;;  %v3122_v11 = vshrl.u32 %v3027_v51, 16 }
 0x2b0   :  { %v5668_v57 = vsel %vm987_vm6, %v5660_v63, %v5667_v31  ;;  %v7113_v31 = vsel %vm1438_vm5, %v10693_v38, 0  ;;  %v3033_v38 = vld [vmem:[#allocation2 + $0xa8] sm:$0x80] }
 0x2b1   :  { %v5691_v8 = vor.u32 %v5689_v34, %v5688_v2  ;;  %v2566_v24 = vrot.slane %v2564_v40, 1  ;;  %v3100_v22 = vrot.slane %v3098_v20, 7  ;;  %v3136_v2 = vrot.slane %v3134_v18, 7  ;;  %v3031_v34 = vld [vmem:[#allocation2 + $0x90] sm:$0x80] }
 0x2b2   :  { %v3049_v18 = vld [vmem:[#allocation2 + $0x168] sm:$0x80] }
 0x2b3   :  { %v5692_v35 = vsel %vm987_vm6, %v5684_v32, %v5691_v8  ;;  %v2567_v62 = vsel %vm2183_vm7, %v2562_v5, %v2566_v24  ;;  %v3108_v63 = vsel %vm987_vm6, %v3100_v22, %v10384_v10  ;;  %v3124_v10 = vrot.slane %v3122_v11, 7  ;;  %v3035_v5 = vld [vmem:[#allocation2 + $0xc0] sm:$0x80]  ;;  %v3037_v24 = vld [vmem:[#allocation2 + $0xd8] sm:$0x80] }
 0x2b4   :  { %v3170_v45 = vshrl.u32 %v3035_v5, 16  ;;  %v3182_v60 = vshrl.u32 %v3037_v24, 16  ;;  %v3059_v24 = vld [vmem:[#allocation2 + $0x210] sm:$0x80] }
 0x2b5   :  { %8628 = vmatmul.mubr.msk.bf16.gmra.mrb[120].mxu0 %vm84_vm2, %v2543_v42  ;;  %v3025_v42 = vld [vmem:[#allocation2 + $0x48] sm:$0x80]  ;;  %v3132_v40 = vsel %vm987_vm6, %v3124_v10, %v10423_v55 }
 0x2b6   :  { %8631 = vmatprep.mubr.msk.bf16.mxu0 %vm84_vm2, %v2555_v26  ;;  %8892 = vmatmul.mubr.msk.bf16.gmra.mrb[56].mxu1 %vm84_vm2, %v5668_v57  ;;  %v3110_v61 = vshrl.u32 %v3025_v42, 16  ;;  %v3146_v26 = vshrl.u32 %v3031_v34, 16  ;;  %v3158_v57 = vshrl.u32 %v3033_v38, 16  ;;  %v9613_v42 = vld [vmem:[#allocation2 + $0xb0] sm:$0xff]  ;;  %v3184_v20 = vrot.slane %v3182_v60, 7 }
 0x2b7   :  { %8895 = vmatprep.mubr.msk.bf16.mxu1 %vm84_vm2, %v5680_v25  ;;  %v9612_v25 = vld [vmem:[#allocation2 + $0x98] sm:$0xff]  ;;  %v3053_v34 = vld [vmem:[#allocation2 + $0x1c8] sm:$0x80] }
 0x2b8   :  { %v3112_v27 = vrot.slane %v3110_v61, 7  ;;  %v3148_v32 = vrot.slane %v3146_v26, 7  ;;  %v3160_v8 = vrot.slane %v3158_v57, 7  ;;  %v3041_v61 = vld [vmem:[#allocation2 + $0x108] sm:$0x80] }
 0x2b9   :  { %v3206_v22 = vshrl.u32 %v3041_v61, 16 }
 0x2ba   :  { %v3120_v43 = vsel %vm987_vm6, %v3112_v27, %v10418_v15  ;;  %v3144_v15 = vsel %vm987_vm6, %v3136_v2, %v10451_v49  ;;  %v3156_v55 = vsel %vm987_vm6, %v3148_v32, %v10454_v6  ;;  %v3168_v49 = vsel %vm987_vm6, %v3160_v8, %v10475_v52 }
 0x2bb   :  { %v3192_v52 = vsel %vm987_vm6, %v3184_v20, %v10495_v46  ;;  %v3208_v51 = vrot.slane %v3206_v22, 7  ;;  %v3069_v22 = vld [vmem:[#allocation2 + $0x288] sm:$0x80] }
 0x2bd   :  { %8632 = vmatmul.mubr.msk.bf16.gmra.mrb[124].mxu0 %vm84_vm2, %v2567_v62  ;;  %v3172_v62 = vrot.slane %v3170_v45, 7  ;;  %v3216_v46 = vsel %vm987_vm6, %v3208_v51, %v10513_v16 }
 0x2be   :  { %8637 = vmatprep.mubr.msk.bf16.mxu0 %vm84_vm2, %v3096_v58  ;;  %8896 = vmatmul.mubr.msk.bf16.gmra.mrb[60].mxu1 %vm84_vm2, %v5692_v35  ;;  %v9614_v35 = vld [vmem:[#allocation2 + $0xc8] sm:$0xff]  ;;  %v3039_v58 = vld [vmem:[#allocation2 + $0xf0] sm:$0x80] }
 0x2bf   :  { %8901 = vmatprep.mubr.msk.bf16.mxu1 %vm84_vm2, %v9608_v44  ;;  %v3180_v6 = vsel %vm987_vm6, %v3172_v62, %v10478_v14  ;;  %v3194_v44 = vshrl.u32 %v3039_v58, 16 }
 0x2c1   :  { %v3196_v27 = vrot.slane %v3194_v44, 7 }
 0x2c3   :  { %v3204_v14 = vsel %vm987_vm6, %v3196_v27, %v10498_v56  ;;  %v11564_v27 = vld [vmem:[#allocation19_spill] sm:$0xff] }
 0x2c5   :  { %8638 = vmatmul.mubr.msk.bf16.vlgmr.msra.gmra.mrb[64].mxu0 %vm84_vm2, %v3108_v63  ;;  %v3045_v63 = vld [vmem:[#allocation2 + $0x138] sm:$0x80] }
 0x2c6   :  { %8641 = vmatprep.mubr.msk.bf16.mxu0 %vm84_vm2, %v3120_v43  ;;  %8902 = vmatmul.mubr.msk.bf16.vlgmr.msra.gmra.mrb[0].mxu1 %vm84_vm2, %v9609_v48  ;;  %v3230_v11 = vshrl.u32 %v3045_v63, 16  ;;  %v3047_v43 = vld [vmem:[#allocation2 + $0x150] sm:$0x80]  ;;  %v11565_v63 = vld [vmem:[#allocation20_spill] sm:$0xff] }
 0x2c7   :  { %8966 = vmatpush3.bf16.msra.mxu1 %v7113_v31  ;;  %8905 = vmatprep.mubr.msk.bf16.mxu1 %vm84_vm2, %v9610_v29  ;;  %v3218_v31 = vshrl.u32 %v3043_v4, 16  ;;  %v3242_v48 = vshrl.u32 %v3047_v43, 16  ;;  %v3254_v29 = vshrl.u32 %v3049_v18, 16  ;;  %v3071_v43 = vld [vmem:[#allocation2 + $0x2a0] sm:$0x80] }
 0x2c8   :  { %v3073_v18 = vld [vmem:[#allocation2 + $0x2b8] sm:$0x80] }
 0x2c9   :  { %v3244_v10 = vrot.slane %v3242_v48, 7  ;;  %v3256_v2 = vrot.slane %v3254_v29, 7  ;;  %v11569_v29 = vld [vmem:[#allocation22_spill] sm:$0xff] }
 0x2cb   :  { %v3264_v26 = vsel %vm987_vm6, %v3256_v2, %v10549_v39  ;;  %v11571_v2 = vld [vmem:[#allocation34_spill] sm:$0xff] }
 0x2cd   :  { %8642 = vmatmul.mubr.msk.bf16.gmra.mrb[68].mxu0 %vm84_vm2, %v3132_v40  ;;  %v3252_v40 = vsel %vm987_vm6, %v3244_v10, %v10535_v19  ;;  %v3055_v19 = vld [vmem:[#allocation2 + $0x1e0] sm:$0x80]  ;;  %v11570_v10 = vld [vmem:[#allocation33_spill] sm:$0xff] }
 0x2ce   :  { %8645 = vmatprep.mubr.msk.bf16.mxu0 %vm84_vm2, %v3144_v15  ;;  %8906 = vmatmul.mubr.msk.bf16.gmra.mrb[4].mxu1 %vm84_vm2, %v9611_v23  ;;  %v3290_v8 = vshrl.u32 %v3055_v19, 16 }
 0x2cf   :  { %8909 = vmatprep.mubr.msk.bf16.mxu1 %vm84_vm2, %v9612_v25  ;;  %v3057_v25 = vld [vmem:[#allocation2 + $0x1f8] sm:$0x80] }
 0x2d0   :  { %v3302_v5 = vshrl.u32 %v3057_v25, 16 }
 0x2d5   :  { %8646 = vmatmul.mubr.msk.bf16.gmra.mrb[72].mxu0 %vm84_vm2, %v3156_v55  ;;  %v3061_v55 = vld [vmem:[#allocation2 + $0x228] sm:$0x80] }
 0x2d6   :  { %8649 = vmatprep.mubr.msk.bf16.mxu0 %vm84_vm2, %v3168_v49  ;;  %8910 = vmatmul.mubr.msk.bf16.gmra.mrb[8].mxu1 %vm84_vm2, %v9613_v42  ;;  %v3314_v49 = vshrl.u32 %v3059_v24, 16  ;;  %v3326_v60 = vshrl.u32 %v3061_v55, 16  ;;  %v3063_v42 = vld [vmem:[#allocation2 + $0x240] sm:$0x80] }
 0x2d7   :  { %8913 = vmatprep.mubr.msk.bf16.mxu1 %vm84_vm2, %v9614_v35  ;;  %v3065_v35 = vld [vmem:[#allocation2 + $0x258] sm:$0x80]  ;;  %v3338_v20 = vshrl.u32 %v3063_v42, 16  ;;  %v3083_v42 = vld [vmem:[#allocation2 + $0x330] sm:$0x80] }
 0x2d8   :  { %v3350_v61 = vshrl.u32 %v3065_v35, 16 }
 0x2da   :  { %v3352_v44 = vrot.slane %v3350_v61, 7  ;;  %v11580_v61 = vld [vmem:[#allocation28_spill] sm:$0xff] }
 0x2dd   :  { %8650 = vmatmul.mubr.msk.bf16.gmra.mrb[76].mxu0 %vm84_vm2, %v3180_v6  ;;  %v3340_v6 = vrot.slane %v3338_v20, 7  ;;  %v11579_v20 = vld [vmem:[#allocation27_spill] sm:$0xff] }
 0x2de   :  { %8653 = vmatprep.mubr.msk.bf16.mxu0 %vm84_vm2, %v3192_v52  ;;  %8914 = vmatmul.mubr.msk.bf16.gmra.mrb[12].mxu1 %vm84_vm2, %v10721_v13  ;;  %v3220_v13 = vrot.slane %v3218_v31, 7  ;;  %v3067_v52 = vld [vmem:[#allocation2 + $0x270] sm:$0x80]  ;;  %v3374_v31 = vshrl.u32 %v3069_v22, 16 }
 0x2df   :  { %8917 = vmatprep.mubr.msk.bf16.mxu1 %vm84_vm2, %v10725_v50  ;;  %v3232_v50 = vrot.slane %v3230_v11, 7  ;;  %v3348_v51 = vsel %vm987_vm6, %v3340_v6, %v11564_v27  ;;  %v3362_v4 = vshrl.u32 %v3067_v52, 16  ;;  %v11567_v11 = vld [vmem:[#allocation32_spill] sm:$0xff]  ;;  %v11581_v6 = vld [vmem:[#allocation38_spill] sm:$0xff] }
 0x2e0   :  { %v3228_v56 = vsel %vm987_vm6, %v3220_v13, %v10516_v9  ;;  %v3051_v9 = vld [vmem:[#allocation2 + $0x180] sm:$0x80]  ;;  %v6569_v22 = vld [vmem:[#allocation2 + $0x50] sm:$0xff]  ;;  %v6571_v27 = vld [vmem:[#allocation2 + $0x68] sm:$0xff] }
 0x2e1   :  { %v3240_v16 = vsel %vm987_vm6, %v3232_v50, %v10532_v3  ;;  %v3266_v3 = vshrl.u32 %v3051_v9, 16  ;;  %v3364_v13 = vrot.slane %v3362_v4, 7  ;;  %v3376_v50 = vrot.slane %v3374_v31, 7 }
 0x2e3   :  { %v3268_v57 = vrot.slane %v3266_v3, 7  ;;  %v11572_v3 = vld [vmem:[#allocation23_spill] sm:$0xff] }
 0x2e5   :  { %8654 = vmatmul.mubr.msk.bf16.gmra.mrb[80].mxu0 %vm84_vm2, %v3204_v14  ;;  %v3360_v14 = vsel %vm987_vm6, %v3352_v44, %v11565_v63 }
 0x2e6   :  { %8657 = vmatprep.mubr.msk.bf16.mxu0 %vm84_vm2, %v3216_v46  ;;  %8918 = vmatmul.mubr.msk.bf16.gmra.mrb[16].mxu1 %vm84_vm2, %v10738_v59  ;;  %v9615_v59 = vld [vmem:[#allocation2 + $0x188] sm:$0xff]  ;;  %v11566_v46 = vld [vmem:[#allocation31_spill] sm:$0xff] }
 0x2e7   :  { %8921 = vmatprep.mubr.msk.bf16.mxu1 %vm84_vm2, %v10742_v30  ;;  %v3270_v30 = vshrl.u32 %v9615_v59, 16  ;;  %v3273_v15 = vshll.u32 %v9615_v59, 16  ;;  %v3384_v59 = vsel %vm987_vm6, %v3376_v50, %v11569_v29  ;;  %v6572_v50 = vld [vmem:[#allocation2 + $0x70] sm:$0x1]  ;;  %v6573_v29 = vld [vmem:[#allocation2 + $0x80] sm:$0xff] }
 0x2e9   :  { %v3272_v38 = vrot.slane %v3270_v30, 7  ;;  %v3398_v30 = vshrl.u32 %v3073_v18, 16 }
 0x2ed   :  { %8658 = vmatmul.mubr.msk.bf16.gmra.mrb[84].mxu0 %vm84_vm2, %v3228_v56  ;;  %v11568_v56 = vld [vmem:[#allocation21_spill] sm:$0xff] }
 0x2ee   :  { %8661 = vmatprep.mubr.msk.bf16.mxu0 %vm84_vm2, %v3240_v16  ;;  %8922 = vmatmul.mubr.msk.bf16.gmra.mrb[20].mxu1 %vm84_vm2, %v10755_v36  ;;  %v3278_v36 = vshrl.u32 %v3053_v34, 16  ;;  %v3372_v48 = vsel %vm987_vm6, %v3364_v13, %v11568_v56  ;;  %v3386_v16 = vshrl.u32 %v3071_v43, 16  ;;  %v3400_v34 = vrot.slane %v3398_v30, 7  ;;  %v6575_v30 = vld [vmem:[#allocation2 + $0x98] sm:$0xff] }
 0x2ef   :  { %8925 = vmatprep.mubr.msk.bf16.mxu1 %vm84_vm2, %v10759_v54  ;;  %v3275_v54 = vor.u32 %v3273_v15, %v3272_v38  ;;  %v3075_v38 = vld [vmem:[#allocation2 + $0x2d0] sm:$0x80]  ;;  %v11573_v15 = vld [vmem:[#allocation24_spill] sm:$0xff]  ;;  %v6658_v13 = vshll.u32 %v6571_v27, 16 }
 0x2f0   :  { %v3280_v23 = vrot.slane %v3278_v36, 7  ;;  %v3388_v9 = vrot.slane %v3386_v16, 7  ;;  %v3410_v36 = vshrl.u32 %v3075_v38, 16  ;;  %v6663_v16 = vshll.u32 %v6572_v50, 16 }
 0x2f1   :  { %v3276_v32 = vsel %vm987_vm6, %v3268_v57, %v3275_v54  ;;  %v3408_v54 = vsel %vm987_vm6, %v3400_v34, %v11573_v15  ;;  %v6670_v34 = vshll.u32 %v6573_v29, 16 }
 0x2f2   :  { %v3288_v39 = vsel %vm987_vm6, %v3280_v23, %v10564_v28  ;;  %v11574_v23 = vld [vmem:[#allocation35_spill] sm:$0xff]  ;;  %v3412_v19 = vrot.slane %v3410_v36, 7 }
 0x2f3   :  { %v6576_v36 = vld [vmem:[#allocation2 + $0xa0] sm:$0x1]  ;;  %v6672_v15 = vrot.slane %v6670_v34, 1 }
 0x2f5   :  { %8662 = vmatmul.mubr.msk.bf16.gmra.mrb[88].mxu0 %vm84_vm2, %v3252_v40  ;;  %v3077_v40 = vld [vmem:[#allocation2 + $0x2e8] sm:$0x80] }
 0x2f6   :  { %8665 = vmatprep.mubr.msk.bf16.mxu0 %vm84_vm2, %v3264_v26  ;;  %8926 = vmatmul.mubr.msk.bf16.gmra.mrb[24].mxu1 %vm84_vm2, %v10774_v41  ;;  %v3292_v41 = vrot.slane %v3290_v8, 7  ;;  %v3396_v26 = vsel %vm987_vm6, %v3388_v9, %v11572_v3  ;;  %v3422_v57 = vshrl.u32 %v3077_v40, 16  ;;  %v3081_v8 = vld [vmem:[#allocation2 + $0x318] sm:$0x80]  ;;  %v6665_v40 = vrot.slane %v6663_v16, 1 }
 0x2f7   :  { %8929 = vmatprep.mubr.msk.bf16.mxu1 %vm84_vm2, %v10778_v33  ;;  %v3304_v33 = vrot.slane %v3302_v5, 7  ;;  %v3446_v55 = vshrl.u32 %v3081_v8, 16  ;;  %v6574_v3 = vld [vmem:[#allocation2 + $0x88] sm:$0x1]  ;;  %v6586_v16 = vld [vmem:[#allocation2 + $0x118] sm:$0x1] }
 0x2f8   :  { %v3300_v45 = vsel %vm987_vm6, %v3292_v41, %v10567_v47  ;;  %v11560_v47 = vld [vmem:[#allocation17_spill] sm:$0xff]  ;;  %v3424_v25 = vrot.slane %v3422_v57, 7 }
 0x2f9   :  { %v3312_v28 = vsel %vm987_vm6, %v3304_v33, %v10582_v21  ;;  %v11561_v21 = vld [vmem:[#allocation18_spill] sm:$0xff]  ;;  %v6579_v8 = vld [vmem:[#allocation2 + $0xc8] sm:$0xff] }
 0x2fa   :  { %v11576_v33 = vld [vmem:[#allocation26_spill] sm:$0xff] }
 0x2fb   :  { %v3432_v24 = vsel %vm987_vm6, %v3424_v25, %v11576_v33  ;;  %v6577_v25 = vld [vmem:[#allocation2 + $0xb0] sm:$0xff] }
 0x2fc   :  { %v6694_v33 = vshll.u32 %v6577_v25, 16 }
 0x2fd   :  { %8666 = vmatmul.mubr.msk.bf16.gmra.mrb[92].mxu0 %vm84_vm2, %v3276_v32  ;;  %v3079_v32 = vld [vmem:[#allocation2 + $0x300] sm:$0x80] }
 0x2fe   :  { %8669 = vmatprep.mubr.msk.bf16.mxu0 %vm84_vm2, %v3288_v39  ;;  %8930 = vmatmul.mubr.msk.bf16.gmra.mrb[28].mxu1 %vm84_vm2, %v10785_v0  ;;  %v3316_v0 = vrot.slane %v3314_v49, 7  ;;  %v11575_v39 = vld [vmem:[#allocation25_spill] sm:$0xff]  ;;  %v3434_v41 = vshrl.u32 %v3079_v32, 16  ;;  %v6567_v49 = vld [vmem:[#allocation2 + $0x38] sm:$0xff]  ;;  %v6668_v32 = vshrl.u32 %v6573_v29, 16 }
 0x2ff   :  { %8933 = vmatprep.mubr.msk.bf16.mxu1 %vm84_vm2, %v10797_v7  ;;  %v3328_v7 = vrot.slane %v3326_v60, 7  ;;  %v3420_v5 = vsel %vm987_vm6, %v3412_v19, %v11575_v39  ;;  %v6634_v35 = vshll.u32 %v6567_v49, 16  ;;  %v6632_v63 = vshrl.u32 %v6567_v49, 16  ;;  %v6580_v49 = vld [vmem:[#allocation2 + $0xd0] sm:$0x1] }
 0x300   :  { %v3324_v62 = vsel %vm987_vm6, %v3316_v0, %v11560_v47  ;;  %v3436_v0 = vrot.slane %v3434_v41, 7  ;;  %v6568_v47 = vld [vmem:[#allocation2 + $0x40] sm:$0x1]  ;;  %v6687_v19 = vshll.u32 %v6576_v36, 16  ;;  %v6680_v39 = vshrl.u32 %v6575_v30, 16 }
 0x301   :  { %v3336_v58 = vsel %vm987_vm6, %v3328_v7, %v11561_v21  ;;  %v3448_v7 = vrot.slane %v3446_v55, 7  ;;  %v6636_v44 = vrot.slane %v6634_v35, 1  ;;  %v6639_v52 = vshll.u32 %v6568_v47, 16  ;;  %v6581_v47 = vld [vmem:[#allocation2 + $0xe0] sm:$0xff] }
 0x302   :  { %v3444_v21 = vsel %vm987_vm6, %v3436_v0, %v11579_v20  ;;  %v6689_v55 = vrot.slane %v6687_v19, 1  ;;  %v6711_v35 = vshll.u32 %v6580_v49, 16  ;;  %v6583_v20 = vld [vmem:[#allocation2 + $0xf8] sm:$0xff]  ;;  %v6590_v19 = vld [vmem:[#allocation2 + $0x148] sm:$0x1] }
 0x303   :  { %v6637_v31 = vor.u32 %v6636_v44, %v6632_v63  ;;  %v6582_v44 = vld [vmem:[#allocation2 + $0xe8] sm:$0x1]  ;;  %v6728_v50 = vshrl.u32 %v6583_v20, 16 }
 0x305   :  { %8670 = vmatmul.mubr.msk.bf16.gmra.mrb[96].mxu0 %vm84_vm2, %v3300_v45  ;;  %v11577_v45 = vld [vmem:[#allocation36_spill] sm:$0xff] }
 0x306   :  { %8673 = vmatprep.mubr.msk.bf16.mxu0 %vm84_vm2, %v3312_v28  ;;  %8934 = vmatmul.mubr.msk.bf16.gmra.mrb[32].mxu1 %vm84_vm2, %v10813_v37  ;;  %v11562_v37 = vld [vmem:[#allocation29_spill] sm:$0xff]  ;;  %v9616_v28 = vld [vmem:[#allocation2 + $0x338] sm:$0xff] }
 0x307   :  { %8937 = vmatprep.mubr.msk.bf16.mxu1 %vm84_vm2, %v10816_v53  ;;  %v11563_v53 = vld [vmem:[#allocation30_spill] sm:$0xff]  ;;  %v3462_v60 = vshrl.u32 %v9616_v28, 16 }
 0x30d   :  { %8674 = vmatmul.mubr.msk.bf16.gmra.mrb[100].mxu0 %vm84_vm2, %v3324_v62  ;;  %v3464_v62 = vrot.slane %v3462_v60, 7  ;;  %v6696_v60 = vrot.slane %v6694_v33, 1 }
 0x30e   :  { %8677 = vmatprep.mubr.msk.bf16.mxu0 %vm84_vm2, %v3336_v58  ;;  %8938 = vmatmul.mubr.msk.bf16.gmra.mrb[36].mxu1 %vm84_vm2, %v11562_v37  ;;  %v3458_v58 = vshrl.u32 %v3083_v42, 16  ;;  %v3456_v37 = vsel %vm987_vm6, %v3448_v7, %v11580_v61 }
 0x30f   :  { %8941 = vmatprep.mubr.msk.bf16.mxu1 %vm84_vm2, %v11563_v53  ;;  %v3465_v53 = vshll.u32 %v9616_v28, 16 }
 0x310   :  { %v3460_v4 = vrot.slane %v3458_v58, 7 }
 0x315   :  { %8678 = vmatmul.mubr.msk.bf16.gmra.mrb[104].mxu0 %vm84_vm2, %v3348_v51  ;;  %v3467_v51 = vor.u32 %v3465_v53, %v3464_v62  ;;  %v6692_v62 = vshrl.u32 %v6577_v25, 16 }
 0x316   :  { %8681 = vmatprep.mubr.msk.bf16.mxu0 %vm84_vm2, %v3360_v14  ;;  %8942 = vmatmul.mubr.msk.bf16.gmra.mrb[40].mxu1 %vm84_vm2, %v11566_v46  ;;  %v6646_v14 = vshll.u32 %v6569_v22, 16  ;;  %v6641_v46 = vrot.slane %v6639_v52, 1  ;;  %v6730_v52 = vshll.u32 %v6583_v20, 16  ;;  %v6597_v20 = vld [vmem:[#allocation2 + $0x1a0] sm:$0xff] }
 0x317   :  { %8945 = vmatprep.mubr.msk.bf16.mxu1 %vm84_vm2, %v11567_v11  ;;  %v6570_v11 = vld [vmem:[#allocation2 + $0x58] sm:$0x1]  ;;  %v3468_v43 = vsel %vm987_vm6, %v3460_v4, %v3467_v51  ;;  %v6697_v58 = vor.u32 %v6696_v60, %v6692_v62  ;;  %v6723_v4 = vshll.u32 %v6582_v44, 16  ;;  %v6596_v62 = vld [vmem:[#allocation2 + $0x190] sm:$0x1] }
 0x318   :  { %v6648_v18 = vrot.slane %v6646_v14, 1  ;;  %v6651_v56 = vshll.u32 %v6570_v11, 16  ;;  %v6732_v14 = vrot.slane %v6730_v52, 1  ;;  %v6716_v11 = vshrl.u32 %v6581_v47, 16 }
 0x319   :  { %v6814_v52 = vshll.u32 %v6597_v20, 16 }
 0x31a   :  { %v6653_v9 = vrot.slane %v6651_v56, 1 }
 0x31d   :  { %8682 = vmatmul.mubr.msk.bf16.gmra.mrb[108].mxu0 %vm84_vm2, %v3372_v48  ;;  %v6660_v48 = vrot.slane %v6658_v13, 1  ;;  %v6587_v13 = vld [vmem:[#allocation2 + $0x128] sm:$0xff] }
 0x31e   :  { %8685 = vmatprep.mubr.msk.bf16.mxu0 %vm84_vm2, %v3384_v59  ;;  %8946 = vmatmul.mubr.msk.bf16.gmra.mrb[44].mxu1 %vm84_vm2, %v11570_v10  ;;  %v6644_v59 = vshrl.u32 %v6569_v22, 16  ;;  %v6656_v10 = vshrl.u32 %v6571_v27, 16  ;;  %v6584_v22 = vld [vmem:[#allocation2 + $0x100] sm:$0x1]  ;;  %v6754_v29 = vshll.u32 %v6587_v13, 16  ;;  %v6752_v36 = vshrl.u32 %v6587_v13, 16 }
 0x31f   :  { %8949 = vmatprep.mubr.msk.bf16.mxu1 %vm84_vm2, %v11571_v2  ;;  %v6816_v13 = vrot.slane %v6814_v52, 1 }
 0x320   :  { %v6649_v2 = vor.u32 %v6648_v18, %v6644_v59  ;;  %v6661_v38 = vor.u32 %v6660_v48, %v6656_v10  ;;  %v6725_v18 = vrot.slane %v6723_v4, 1  ;;  %v6588_v59 = vld [vmem:[#allocation2 + $0x130] sm:$0x1]  ;;  %v6756_v34 = vrot.slane %v6754_v29, 1 }
 0x322   :  { %v6666_v57 = vsel %vm2183_vm7, %v6661_v38, %v6665_v40  ;;  %v6759_v38 = vshll.u32 %v6588_v59, 16  ;;  %v6589_v40 = vld [vmem:[#allocation2 + $0x140] sm:$0xff] }
 0x325   :  { %8686 = vmatmul.mubr.msk.bf16.gmra.mrb[112].mxu0 %vm84_vm2, %v3396_v26  ;;  %v6682_v26 = vshll.u32 %v6575_v30, 16 }
 0x326   :  { %8689 = vmatprep.mubr.msk.bf16.mxu0 %vm84_vm2, %v3408_v54  ;;  %8950 = vmatmul.mubr.msk.bf16.gmra.mrb[48].mxu1 %vm84_vm2, %v11574_v23  ;;  %v6675_v54 = vshll.u32 %v6574_v3, 16 }
 0x327   :  { %8953 = vmatprep.mubr.msk.bf16.mxu1 %vm84_vm2, %v10882_v17  ;;  %v11578_v17 = vld [vmem:[#allocation37_spill] sm:$0xff]  ;;  %v6684_v23 = vrot.slane %v6682_v26, 1  ;;  %v6591_v26 = vld [vmem:[#allocation2 + $0x158] sm:$0xff] }
 0x328   :  { %v6677_v41 = vrot.slane %v6675_v54, 1  ;;  %v6766_v54 = vshll.u32 %v6589_v40, 16  ;;  %v6778_v25 = vshll.u32 %v6591_v26, 16  ;;  %v6776_v49 = vshrl.u32 %v6591_v26, 16  ;;  %v6604_v26 = vld [vmem:[#allocation2 + $0x220] sm:$0x1] }
 0x32a   :  { %v6780_v33 = vrot.slane %v6778_v25, 1  ;;  %v6607_v25 = vld [vmem:[#allocation2 + $0x248] sm:$0xff] }
 0x32d   :  { %8690 = vmatmul.mubr.msk.bf16.gmra.mrb[116].mxu0 %vm84_vm2, %v3420_v5  ;;  %v6673_v5 = vor.u32 %v6672_v15, %v6668_v32  ;;  %v6592_v32 = vld [vmem:[#allocation2 + $0x160] sm:$0x1] }
 0x32e   :  { %8693 = vmatprep.mubr.msk.bf16.mxu0 %vm84_vm2, %v3432_v24  ;;  %8954 = vmatmul.mubr.msk.bf16.gmra.mrb[52].mxu1 %vm84_vm2, %v11577_v45  ;;  %v6685_v24 = vor.u32 %v6684_v23, %v6680_v39  ;;  %v6578_v45 = vld [vmem:[#allocation2 + $0xb8] sm:$0x1]  ;;  %v6761_v23 = vrot.slane %v6759_v38, 1  ;;  %v6768_v39 = vrot.slane %v6766_v54, 1  ;;  %v6602_v38 = vld [vmem:[#allocation2 + $0x208] sm:$0x1] }
 0x32f   :  { %8957 = vmatprep.mubr.msk.bf16.mxu1 %vm84_vm2, %v11578_v17  ;;  %v6706_v17 = vshll.u32 %v6579_v8, 16  ;;  %v6678_v28 = vsel %vm2183_vm7, %v6673_v5, %v6677_v41  ;;  %v6699_v0 = vshll.u32 %v6578_v45, 16  ;;  %v6771_v5 = vshll.u32 %v6590_v19, 16 }
 0x330   :  { %v6690_v7 = vsel %vm2183_vm7, %v6685_v24, %v6689_v55  ;;  %v6783_v24 = vshll.u32 %v6592_v32, 16  ;;  %v6593_v55 = vld [vmem:[#allocation2 + $0x170] sm:$0xff]  ;;  %v6764_v45 = vshrl.u32 %v6589_v40, 16 }
 0x331   :  { %v6708_v42 = vrot.slane %v6706_v17, 1  ;;  %v6701_v61 = vrot.slane %v6699_v0, 1  ;;  %v6595_v17 = vld [vmem:[#allocation2 + $0x188] sm:$0xff]  ;;  %v6773_v60 = vrot.slane %v6771_v5, 1  ;;  %v6790_v0 = vshll.u32 %v6593_v55, 16 }
 0x332   :  { %v6788_v44 = vshrl.u32 %v6593_v55, 16  ;;  %v6874_v55 = vshll.u32 %v6607_v25, 16 }
 0x333   :  { %v6702_v27 = vsel %vm2183_vm7, %v6697_v58, %v6701_v61  ;;  %v6792_v58 = vrot.slane %v6790_v0, 1 }
 0x334   :  { %v6876_v0 = vrot.slane %v6874_v55, 1 }
 0x335   :  { %8694 = vmatmul.mubr.msk.bf16.gmra.mrb[120].mxu0 %vm84_vm2, %v3444_v21  ;;  %v6704_v21 = vshrl.u32 %v6579_v8, 16  ;;  %v6793_v4 = vor.u32 %v6792_v58, %v6788_v44  ;;  %v6612_v44 = vld [vmem:[#allocation2 + $0x280] sm:$0x1] }
 0x336   :  { %8697 = vmatprep.mubr.msk.bf16.mxu0 %vm84_vm2, %v3456_v37  ;;  %8958 = vmatmul.mubr.msk.bf16.gmra.mrb[56].mxu1 %vm84_vm2, %v11581_v6  ;;  %v6718_v37 = vshll.u32 %v6581_v47, 16  ;;  %v6713_v6 = vrot.slane %v6711_v35, 1  ;;  %v6594_v35 = vld [vmem:[#allocation2 + $0x178] sm:$0x1]  ;;  %v6802_v47 = vshll.u32 %v6595_v17, 16 }
 0x337   :  { %8961 = vmatprep.mubr.msk.bf16.mxu1 %vm84_vm2, %v10914_v1  ;;  %v6642_v1 = vsel %vm2183_vm7, %v6637_v31, %v6641_v46  ;;  %v6709_v53 = vor.u32 %v6708_v42, %v6704_v21  ;;  %v6735_v31 = vshll.u32 %v6584_v22, 16  ;;  %v6585_v46 = vld [vmem:[#allocation2 + $0x110] sm:$0xff]  ;;  %v6785_v42 = vrot.slane %v6783_v24, 1  ;;  %v6599_v22 = vld [vmem:[#allocation2 + $0x1e8] sm:$0xff]  ;;  %v6606_v24 = vld [vmem:[#allocation2 + $0x238] sm:$0x1] }
 0x338   :  { %v6720_v51 = vrot.slane %v6718_v37, 1  ;;  %v6742_v56 = vshll.u32 %v6585_v46, 16  ;;  %v6740_v3 = vshrl.u32 %v6585_v46, 16  ;;  %v6795_v61 = vshll.u32 %v6594_v35, 16 }
 0x339   :  { %v6714_v63 = vsel %vm2183_vm7, %v6709_v53, %v6713_v6  ;;  %v6737_v48 = vrot.slane %v6735_v31, 1  ;;  %v6804_v53 = vrot.slane %v6802_v47, 1  ;;  %v6807_v6 = vshll.u32 %v6596_v62, 16  ;;  %v6611_v47 = vld [vmem:[#allocation2 + $0x278] sm:$0xff] }
 0x33a   :  { %v6744_v10 = vrot.slane %v6742_v56, 1  ;;  %v6826_v46 = vshll.u32 %v6599_v22, 16  ;;  %v6872_v62 = vshrl.u32 %v6607_v25, 16  ;;  %v6618_v25 = vld [vmem:[#allocation2 + $0x2c8] sm:$0x1] }
 0x33b   :  { %v6809_v31 = vrot.slane %v6807_v6, 1  ;;  %v6898_v6 = vshll.u32 %v6611_v47, 16 }
 0x33d   :  { %8698 = vmatmul.mubr.msk.bf16.gmra.mrb[124].mxu0 %vm84_vm2, %v3468_v43  ;;  %v6721_v43 = vor.u32 %v6720_v51, %v6716_v11  ;;  %v6598_v51 = vld [vmem:[#allocation2 + $0x1a8] sm:$0x1]  ;;  %v6812_v11 = vshrl.u32 %v6597_v20, 16 }
 0x33e   :  { %8962 = vmatmul.mubr.msk.bf16.gmra.mrb[60].mxu1 %vm84_vm2, %v10921_v12  ;;  %v6654_v12 = vsel %vm2183_vm7, %v6649_v2, %v6653_v9  ;;  %v6747_v2 = vshll.u32 %v6586_v16, 16  ;;  %v6601_v16 = vld [vmem:[#allocation2 + $0x200] sm:$0xff] }
 0x33f   :  { %8967 = vmatprep.mubr.msk.bf16.mxu1 %vm84_vm2, %v6642_v1  ;;  %v6733_v1 = vor.u32 %v6732_v14, %v6728_v50  ;;  %v6726_v30 = vsel %vm2183_vm7, %v6721_v43, %v6725_v18  ;;  %v6819_v50 = vshll.u32 %v6598_v51, 16  ;;  %v6600_v43 = vld [vmem:[#allocation2 + $0x1f0] sm:$0x1]  ;;  %v6817_v29 = vor.u32 %v6816_v13, %v6812_v11 }
 0x340   :  { %v6749_v15 = vrot.slane %v6747_v2, 1  ;;  %v6838_v2 = vshll.u32 %v6601_v16, 16  ;;  %v6836_v19 = vshrl.u32 %v6601_v16, 16  ;;  %v6896_v11 = vshrl.u32 %v6611_v47, 16  ;;  %v6616_v16 = vld [vmem:[#allocation2 + $0x2b0] sm:$0x1] }
 0x341   :  { %v6738_v9 = vsel %vm2183_vm7, %v6733_v1, %v6737_v48  ;;  %v6828_v1 = vrot.slane %v6826_v46, 1  ;;  %v6831_v48 = vshll.u32 %v6600_v43, 16  ;;  %v6821_v59 = vrot.slane %v6819_v50, 1  ;;  %v6615_v46 = vld [vmem:[#allocation2 + $0x2a8] sm:$0xff] }
 0x346   :  { %8968 = vmatmul.mubr.msk.bf16.vlgmr.msra.gmra.mrb[0].mxu1 %vm84_vm2, %v6654_v12  ;;  %v6745_v12 = vor.u32 %v6744_v10, %v6740_v3  ;;  %v6824_v10 = vshrl.u32 %v6599_v22, 16  ;;  %v6822_v3 = vsel %vm2183_vm7, %v6817_v29, %v6821_v59 }
 0x347   :  { %8971 = vmatprep.mubr.msk.bf16.mxu1 %vm84_vm2, %v6666_v57  ;;  %v6757_v57 = vor.u32 %v6756_v34, %v6752_v36  ;;  %v6833_v34 = vrot.slane %v6831_v48, 1  ;;  %v6840_v36 = vrot.slane %v6838_v2, 1  ;;  %v6922_v48 = vshll.u32 %v6615_v46, 16 }
 0x348   :  { %v6750_v8 = vsel %vm2183_vm7, %v6745_v12, %v6749_v15  ;;  %v6843_v12 = vshll.u32 %v6602_v38, 16 }
 0x349   :  { %v6762_v41 = vsel %vm2183_vm7, %v6757_v57, %v6761_v23  ;;  %v6855_v57 = vshll.u32 %v6604_v26, 16  ;;  %v6605_v23 = vld [vmem:[#allocation2 + $0x230] sm:$0xff]  ;;  %v6924_v2 = vrot.slane %v6922_v48, 1  ;;  %v6920_v26 = vshrl.u32 %v6615_v46, 16  ;;  %v6626_v48 = vld [vmem:[#allocation2 + $0x328] sm:$0x1] }
 0x34a   :  { %v6862_v5 = vshll.u32 %v6605_v23, 16  ;;  %v6860_v35 = vshrl.u32 %v6605_v23, 16 }
 0x34b   :  { %v6925_v23 = vor.u32 %v6924_v2, %v6920_v26 }
 0x34e   :  { %8972 = vmatmul.mubr.msk.bf16.gmra.mrb[4].mxu1 %vm84_vm2, %v6678_v28  ;;  %v6769_v28 = vor.u32 %v6768_v39, %v6764_v45  ;;  %v6845_v39 = vrot.slane %v6843_v12, 1  ;;  %v6608_v45 = vld [vmem:[#allocation2 + $0x250] sm:$0x1] }
 0x34f   :  { %8975 = vmatprep.mubr.msk.bf16.mxu1 %vm84_vm2, %v6690_v7  ;;  %v6781_v7 = vor.u32 %v6780_v33, %v6776_v49  ;;  %v6857_v33 = vrot.slane %v6855_v57, 1  ;;  %v6864_v49 = vrot.slane %v6862_v5, 1 }
 0x350   :  { %v6774_v21 = vsel %vm2183_vm7, %v6769_v28, %v6773_v60  ;;  %v6867_v28 = vshll.u32 %v6606_v24, 16 }
 0x351   :  { %v6786_v37 = vsel %vm2183_vm7, %v6781_v7, %v6785_v42  ;;  %v6879_v7 = vshll.u32 %v6608_v45, 16  ;;  %v6609_v42 = vld [vmem:[#allocation2 + $0x260] sm:$0xff]  ;;  %v6865_v20 = vor.u32 %v6864_v49, %v6860_v35 }
 0x352   :  { %v6886_v58 = vshll.u32 %v6609_v42, 16 }
 0x354   :  { %v6888_v22 = vrot.slane %v6886_v58, 1  ;;  %v6622_v58 = vld [vmem:[#allocation2 + $0x2f8] sm:$0x1] }
 0x356   :  { %8976 = vmatmul.mubr.msk.bf16.gmra.mrb[8].mxu1 %vm84_vm2, %v6702_v27  ;;  %v6800_v27 = vshrl.u32 %v6595_v17, 16 }
 0x357   :  { %8979 = vmatprep.mubr.msk.bf16.mxu1 %vm84_vm2, %v6714_v63  ;;  %v6797_v63 = vrot.slane %v6795_v61, 1  ;;  %v6877_v61 = vor.u32 %v6876_v0, %v6872_v62 }
 0x358   :  { %v6805_v14 = vor.u32 %v6804_v53, %v6800_v27  ;;  %v6610_v53 = vld [vmem:[#allocation2 + $0x268] sm:$0x1] }
 0x359   :  { %v6798_v18 = vsel %vm2183_vm7, %v6793_v4, %v6797_v63  ;;  %v6891_v27 = vshll.u32 %v6610_v53, 16  ;;  %v6900_v4 = vrot.slane %v6898_v6, 1  ;;  %v6903_v63 = vshll.u32 %v6612_v44, 16  ;;  %v6624_v53 = vld [vmem:[#allocation2 + $0x310] sm:$0x1] }
 0x35a   :  { %v6810_v56 = vsel %vm2183_vm7, %v6805_v14, %v6809_v31  ;;  %v6613_v14 = vld [vmem:[#allocation2 + $0x290] sm:$0xff]  ;;  %v6884_v31 = vshrl.u32 %v6609_v42, 16 }
 0x35b   :  { %v6893_v50 = vrot.slane %v6891_v27, 1  ;;  %v6910_v43 = vshll.u32 %v6613_v14, 16  ;;  %v6908_v38 = vshrl.u32 %v6613_v14, 16  ;;  %v6627_v14 = vld [vmem:[#allocation2 + $0x338] sm:$0xff] }
 0x35c   :  { %v6889_v13 = vor.u32 %v6888_v22, %v6884_v31 }
 0x35d   :  { %v6912_v59 = vrot.slane %v6910_v43, 1 }
 0x35e   :  { %8980 = vmatmul.mubr.msk.bf16.gmra.mrb[12].mxu1 %vm84_vm2, %v6726_v30  ;;  %v6603_v30 = vld [vmem:[#allocation2 + $0x218] sm:$0xff]  ;;  %v6894_v29 = vsel %vm2183_vm7, %v6889_v13, %v6893_v50 }
 0x35f   :  { %8983 = vmatprep.mubr.msk.bf16.mxu1 %vm84_vm2, %v6738_v9  ;;  %v6829_v9 = vor.u32 %v6828_v1, %v6824_v10  ;;  %v6850_v40 = vshll.u32 %v6603_v30, 16  ;;  %v6848_v32 = vshrl.u32 %v6603_v30, 16  ;;  %v6614_v1 = vld [vmem:[#allocation2 + $0x298] sm:$0x1]  ;;  %v6913_v12 = vor.u32 %v6912_v59, %v6908_v38  ;;  %v6628_v59 = vld [vmem:[#allocation2 + $0x340] sm:$0x1] }
 0x360   :  { %v6915_v30 = vshll.u32 %v6614_v1, 16 }
 0x361   :  { %v6834_v15 = vsel %vm2183_vm7, %v6829_v9, %v6833_v34  ;;  %v6852_v54 = vrot.slane %v6850_v40, 1  ;;  %v6927_v9 = vshll.u32 %v6616_v16, 16  ;;  %v6617_v34 = vld [vmem:[#allocation2 + $0x2c0] sm:$0xff]  ;;  %v6619_v40 = vld [vmem:[#allocation2 + $0x2d8] sm:$0xff]  ;;  %v6994_v16 = vshll.u32 %v6627_v14, 16 }
 0x362   :  { %v6932_v49 = vshrl.u32 %v6617_v34, 16  ;;  %v6944_v0 = vshrl.u32 %v6619_v40, 16 }
 0x363   :  { %v6996_v38 = vrot.slane %v6994_v16, 1 }
 0x366   :  { %8984 = vmatmul.mubr.msk.bf16.gmra.mrb[16].mxu1 %vm84_vm2, %v6750_v8  ;;  %v6841_v8 = vor.u32 %v6840_v36, %v6836_v19  ;;  %v6929_v19 = vrot.slane %v6927_v9, 1  ;;  %v6987_v9 = vshll.u32 %v6626_v48, 16 }
 0x367   :  { %8987 = vmatprep.mubr.msk.bf16.mxu1 %vm84_vm2, %v6762_v41  ;;  %v6853_v41 = vor.u32 %v6852_v54, %v6848_v32  ;;  %v6934_v54 = vshll.u32 %v6617_v34, 16  ;;  %v6946_v32 = vshll.u32 %v6619_v40, 16  ;;  %v6999_v40 = vshll.u32 %v6628_v59, 16 }
 0x368   :  { %v6846_v17 = vsel %vm2183_vm7, %v6841_v8, %v6845_v39  ;;  %v6620_v39 = vld [vmem:[#allocation2 + $0x2e0] sm:$0x1]  ;;  %v6930_v24 = vsel %vm2183_vm7, %v6925_v23, %v6929_v19  ;;  %v6630_v23 = vld [vmem:[#allocation2 + $0x358] sm:$0x1] }
 0x369   :  { %v6858_v60 = vsel %vm2183_vm7, %v6853_v41, %v6857_v33  ;;  %v6936_v41 = vrot.slane %v6934_v54, 1  ;;  %v6939_v33 = vshll.u32 %v6618_v25, 16  ;;  %v6948_v55 = vrot.slane %v6946_v32, 1 }
 0x36a   :  { %v6951_v45 = vshll.u32 %v6620_v39, 16  ;;  %v6992_v54 = vshrl.u32 %v6627_v14, 16  ;;  %v6989_v32 = vrot.slane %v6987_v9, 1 }
 0x36b   :  { %v6937_v42 = vor.u32 %v6936_v41, %v6932_v49  ;;  %v6941_v35 = vrot.slane %v6939_v33, 1  ;;  %v7001_v41 = vrot.slane %v6999_v40, 1 }
 0x36d   :  { %v6942_v6 = vsel %vm2183_vm7, %v6937_v42, %v6941_v35 }
 0x36e   :  { %8988 = vmatmul.mubr.msk.bf16.gmra.mrb[20].mxu1 %vm84_vm2, %v6774_v21  ;;  %v6869_v21 = vrot.slane %v6867_v28, 1  ;;  %v6623_v28 = vld [vmem:[#allocation2 + $0x308] sm:$0xff] }
 0x36f   :  { %8991 = vmatprep.mubr.msk.bf16.mxu1 %vm84_vm2, %v6786_v37  ;;  %v6881_v37 = vrot.slane %v6879_v7, 1  ;;  %v6968_v46 = vshrl.u32 %v6623_v28, 16 }
 0x370   :  { %v6870_v52 = vsel %vm2183_vm7, %v6865_v20, %v6869_v21  ;;  %v6949_v20 = vor.u32 %v6948_v55, %v6944_v0  ;;  %v6953_v21 = vrot.slane %v6951_v45, 1  ;;  %v7011_v45 = vshll.u32 %v6630_v23, 16 }
 0x371   :  { %v6882_v51 = vsel %vm2183_vm7, %v6877_v61, %v6881_v37  ;;  %v6970_v61 = vshll.u32 %v6623_v28, 16 }
 0x372   :  { %v6954_v22 = vsel %vm2183_vm7, %v6949_v20, %v6953_v21  ;;  %v7013_v0 = vrot.slane %v7011_v45, 1 }
 0x373   :  { %v6972_v27 = vrot.slane %v6970_v61, 1 }
 0x376   :  { %8992 = vmatmul.mubr.msk.bf16.gmra.mrb[24].mxu1 %vm84_vm2, %v6798_v18  ;;  %v6901_v18 = vor.u32 %v6900_v4, %v6896_v11  ;;  %v6625_v4 = vld [vmem:[#allocation2 + $0x320] sm:$0xff] }
 0x377   :  { %8995 = vmatprep.mubr.msk.bf16.mxu1 %vm84_vm2, %v6810_v56  ;;  %v6905_v56 = vrot.slane %v6903_v63, 1  ;;  %v6982_v43 = vshll.u32 %v6625_v4, 16  ;;  %v6980_v26 = vshrl.u32 %v6625_v4, 16 }
 0x379   :  { %v6906_v10 = vsel %vm2183_vm7, %v6901_v18, %v6905_v56  ;;  %v6973_v56 = vor.u32 %v6972_v27, %v6968_v46  ;;  %v6984_v2 = vrot.slane %v6982_v43, 1 }
 0x37b   :  { %v6985_v25 = vor.u32 %v6984_v2, %v6980_v26 }
 0x37e   :  { %8996 = vmatmul.mubr.msk.bf16.gmra.mrb[28].mxu1 %vm84_vm2, %v6822_v3 }
 0x37f   :  { %8999 = vmatprep.mubr.msk.bf16.mxu1 %vm84_vm2, %v6834_v15  ;;  %v6917_v15 = vrot.slane %v6915_v30, 1  ;;  %v6629_v30 = vld [vmem:[#allocation2 + $0x350] sm:$0xff] }
 0x381   :  { %v6918_v5 = vsel %vm2183_vm7, %v6913_v12, %v6917_v15  ;;  %v7006_v12 = vshll.u32 %v6629_v30, 16 }
 0x383   :  { %v7008_v55 = vrot.slane %v7006_v12, 1 }
 0x386   :  { %9000 = vmatmul.mubr.msk.bf16.gmra.mrb[32].mxu1 %vm84_vm2, %v6846_v17  ;;  %v6621_v17 = vld [vmem:[#allocation2 + $0x2f0] sm:$0xff] }
 0x387   :  { %9003 = vmatprep.mubr.msk.bf16.mxu1 %vm84_vm2, %v6858_v60  ;;  %v6958_v47 = vshll.u32 %v6621_v17, 16  ;;  %v6956_v63 = vshrl.u32 %v6621_v17, 16  ;;  %v6990_v17 = vsel %vm2183_vm7, %v6985_v25, %v6989_v32 }
 0x389   :  { %v6960_v44 = vrot.slane %v6958_v47, 1 }
 0x38b   :  { %v6961_v13 = vor.u32 %v6960_v44, %v6956_v63 }
 0x38e   :  { %9004 = vmatmul.mubr.msk.bf16.gmra.mrb[36].mxu1 %vm84_vm2, %v6870_v52  ;;  %v6963_v52 = vshll.u32 %v6622_v58, 16 }
 0x38f   :  { %9007 = vmatprep.mubr.msk.bf16.mxu1 %vm84_vm2, %v6882_v51  ;;  %v6975_v51 = vshll.u32 %v6624_v53, 16 }
 0x390   :  { %v6965_v50 = vrot.slane %v6963_v52, 1 }
 0x391   :  { %v6977_v1 = vrot.slane %v6975_v51, 1 }
 0x393   :  { %v6978_v34 = vsel %vm2183_vm7, %v6973_v56, %v6977_v1 }
 0x396   :  { %9008 = vmatmul.mubr.msk.bf16.gmra.mrb[40].mxu1 %vm84_vm2, %v6894_v29 }
 0x397   :  { %9011 = vmatprep.mubr.msk.bf16.mxu1 %vm84_vm2, %v6906_v10  ;;  %v6966_v10 = vsel %vm2183_vm7, %v6961_v13, %v6965_v50 }
 0x398   :  { %v11144_v3 = vpop.f32.mrb[64].mxu0 }
 0x399   :  { %v11146_v36 = vpop.f32.mrb[65].mxu0 }
 0x39a   :  { %v11148_v57 = vpop.f32.mrb[66].mxu0 }
 0x39b   :  { %v11150_v8 = vpop.f32.mrb[67].mxu0 }
 0x39e   :  { %9012 = vmatmul.mubr.msk.bf16.gmra.mrb[44].mxu1 %vm84_vm2, %v6918_v5  ;;  %v6997_v5 = vor.u32 %v6996_v38, %v6992_v54 }
 0x39f   :  { %9015 = vmatprep.mubr.msk.bf16.mxu1 %vm84_vm2, %v6930_v24  ;;  %v7004_v24 = vshrl.u32 %v6629_v30, 16 }
 0x3a0   :  { %v11156_v60 = vpop.f32.mrb[68].mxu0  ;;  %v7002_v49 = vsel %vm2183_vm7, %v6997_v5, %v7001_v41 }
 0x3a1   :  { %v11158_v7 = vpop.f32.mrb[69].mxu0  ;;  %v7009_v28 = vor.u32 %v7008_v55, %v7004_v24 }
 0x3a2   :  { %v11160_v62 = vpop.f32.mrb[70].mxu0 }
 0x3a3   :  { %v11162_v37 = vpop.f32.mrb[71].mxu0  ;;  %v7014_v21 = vsel %vm2183_vm7, %v7009_v28, %v7013_v0 }
 0x3a6   :  { %9016 = vmatmul.mubr.msk.bf16.gmra.mrb[48].mxu1 %vm84_vm2, %v6942_v6 }
 0x3a7   :  { %9019 = vmatprep.mubr.msk.bf16.mxu1 %vm84_vm2, %v6954_v22 }
 0x3a8   :  { %v11168_v31 = vpop.f32.mrb[72].mxu0 }
 0x3a9   :  { %v11170_v11 = vpop.f32.mrb[73].mxu0 }
 0x3aa   :  { %v11172_v18 = vpop.f32.mrb[74].mxu0 }
 0x3ab   :  { %v11174_v29 = vpop.f32.mrb[75].mxu0 }
 0x3ae   :  { %9020 = vmatmul.mubr.msk.bf16.gmra.mrb[52].mxu1 %vm84_vm2, %v6966_v10 }
 0x3af   :  { %9023 = vmatprep.mubr.msk.bf16.mxu1 %vm84_vm2, %v6978_v34 }
 0x3b0   :  { %v11180_v15 = vpop.f32.mrb[76].mxu0 }
 0x3b1   :  { %v11182_v19 = vpop.f32.mrb[77].mxu0 }
 0x3b2   :  { %v11184_v39 = vpop.f32.mrb[78].mxu0 }
 0x3b3   :  { %v11186_v33 = vpop.f32.mrb[79].mxu0 }
 0x3b6   :  { %9024 = vmatmul.mubr.msk.bf16.gmra.mrb[56].mxu1 %vm84_vm2, %v6990_v17 }
 0x3b7   :  { %9027 = vmatprep.mubr.msk.bf16.mxu1 %vm84_vm2, %v7002_v49 }
 0x3b8   :  { %v11192_v42 = vpop.f32.mrb[80].mxu0 }
 0x3b9   :  { %v11194_v35 = vpop.f32.mrb[81].mxu0 }
 0x3ba   :  { %v11196_v47 = vpop.f32.mrb[82].mxu0 }
 0x3bb   :  { %v11198_v20 = vpop.f32.mrb[83].mxu0 }
 0x3be   :  { %9028 = vmatmul.mubr.msk.bf16.gmra.mrb[60].mxu1 %vm84_vm2, %v7014_v21 }
 0x3c0   :  { %v11202_v58 = vpop.f32.mrb[84].mxu0 }
 0x3c1   :  { %v11204_v61 = vpop.f32.mrb[85].mxu0 }
 0x3c2   :  { %v11206_v53 = vpop.f32.mrb[86].mxu0 }
 0x3c3   :  { %v11208_v6 = vpop.f32.mrb[87].mxu0 }
 0x3c8   :  { %v11210_v44 = vpop.f32.mrb[88].mxu0 }
 0x3c9   :  { %v11212_v52 = vpop.f32.mrb[89].mxu0 }
 0x3ca   :  { %v11214_v22 = vpop.f32.mrb[90].mxu0 }
 0x3cb   :  { %v11216_v27 = vpop.f32.mrb[91].mxu0 }
 0x3d0   :  { %v11218_v51 = vpop.f32.mrb[92].mxu0 }
 0x3d1   :  { %v11220_v4 = vpop.f32.mrb[93].mxu0 }
 0x3d2   :  { %v11222_v63 = vpop.f32.mrb[94].mxu0 }
 0x3d3   :  { %v11224_v14 = vpop.f32.mrb[95].mxu0 }
 0x3d8   :  { %v11226_v46 = vpop.f32.mrb[96].mxu0 }
 0x3d9   :  { %v11228_v13 = vpop.f32.mrb[97].mxu0 }
 0x3da   :  { %v11230_v50 = vpop.f32.mrb[98].mxu0 }
 0x3db   :  { %v11232_v43 = vpop.f32.mrb[99].mxu0 }
 0x3e0   :  { %v11234_v56 = vpop.f32.mrb[100].mxu0 }
 0x3e1   :  { %v11236_v1 = vpop.f32.mrb[101].mxu0 }
 0x3e2   :  { %v11238_v48 = vpop.f32.mrb[102].mxu0 }
 0x3e3   :  { %v11240_v16 = vpop.f32.mrb[103].mxu0 }
 0x3e8   :  { %v11242_v59 = vpop.f32.mrb[104].mxu0 }
 0x3e9   :  { %v11244_v30 = vpop.f32.mrb[105].mxu0 }
 0x3ea   :  { %v11246_v10 = vpop.f32.mrb[106].mxu0 }
 0x3eb   :  { %v11248_v2 = vpop.f32.mrb[107].mxu0 }
 0x3f0   :  { %v11250_v9 = vpop.f32.mrb[108].mxu0 }
 0x3f1   :  { %v11252_v34 = vpop.f32.mrb[109].mxu0 }
 0x3f2   :  { %v11254_v38 = vpop.f32.mrb[110].mxu0 }
 0x3f3   :  { %v11256_v40 = vpop.f32.mrb[111].mxu0 }
 0x3f8   :  { %v11258_v26 = vpop.f32.mrb[112].mxu0 }
 0x3f9   :  { %v11260_v12 = vpop.f32.mrb[113].mxu0 }
 0x3fa   :  { %v11262_v54 = vpop.f32.mrb[114].mxu0 }
 0x3fb   :  { %11582 = vst [vmem:[#allocation17_spill] sm:$0xff] %v11262_v54  ;;  %v11264_v23 = vpop.f32.mrb[115].mxu0 }
 0x3fc   :  { %11583 = vst [vmem:[#allocation18_spill] sm:$0xff] %v11264_v23 }
 0x400   :  { %v11266_v25 = vpop.f32.mrb[116].mxu0 }
 0x401   :  { %11584 = vst [vmem:[#allocation29_spill] sm:$0xff] %v11266_v25  ;;  %v11268_v32 = vpop.f32.mrb[117].mxu0 }
 0x402   :  { %11585 = vst [vmem:[#allocation30_spill] sm:$0xff] %v11268_v32  ;;  %v11270_v5 = vpop.f32.mrb[118].mxu0 }
 0x403   :  { %11586 = vst [vmem:[#allocation19_spill] sm:$0xff] %v11270_v5  ;;  %v11272_v41 = vpop.f32.mrb[119].mxu0  ;;  %v11290_v5 = vld [vmem:[#allocation11] ss:$0 sm:$0xff] }
 0x404   :  { %11587 = vst [vmem:[#allocation20_spill] sm:$0xff] %v11272_v41 }
 0x408   :  { %v11274_v24 = vpop.f32.mrb[120].mxu0 }
 0x409   :  { %11588 = vst [vmem:[#allocation31_spill] sm:$0xff] %v11274_v24  ;;  %v11276_v55 = vpop.f32.mrb[121].mxu0 }
 0x40a   :  { %11589 = vst [vmem:[#allocation32_spill] sm:$0xff] %v11276_v55  ;;  %v11278_v45 = vpop.f32.mrb[122].mxu0 }
 0x40b   :  { %11590 = vst [vmem:[#allocation21_spill] sm:$0xff] %v11278_v45  ;;  %v11280_v17 = vpop.f32.mrb[123].mxu0 }
 0x40c   :  { %11591 = vst [vmem:[#allocation22_spill] sm:$0xff] %v11280_v17 }
 0x410   :  { %v11282_v49 = vpop.f32.mrb[124].mxu0 }
 0x411   :  { %11592 = vst [vmem:[#allocation33_spill] sm:$0xff] %v11282_v49  ;;  %v11284_v28 = vpop.f32.mrb[125].mxu0 }
 0x412   :  { %11593 = vst [vmem:[#allocation34_spill] sm:$0xff] %v11284_v28  ;;  %v11286_v0 = vpop.f32.mrb[126].mxu0 }
 0x413   :  { %11594 = vst [vmem:[#allocation23_spill] sm:$0xff] %v11286_v0  ;;  %v11288_v21 = vpop.f32.mrb[127].mxu0 }
 0x414   :  { %11595 = vst [vmem:[#allocation24_spill] sm:$0xff] %v11288_v21 }
 0x419   :  { %v8969_v32 = vpop.f32.mrb[0].mxu1 }
 0x41a   :  { %v9031_v41 = vadd.f32 %v8969_v32, %v11144_v3  ;;  %v7149_v24 = vpop.f32.mrb[1].mxu1 }
 0x41b   :  { %v9032_v55 = vadd.f32 %v7149_v24, %v11146_v36  ;;  %v8970_v25 = vpop.f32.mrb[2].mxu1 }
 0x41c   :  { %v7477_v45 = vadd.f32 %v9031_v41, %v11290_v5  ;;  %v9033_v17 = vadd.f32 %v8970_v25, %v11148_v57  ;;  %v7152_v49 = vpop.f32.mrb[3].mxu1 }
 0x41d   :  { %v7475_v28 = vadd.f32 %v9032_v55, %v11290_v5  ;;  %v9034_v0 = vadd.f32 %v7152_v49, %v11150_v8 }
 0x41e   :  { %v7541_v21 = vmax.f32 %v7477_v45, 0.0  ;;  %v7478_v23 = vadd.f32 %v9033_v17, %v11290_v5 }
 0x41f   :  { %v7539_v54 = vmax.f32 %v7475_v28, 0.0  ;;  %v7476_v3 = vadd.f32 %v9034_v0, %v11290_v5 }
 0x420   :  { %7606 = vst.msk [vmem:[#allocation12 + $0x10] sm:$0xff] %vm7603_vm8, %v7541_v21  ;;  %v7542_v36 = vmax.f32 %v7478_v23, 0.0 }
 0x421   :  { %7604 = vst.msk [vmem:[#allocation12] sm:$0xff] %vm7603_vm8, %v7539_v54  ;;  %v7540_v32 = vmax.f32 %v7476_v3, 0.0  ;;  %v8973_v41 = vpop.f32.mrb[4].mxu1 }
 0x422   :  { %7607 = vst.msk [vmem:[#allocation12 + $0x18] sm:$0xff] %vm7603_vm8, %v7542_v36  ;;  %v9035_v57 = vadd.f32 %v8973_v41, %v11156_v60  ;;  %v7165_v25 = vpop.f32.mrb[5].mxu1 }
 0x423   :  { %7605 = vst.msk [vmem:[#allocation12 + $0x8] sm:$0xff] %vm7603_vm8, %v7540_v32  ;;  %v9036_v8 = vadd.f32 %v7165_v25, %v11158_v7  ;;  %v8974_v24 = vpop.f32.mrb[6].mxu1 }
 0x424   :  { %v7481_v55 = vadd.f32 %v9035_v57, %v11290_v5  ;;  %v9037_v45 = vadd.f32 %v8974_v24, %v11160_v62  ;;  %v7168_v17 = vpop.f32.mrb[7].mxu1 }
 0x425   :  { %v7479_v23 = vadd.f32 %v9036_v8, %v11290_v5  ;;  %v9038_v54 = vadd.f32 %v7168_v17, %v11162_v37 }
 0x426   :  { %v7545_v49 = vmax.f32 %v7481_v55, 0.0  ;;  %v7482_v28 = vadd.f32 %v9037_v45, %v11290_v5 }
 0x427   :  { %v7543_v0 = vmax.f32 %v7479_v23, 0.0  ;;  %v7480_v60 = vadd.f32 %v9038_v54, %v11290_v5 }
 0x428   :  { %7610 = vst.msk [vmem:[#allocation12 + $0x30] sm:$0xff] %vm7603_vm8, %v7545_v49  ;;  %v7546_v21 = vmax.f32 %v7482_v28, 0.0 }
 0x429   :  { %7608 = vst.msk [vmem:[#allocation12 + $0x20] sm:$0xff] %vm7603_vm8, %v7543_v0  ;;  %v7544_v7 = vmax.f32 %v7480_v60, 0.0  ;;  %v8977_v3 = vpop.f32.mrb[8].mxu1 }
 0x42a   :  { %7611 = vst.msk [vmem:[#allocation12 + $0x38] sm:$0xff] %vm7603_vm8, %v7546_v21  ;;  %v9039_v62 = vadd.f32 %v8977_v3, %v11168_v31  ;;  %v7181_v36 = vpop.f32.mrb[9].mxu1 }
 0x42b   :  { %7609 = vst.msk [vmem:[#allocation12 + $0x28] sm:$0xff] %vm7603_vm8, %v7544_v7  ;;  %v9040_v37 = vadd.f32 %v7181_v36, %v11170_v11  ;;  %v8978_v32 = vpop.f32.mrb[10].mxu1 }
 0x42c   :  { %v7485_v41 = vadd.f32 %v9039_v62, %v11290_v5  ;;  %v9041_v57 = vadd.f32 %v8978_v32, %v11172_v18  ;;  %v7184_v25 = vpop.f32.mrb[11].mxu1 }
 0x42d   :  { %v7483_v8 = vadd.f32 %v9040_v37, %v11290_v5  ;;  %v9042_v24 = vadd.f32 %v7184_v25, %v11174_v29 }
 0x42e   :  { %v7549_v55 = vmax.f32 %v7485_v41, 0.0  ;;  %v7486_v45 = vadd.f32 %v9041_v57, %v11290_v5 }
 0x42f   :  { %v7547_v17 = vmax.f32 %v7483_v8, 0.0  ;;  %v7484_v31 = vadd.f32 %v9042_v24, %v11290_v5 }
 0x430   :  { %7614 = vst.msk [vmem:[#allocation12 + $0x50] sm:$0xff] %vm7603_vm8, %v7549_v55  ;;  %v7550_v23 = vmax.f32 %v7486_v45, 0.0 }
 0x431   :  { %7612 = vst.msk [vmem:[#allocation12 + $0x40] sm:$0xff] %vm7603_vm8, %v7547_v17  ;;  %v7548_v11 = vmax.f32 %v7484_v31, 0.0  ;;  %v8981_v54 = vpop.f32.mrb[12].mxu1 }
 0x432   :  { %7615 = vst.msk [vmem:[#allocation12 + $0x58] sm:$0xff] %vm7603_vm8, %v7550_v23  ;;  %v9043_v18 = vadd.f32 %v8981_v54, %v11180_v15  ;;  %v7197_v49 = vpop.f32.mrb[13].mxu1 }
 0x433   :  { %7613 = vst.msk [vmem:[#allocation12 + $0x48] sm:$0xff] %vm7603_vm8, %v7548_v11  ;;  %v9044_v29 = vadd.f32 %v7197_v49, %v11182_v19  ;;  %v8982_v28 = vpop.f32.mrb[14].mxu1 }
 0x434   :  { %v7489_v0 = vadd.f32 %v9043_v18, %v11290_v5  ;;  %v9045_v60 = vadd.f32 %v8982_v28, %v11184_v39  ;;  %v7200_v21 = vpop.f32.mrb[15].mxu1 }
 0x435   :  { %v7487_v7 = vadd.f32 %v9044_v29, %v11290_v5  ;;  %v9046_v3 = vadd.f32 %v7200_v21, %v11186_v33 }
 0x436   :  { %v7553_v62 = vmax.f32 %v7489_v0, 0.0  ;;  %v7490_v36 = vadd.f32 %v9045_v60, %v11290_v5 }
 0x437   :  { %v7551_v37 = vmax.f32 %v7487_v7, 0.0  ;;  %v7488_v15 = vadd.f32 %v9046_v3, %v11290_v5 }
 0x438   :  { %7618 = vst.msk [vmem:[#allocation12 + $0x70] sm:$0xff] %vm7603_vm8, %v7553_v62  ;;  %v7554_v32 = vmax.f32 %v7490_v36, 0.0 }
 0x439   :  { %7616 = vst.msk [vmem:[#allocation12 + $0x60] sm:$0xff] %vm7603_vm8, %v7551_v37  ;;  %v7552_v19 = vmax.f32 %v7488_v15, 0.0  ;;  %v8985_v41 = vpop.f32.mrb[16].mxu1 }
 0x43a   :  { %7619 = vst.msk [vmem:[#allocation12 + $0x78] sm:$0xff] %vm7603_vm8, %v7554_v32  ;;  %v9047_v39 = vadd.f32 %v8985_v41, %v11192_v42  ;;  %v7213_v57 = vpop.f32.mrb[17].mxu1 }
 0x43b   :  { %7617 = vst.msk [vmem:[#allocation12 + $0x68] sm:$0xff] %vm7603_vm8, %v7552_v19  ;;  %v9048_v33 = vadd.f32 %v7213_v57, %v11194_v35  ;;  %v8986_v25 = vpop.f32.mrb[18].mxu1 }
 0x43c   :  { %v7493_v8 = vadd.f32 %v9047_v39, %v11290_v5  ;;  %v9049_v24 = vadd.f32 %v8986_v25, %v11196_v47  ;;  %v7216_v55 = vpop.f32.mrb[19].mxu1 }
 0x43d   :  { %v7491_v45 = vadd.f32 %v9048_v33, %v11290_v5  ;;  %v9050_v17 = vadd.f32 %v7216_v55, %v11198_v20 }
 0x43e   :  { %v7557_v31 = vmax.f32 %v7493_v8, 0.0  ;;  %v7494_v23 = vadd.f32 %v9049_v24, %v11290_v5 }
 0x43f   :  { %v7555_v11 = vmax.f32 %v7491_v45, 0.0  ;;  %v7492_v42 = vadd.f32 %v9050_v17, %v11290_v5 }
 0x440   :  { %7622 = vst.msk [vmem:[#allocation12 + $0x90] sm:$0xff] %vm7603_vm8, %v7557_v31  ;;  %v7558_v54 = vmax.f32 %v7494_v23, 0.0 }
 0x441   :  { %7620 = vst.msk [vmem:[#allocation12 + $0x80] sm:$0xff] %vm7603_vm8, %v7555_v11  ;;  %v7556_v35 = vmax.f32 %v7492_v42, 0.0  ;;  %v8989_v18 = vpop.f32.mrb[20].mxu1 }
 0x442   :  { %7623 = vst.msk [vmem:[#allocation12 + $0x98] sm:$0xff] %vm7603_vm8, %v7558_v54  ;;  %v9051_v47 = vadd.f32 %v8989_v18, %v11202_v58  ;;  %v7229_v49 = vpop.f32.mrb[21].mxu1 }
 0x443   :  { %7621 = vst.msk [vmem:[#allocation12 + $0x88] sm:$0xff] %vm7603_vm8, %v7556_v35  ;;  %v9052_v20 = vadd.f32 %v7229_v49, %v11204_v61  ;;  %v8990_v29 = vpop.f32.mrb[22].mxu1 }
 0x444   :  { %v7497_v28 = vadd.f32 %v9051_v47, %v11290_v5  ;;  %v9053_v0 = vadd.f32 %v8990_v29, %v11206_v53  ;;  %v7232_v60 = vpop.f32.mrb[23].mxu1 }
 0x445   :  { %v7495_v21 = vadd.f32 %v9052_v20, %v11290_v5  ;;  %v9054_v7 = vadd.f32 %v7232_v60, %v11208_v6 }
 0x446   :  { %v7561_v3 = vmax.f32 %v7497_v28, 0.0  ;;  %v7498_v62 = vadd.f32 %v9053_v0, %v11290_v5 }
 0x447   :  { %v7559_v36 = vmax.f32 %v7495_v21, 0.0  ;;  %v7496_v58 = vadd.f32 %v9054_v7, %v11290_v5 }
 0x448   :  { %7626 = vst.msk [vmem:[#allocation12 + $0xb0] sm:$0xff] %vm7603_vm8, %v7561_v3  ;;  %v7562_v37 = vmax.f32 %v7498_v62, 0.0 }
 0x449   :  { %7624 = vst.msk [vmem:[#allocation12 + $0xa0] sm:$0xff] %vm7603_vm8, %v7559_v36  ;;  %v7560_v61 = vmax.f32 %v7496_v58, 0.0  ;;  %v8993_v15 = vpop.f32.mrb[24].mxu1 }
 0x44a   :  { %7627 = vst.msk [vmem:[#allocation12 + $0xb8] sm:$0xff] %vm7603_vm8, %v7562_v37  ;;  %v9055_v53 = vadd.f32 %v8993_v15, %v11210_v44  ;;  %v7245_v32 = vpop.f32.mrb[25].mxu1 }
 0x44b   :  { %7625 = vst.msk [vmem:[#allocation12 + $0xa8] sm:$0xff] %vm7603_vm8, %v7560_v61  ;;  %v9056_v6 = vadd.f32 %v7245_v32, %v11212_v52  ;;  %v8994_v19 = vpop.f32.mrb[26].mxu1 }
 0x44c   :  { %v7501_v41 = vadd.f32 %v9055_v53, %v11290_v5  ;;  %v9057_v39 = vadd.f32 %v8994_v19, %v11214_v22  ;;  %v7248_v57 = vpop.f32.mrb[27].mxu1 }
 0x44d   :  { %v7499_v33 = vadd.f32 %v9056_v6, %v11290_v5  ;;  %v9058_v25 = vadd.f32 %v7248_v57, %v11216_v27 }
 0x44e   :  { %v7565_v8 = vmax.f32 %v7501_v41, 0.0  ;;  %v7502_v24 = vadd.f32 %v9057_v39, %v11290_v5 }
 0x44f   :  { %v7563_v55 = vmax.f32 %v7499_v33, 0.0  ;;  %v7500_v44 = vadd.f32 %v9058_v25, %v11290_v5 }
 0x450   :  { %7630 = vst.msk [vmem:[#allocation12 + $0xd0] sm:$0xff] %vm7603_vm8, %v7565_v8  ;;  %v7566_v45 = vmax.f32 %v7502_v24, 0.0 }
 0x451   :  { %7628 = vst.msk [vmem:[#allocation12 + $0xc0] sm:$0xff] %vm7603_vm8, %v7563_v55  ;;  %v7564_v52 = vmax.f32 %v7500_v44, 0.0  ;;  %v8997_v17 = vpop.f32.mrb[28].mxu1 }
 0x452   :  { %7631 = vst.msk [vmem:[#allocation12 + $0xd8] sm:$0xff] %vm7603_vm8, %v7566_v45  ;;  %v9059_v22 = vadd.f32 %v8997_v17, %v11218_v51  ;;  %v7261_v31 = vpop.f32.mrb[29].mxu1 }
 0x453   :  { %7629 = vst.msk [vmem:[#allocation12 + $0xc8] sm:$0xff] %vm7603_vm8, %v7564_v52  ;;  %v9060_v27 = vadd.f32 %v7261_v31, %v11220_v4  ;;  %v8998_v23 = vpop.f32.mrb[30].mxu1 }
 0x454   :  { %v7505_v11 = vadd.f32 %v9059_v22, %v11290_v5  ;;  %v9061_v42 = vadd.f32 %v8998_v23, %v11222_v63  ;;  %v7264_v54 = vpop.f32.mrb[31].mxu1 }
 0x455   :  { %v7503_v35 = vadd.f32 %v9060_v27, %v11290_v5  ;;  %v9062_v18 = vadd.f32 %v7264_v54, %v11224_v14 }
 0x456   :  { %v7569_v47 = vmax.f32 %v7505_v11, 0.0  ;;  %v7506_v49 = vadd.f32 %v9061_v42, %v11290_v5 }
 0x457   :  { %v7567_v20 = vmax.f32 %v7503_v35, 0.0  ;;  %v7504_v51 = vadd.f32 %v9062_v18, %v11290_v5 }
 0x458   :  { %7634 = vst.msk [vmem:[#allocation12 + $0xf0] sm:$0xff] %vm7603_vm8, %v7569_v47  ;;  %v7570_v29 = vmax.f32 %v7506_v49, 0.0 }
 0x459   :  { %7632 = vst.msk [vmem:[#allocation12 + $0xe0] sm:$0xff] %vm7603_vm8, %v7567_v20  ;;  %v7568_v4 = vmax.f32 %v7504_v51, 0.0  ;;  %v9001_v28 = vpop.f32.mrb[32].mxu1 }
 0x45a   :  { %7635 = vst.msk [vmem:[#allocation12 + $0xf8] sm:$0xff] %vm7603_vm8, %v7570_v29  ;;  %v9063_v63 = vadd.f32 %v9001_v28, %v11226_v46  ;;  %v7277_v0 = vpop.f32.mrb[33].mxu1 }
 0x45b   :  { %7633 = vst.msk [vmem:[#allocation12 + $0xe8] sm:$0xff] %vm7603_vm8, %v7568_v4  ;;  %v9064_v14 = vadd.f32 %v7277_v0, %v11228_v13  ;;  %v9002_v60 = vpop.f32.mrb[34].mxu1 }
 0x45c   :  { %v7509_v21 = vadd.f32 %v9063_v63, %v11290_v5  ;;  %v9065_v7 = vadd.f32 %v9002_v60, %v11230_v50  ;;  %v7280_v3 = vpop.f32.mrb[35].mxu1 }
 0x45d   :  { %v7507_v62 = vadd.f32 %v9064_v14, %v11290_v5  ;;  %v9066_v36 = vadd.f32 %v7280_v3, %v11232_v43 }
 0x45e   :  { %v7573_v58 = vmax.f32 %v7509_v21, 0.0  ;;  %v7510_v37 = vadd.f32 %v9065_v7, %v11290_v5 }
 0x45f   :  { %v7571_v61 = vmax.f32 %v7507_v62, 0.0  ;;  %v7508_v46 = vadd.f32 %v9066_v36, %v11290_v5  ;;  %v11596_v36 = vld [vmem:[#allocation17_spill] sm:$0xff] }
 0x460   :  { %7638 = vst.msk [vmem:[#allocation12 + $0x110] sm:$0xff] %vm7603_vm8, %v7573_v58  ;;  %v7574_v15 = vmax.f32 %v7510_v37, 0.0 }
 0x461   :  { %7636 = vst.msk [vmem:[#allocation12 + $0x100] sm:$0xff] %vm7603_vm8, %v7571_v61  ;;  %v7572_v13 = vmax.f32 %v7508_v46, 0.0  ;;  %v9005_v53 = vpop.f32.mrb[36].mxu1  ;;  %v11597_v46 = vld [vmem:[#allocation18_spill] sm:$0xff] }
 0x462   :  { %7639 = vst.msk [vmem:[#allocation12 + $0x118] sm:$0xff] %vm7603_vm8, %v7574_v15  ;;  %v9067_v50 = vadd.f32 %v9005_v53, %v11234_v56  ;;  %v7293_v32 = vpop.f32.mrb[37].mxu1 }
 0x463   :  { %7637 = vst.msk [vmem:[#allocation12 + $0x108] sm:$0xff] %vm7603_vm8, %v7572_v13  ;;  %v9068_v43 = vadd.f32 %v7293_v32, %v11236_v1  ;;  %v9006_v6 = vpop.f32.mrb[38].mxu1 }
 0x464   :  { %v7513_v19 = vadd.f32 %v9067_v50, %v11290_v5  ;;  %v9069_v41 = vadd.f32 %v9006_v6, %v11238_v48  ;;  %v7296_v39 = vpop.f32.mrb[39].mxu1  ;;  %v11598_v6 = vld [vmem:[#allocation29_spill] sm:$0xff] }
 0x465   :  { %v7511_v57 = vadd.f32 %v9068_v43, %v11290_v5  ;;  %v9070_v33 = vadd.f32 %v7296_v39, %v11240_v16  ;;  %v11599_v39 = vld [vmem:[#allocation30_spill] sm:$0xff] }
 0x466   :  { %v7577_v25 = vmax.f32 %v7513_v19, 0.0  ;;  %v7514_v8 = vadd.f32 %v9069_v41, %v11290_v5 }
 0x467   :  { %v7575_v24 = vmax.f32 %v7511_v57, 0.0  ;;  %v7512_v56 = vadd.f32 %v9070_v33, %v11290_v5 }
 0x468   :  { %7642 = vst.msk [vmem:[#allocation12 + $0x130] sm:$0xff] %vm7603_vm8, %v7577_v25  ;;  %v7578_v55 = vmax.f32 %v7514_v8, 0.0  ;;  %v11600_v8 = vld [vmem:[#allocation19_spill] sm:$0xff] }
 0x469   :  { %7640 = vst.msk [vmem:[#allocation12 + $0x120] sm:$0xff] %vm7603_vm8, %v7575_v24  ;;  %v7576_v1 = vmax.f32 %v7512_v56, 0.0  ;;  %v9009_v44 = vpop.f32.mrb[40].mxu1 }
 0x46a   :  { %7643 = vst.msk [vmem:[#allocation12 + $0x138] sm:$0xff] %vm7603_vm8, %v7578_v55  ;;  %v9071_v48 = vadd.f32 %v9009_v44, %v11242_v59  ;;  %v7309_v45 = vpop.f32.mrb[41].mxu1 }
 0x46b   :  { %7641 = vst.msk [vmem:[#allocation12 + $0x128] sm:$0xff] %vm7603_vm8, %v7576_v1  ;;  %v9072_v16 = vadd.f32 %v7309_v45, %v11244_v30  ;;  %v9010_v52 = vpop.f32.mrb[42].mxu1  ;;  %v11601_v1 = vld [vmem:[#allocation20_spill] sm:$0xff] }
 0x46c   :  { %v7517_v17 = vadd.f32 %v9071_v48, %v11290_v5  ;;  %v9073_v22 = vadd.f32 %v9010_v52, %v11246_v10  ;;  %v7312_v31 = vpop.f32.mrb[43].mxu1 }
 0x46d   :  { %v7515_v27 = vadd.f32 %v9072_v16, %v11290_v5  ;;  %v9074_v23 = vadd.f32 %v7312_v31, %v11248_v2 }
 0x46e   :  { %v7581_v11 = vmax.f32 %v7517_v17, 0.0  ;;  %v7518_v42 = vadd.f32 %v9073_v22, %v11290_v5 }
 0x46f   :  { %v7579_v54 = vmax.f32 %v7515_v27, 0.0  ;;  %v7516_v59 = vadd.f32 %v9074_v23, %v11290_v5  ;;  %v11602_v27 = vld [vmem:[#allocation31_spill] sm:$0xff] }
 0x470   :  { %7646 = vst.msk [vmem:[#allocation12 + $0x150] sm:$0xff] %vm7603_vm8, %v7581_v11  ;;  %v7582_v35 = vmax.f32 %v7518_v42, 0.0  ;;  %v11603_v42 = vld [vmem:[#allocation32_spill] sm:$0xff] }
 0x471   :  { %7644 = vst.msk [vmem:[#allocation12 + $0x140] sm:$0xff] %vm7603_vm8, %v7579_v54  ;;  %v7580_v30 = vmax.f32 %v7516_v59, 0.0  ;;  %v9013_v18 = vpop.f32.mrb[44].mxu1 }
 0x472   :  { %7647 = vst.msk [vmem:[#allocation12 + $0x158] sm:$0xff] %vm7603_vm8, %v7582_v35  ;;  %v9075_v10 = vadd.f32 %v9013_v18, %v11250_v9  ;;  %v7325_v47 = vpop.f32.mrb[45].mxu1 }
 0x473   :  { %7645 = vst.msk [vmem:[#allocation12 + $0x148] sm:$0xff] %vm7603_vm8, %v7580_v30  ;;  %v9076_v2 = vadd.f32 %v7325_v47, %v11252_v34  ;;  %v9014_v49 = vpop.f32.mrb[46].mxu1  ;;  %v11604_v30 = vld [vmem:[#allocation21_spill] sm:$0xff] }
 0x474   :  { %v7521_v20 = vadd.f32 %v9075_v10, %v11290_v5  ;;  %v9077_v51 = vadd.f32 %v9014_v49, %v11254_v38  ;;  %v7328_v29 = vpop.f32.mrb[47].mxu1 }
 0x475   :  { %v7519_v4 = vadd.f32 %v9076_v2, %v11290_v5  ;;  %v9078_v28 = vadd.f32 %v7328_v29, %v11256_v40  ;;  %v11605_v2 = vld [vmem:[#allocation22_spill] sm:$0xff] }
 0x476   :  { %v7585_v63 = vmax.f32 %v7521_v20, 0.0  ;;  %v7522_v0 = vadd.f32 %v9077_v51, %v11290_v5 }
 0x477   :  { %v7583_v14 = vmax.f32 %v7519_v4, 0.0  ;;  %v7520_v9 = vadd.f32 %v9078_v28, %v11290_v5 }
 0x478   :  { %7650 = vst.msk [vmem:[#allocation12 + $0x170] sm:$0xff] %vm7603_vm8, %v7585_v63  ;;  %v7586_v60 = vmax.f32 %v7522_v0, 0.0 }
 0x479   :  { %7648 = vst.msk [vmem:[#allocation12 + $0x160] sm:$0xff] %vm7603_vm8, %v7583_v14  ;;  %v7584_v34 = vmax.f32 %v7520_v9, 0.0  ;;  %v9017_v21 = vpop.f32.mrb[48].mxu1  ;;  %v11606_v14 = vld [vmem:[#allocation33_spill] sm:$0xff] }
 0x47a   :  { %7651 = vst.msk [vmem:[#allocation12 + $0x178] sm:$0xff] %vm7603_vm8, %v7586_v60  ;;  %v9079_v38 = vadd.f32 %v9017_v21, %v11258_v26  ;;  %v7341_v7 = vpop.f32.mrb[49].mxu1 }
 0x47b   :  { %7649 = vst.msk [vmem:[#allocation12 + $0x168] sm:$0xff] %vm7603_vm8, %v7584_v34  ;;  %v9080_v40 = vadd.f32 %v7341_v7, %v11260_v12  ;;  %v9018_v3 = vpop.f32.mrb[50].mxu1  ;;  %v11607_v34 = vld [vmem:[#allocation34_spill] sm:$0xff] }
 0x47c   :  { %v7525_v62 = vadd.f32 %v9079_v38, %v11290_v5  ;;  %v9081_v58 = vadd.f32 %v9018_v3, %v11596_v36  ;;  %v7344_v37 = vpop.f32.mrb[51].mxu1 }
 0x47d   :  { %v7523_v61 = vadd.f32 %v9080_v40, %v11290_v5  ;;  %v9082_v15 = vadd.f32 %v7344_v37, %v11597_v46  ;;  %v11608_v40 = vld [vmem:[#allocation23_spill] sm:$0xff] }
 0x47e   :  { %v7589_v13 = vmax.f32 %v7525_v62, 0.0  ;;  %v7526_v53 = vadd.f32 %v9081_v58, %v11290_v5  ;;  %v11609_v58 = vld [vmem:[#allocation24_spill] sm:$0xff] }
 0x47f   :  { %v7587_v50 = vmax.f32 %v7523_v61, 0.0  ;;  %v7524_v26 = vadd.f32 %v9082_v15, %v11290_v5 }
 0x480   :  { %7654 = vst.msk [vmem:[#allocation12 + $0x190] sm:$0xff] %vm7603_vm8, %v7589_v13  ;;  %v7590_v32 = vmax.f32 %v7526_v53, 0.0 }
 0x481   :  { %7652 = vst.msk [vmem:[#allocation12 + $0x180] sm:$0xff] %vm7603_vm8, %v7587_v50  ;;  %v7588_v12 = vmax.f32 %v7524_v26, 0.0  ;;  %v9021_v43 = vpop.f32.mrb[52].mxu1 }
 0x482   :  { %7655 = vst.msk [vmem:[#allocation12 + $0x198] sm:$0xff] %vm7603_vm8, %v7590_v32  ;;  %v9083_v19 = vadd.f32 %v9021_v43, %v11598_v6  ;;  %v7357_v41 = vpop.f32.mrb[53].mxu1 }
 0x483   :  { %7653 = vst.msk [vmem:[#allocation12 + $0x188] sm:$0xff] %vm7603_vm8, %v7588_v12  ;;  %v9084_v57 = vadd.f32 %v7357_v41, %v11599_v39  ;;  %v9022_v33 = vpop.f32.mrb[54].mxu1 }
 0x484   :  { %v7529_v25 = vadd.f32 %v9083_v19, %v11290_v5  ;;  %v9085_v24 = vadd.f32 %v9022_v33, %v11600_v8  ;;  %v7360_v56 = vpop.f32.mrb[55].mxu1 }
 0x485   :  { %v7527_v55 = vadd.f32 %v9084_v57, %v11290_v5  ;;  %v9086_v44 = vadd.f32 %v7360_v56, %v11601_v1 }
 0x486   :  { %v7593_v48 = vmax.f32 %v7529_v25, 0.0  ;;  %v7530_v45 = vadd.f32 %v9085_v24, %v11290_v5 }
 0x487   :  { %v7591_v16 = vmax.f32 %v7527_v55, 0.0  ;;  %v7528_v52 = vadd.f32 %v9086_v44, %v11290_v5 }
 0x488   :  { %7658 = vst.msk [vmem:[#allocation12 + $0x1b0] sm:$0xff] %vm7603_vm8, %v7593_v48  ;;  %v7594_v17 = vmax.f32 %v7530_v45, 0.0 }
 0x489   :  { %7656 = vst.msk [vmem:[#allocation12 + $0x1a0] sm:$0xff] %vm7603_vm8, %v7591_v16  ;;  %v7592_v22 = vmax.f32 %v7528_v52, 0.0  ;;  %v9025_v31 = vpop.f32.mrb[56].mxu1 }
 0x48a   :  { %7659 = vst.msk [vmem:[#allocation12 + $0x1b8] sm:$0xff] %vm7603_vm8, %v7594_v17  ;;  %v9087_v23 = vadd.f32 %v9025_v31, %v11602_v27  ;;  %v7373_v11 = vpop.f32.mrb[57].mxu1 }
 0x48b   :  { %7657 = vst.msk [vmem:[#allocation12 + $0x1a8] sm:$0xff] %vm7603_vm8, %v7592_v22  ;;  %v9088_v54 = vadd.f32 %v7373_v11, %v11603_v42  ;;  %v9026_v59 = vpop.f32.mrb[58].mxu1 }
 0x48c   :  { %v7533_v35 = vadd.f32 %v9087_v23, %v11290_v5  ;;  %v9089_v18 = vadd.f32 %v9026_v59, %v11604_v30  ;;  %v7376_v10 = vpop.f32.mrb[59].mxu1 }
 0x48d   :  { %v7531_v47 = vadd.f32 %v9088_v54, %v11290_v5  ;;  %v9090_v49 = vadd.f32 %v7376_v10, %v11605_v2 }
 0x48e   :  { %v7597_v20 = vmax.f32 %v7533_v35, 0.0  ;;  %v7534_v51 = vadd.f32 %v9089_v18, %v11290_v5 }
 0x48f   :  { %v7595_v29 = vmax.f32 %v7531_v47, 0.0  ;;  %v7532_v4 = vadd.f32 %v9090_v49, %v11290_v5 }
 0x490   :  { %7662 = vst.msk [vmem:[#allocation12 + $0x1d0] sm:$0xff] %vm7603_vm8, %v7597_v20  ;;  %v7598_v28 = vmax.f32 %v7534_v51, 0.0 }
 0x491   :  { %7660 = vst.msk [vmem:[#allocation12 + $0x1c0] sm:$0xff] %vm7603_vm8, %v7595_v29  ;;  %v7596_v63 = vmax.f32 %v7532_v4, 0.0  ;;  %v9029_v0 = vpop.f32.mrb[60].mxu1 }
 0x492   :  { %7663 = vst.msk [vmem:[#allocation12 + $0x1d8] sm:$0xff] %vm7603_vm8, %v7598_v28  ;;  %v9091_v9 = vadd.f32 %v9029_v0, %v11606_v14  ;;  %v7389_v60 = vpop.f32.mrb[61].mxu1 }
 0x493   :  { %7661 = vst.msk [vmem:[#allocation12 + $0x1c8] sm:$0xff] %vm7603_vm8, %v7596_v63  ;;  %v9092_v21 = vadd.f32 %v7389_v60, %v11607_v34  ;;  %v9030_v38 = vpop.f32.mrb[62].mxu1 }
 0x494   :  { %v7537_v7 = vadd.f32 %v9091_v9, %v11290_v5  ;;  %v9093_v3 = vadd.f32 %v9030_v38, %v11608_v40  ;;  %v7392_v62 = vpop.f32.mrb[63].mxu1 }
 0x495   :  { %v7535_v36 = vadd.f32 %v9092_v21, %v11290_v5  ;;  %v9094_v37 = vadd.f32 %v7392_v62, %v11609_v58 }
 0x496   :  { %v7601_v61 = vmax.f32 %v7537_v7, 0.0  ;;  %v7538_v46 = vadd.f32 %v9093_v3, %v11290_v5 }
 0x497   :  { %v7599_v15 = vmax.f32 %v7535_v36, 0.0  ;;  %v7536_v13 = vadd.f32 %v9094_v37, %v11290_v5 }
 0x498   :  { %7666 = vst.msk [vmem:[#allocation12 + $0x1f0] sm:$0xff] %vm7603_vm8, %v7601_v61  ;;  %v7602_v53 = vmax.f32 %v7538_v46, 0.0 }
 0x499   :  { %7664 = vst.msk [vmem:[#allocation12 + $0x1e0] sm:$0xff] %vm7603_vm8, %v7599_v15  ;;  %v7600_v50 = vmax.f32 %v7536_v13, 0.0 }
 0x49a   :  { %7667 = vst.msk [vmem:[#allocation12 + $0x1f8] sm:$0xff] %vm7603_vm8, %v7602_v53 }
 0x49b   :  { %7665 = vst.msk [vmem:[#allocation12 + $0x1e8] sm:$0xff] %vm7603_vm8, %v7600_v50 }
 0x49c   :  { %9738 = shalt.err (!%p9735_p2)
}
 0x49d   :  { %s9739_s30 = scalar_lea.hbm %s11501_s5, 8192 }
 0x49e   :  { %p9740_p3 = scmp.ne.s32.totalorder %s11501_s5, %s9739_s30  ;;  %p9743_p4 = scmp.lt.u32.totalorder %s9739_s30, %s11501_s5 }
 0x4a0   :  { %p9745_p5 = pnand %p9743_p4, %p9740_p3 }
 0x4a2   :  { %9748 = shalt.err (!%p9745_p5)
}
 0x4a3   :  { %s9766_s11 = smov 128   ;;  %s9767_s12 = smov 8  }
 0x4a4   :  { %7679 = dma.vmem_to_hbm [thread:$0]  %s7674_s27, 8192, %s11501_s5, [#allocation5], %s9766_s11, %s9766_s11, %s9767_s12  }
 0x4a5   :  { %9755 = dma.done.wait [#allocation5], 8192  }
 0x4a6   :  { %9756 = vsyncadd [#allocation5], 4294959104 }
 0x4a7   :  { %7683 = vsyncpa [#allocation4], 1 }
 0x4a8   :  { %7684 = vsyncpa [#allocation7], 1 }
 0x4a9   :  { %7685 = vsyncpa [#allocation10], 1 }
 0x4aa   :  { %7686 = vsyncpa [#allocation5], 1 }

</bundles_post_ra>
